<compile_context>
chip_gen: v7x
topology: tpu7x:2x2x1
jax: 0.10.0
libtpu: 0.0.40
codegen_flags: <defaults>
</compile_context>

<pallas_src>
import functools
import math

import jax
import jax.numpy as jnp
from jax import lax
from jax.experimental import pallas as pl
from jax.experimental.pallas import tpu as pltpu


def _round_up(x, m):
    return (x + m - 1) // m * m


def gru_kernel(seq_smem, blkmax_smem,
               len_ref, emb_ref, w_ih_ref, b_ih_ref, w_hh_ref, b_hhn_ref,
               w_out_ref, b_out_ref,
               out_ref,
               projtab_ref, h_ref, xblk_ref,
               *, n_out, t_block, b_block, b_pad):
    """Fused embedding-projection gather + GRU recurrence + Linear + log_softmax.

    Grid: (batch blocks [parallel], time blocks [arbitrary, serial h carry]).

    seq_smem    : (Tp*Bp,)          i32  SMEM  flattened time-major padded token ids
    blkmax_smem : (nb,)             i32  SMEM  max sequence length per batch block
    len_ref     : (Bblk, 1)         i32  VMEM  per-row lengths (0 for padded rows)
    emb_ref     : (Vp, Ep)          mmdt VMEM  zero-padded embedding table
    w_ih_ref    : (Ep, 3*Hp)        mmdt VMEM  fused [r|z|n] input weights
    b_ih_ref    : (1, 3*Hp)         f32  VMEM  combined bias [b_ir+b_hr | b_iz+b_hz | b_in]
    w_hh_ref    : (Hp, 3*Hp)        mmdt VMEM  fused [r|z|n] hidden weights
    b_hhn_ref   : (1, Hp)           f32  VMEM  b_hn (stays inside r*(.))
    w_out_ref   : (Hp, Op)          mmdt VMEM
    b_out_ref   : (1, Op)           f32  VMEM
    out_ref     : (Bblk, Op)        f32  VMEM  log_softmax(Linear(h_final))
    projtab_ref : (Vp, 3*Hp)        f32  VMEM scratch  emb @ W_ih_all + b_comb
    h_ref       : (Bblk, Hp)        f32  VMEM scratch  hidden-state carry across T blocks
    xblk_ref    : (Tblk*Bblk, 3*Hp) f32  VMEM scratch  gathered x-projections of one block
    """
    bi = pl.program_id(0)
    ti = pl.program_id(1)
    nt = pl.num_programs(1)
    Hp = w_hh_ref.shape[0]
    mm_dtype = emb_ref.dtype
    Tblk, Bblk, Bp = t_block, b_block, b_pad

    # ---- once per batch block: fold the input projection into the (small) emb table ----
    @pl.when(ti == 0)
    def _init():
        projtab_ref[...] = (
            jnp.dot(emb_ref[...], w_ih_ref[...], preferred_element_type=jnp.float32)
            + b_ih_ref[...])
        h_ref[...] = jnp.zeros_like(h_ref)

    t0 = ti * Tblk
    blk_max = blkmax_smem[bi]

    # ---- recurrence over this T block; blocks entirely past max(lengths) are skipped ----
    @pl.when(t0 < blk_max)
    def _recurrence():
        # Gather this block's input projections (one projtab row per token), hoisted
        # off the per-step serial chain.  Token ids come from SMEM (scalar reads).
        for tl in range(Tblk):
            for b in range(Bblk):
                tok = seq_smem[(t0 + tl) * Bp + bi * Bblk + b]
                xblk_ref[pl.ds(tl * Bblk + b, 1), :] = projtab_ref[pl.ds(tok, 1), :]

        lengths = len_ref[...]                       # (Bblk, 1) i32
        w_hh = w_hh_ref[...]
        b_hn = b_hhn_ref[...]                        # (1, Hp)

        def step(tl, h):
            start = pl.multiple_of(tl * Bblk, Bblk)
            xp = xblk_ref[pl.ds(start, Bblk), :]     # (Bblk, 3*Hp) f32
            # single fused MXU op per timestep
            g = jnp.dot(h.astype(mm_dtype), w_hh,
                        preferred_element_type=jnp.float32)     # (Bblk, 3*Hp)
            r = jax.nn.sigmoid(xp[:, 0 * Hp:1 * Hp] + g[:, 0 * Hp:1 * Hp])
            z = jax.nn.sigmoid(xp[:, 1 * Hp:2 * Hp] + g[:, 1 * Hp:2 * Hp])
            n = jnp.tanh(xp[:, 2 * Hp:3 * Hp] + r * (g[:, 2 * Hp:3 * Hp] + b_hn))
            h_new = (1.0 - z) * n + z * h
            # pack_padded_sequence semantics: only update while t < lengths[b]
            return jnp.where(t0 + tl < lengths, h_new, h)

        # Tblk is the (modest) unroll factor; the outer T loop is the grid axis.
        h_ref[...] = lax.fori_loop(0, Tblk, step, h_ref[...], unroll=True)

    # ---- output head at the last T block: Linear + masked log_softmax ----
    @pl.when(ti == nt - 1)
    def _head():
        logits = jnp.dot(h_ref[...].astype(mm_dtype), w_out_ref[...],
                         preferred_element_type=jnp.float32) + b_out_ref[...]
        col = lax.broadcasted_iota(jnp.int32, logits.shape, 1)
        logits = jnp.where(col < n_out, logits, -1e30)          # kill padded lanes
        m = jnp.max(logits, axis=-1, keepdims=True)
        lse = m + jnp.log(jnp.sum(jnp.exp(logits - m), axis=-1, keepdims=True))
        out_ref[...] = logits - lse


def simple_gru_forward(seq, lengths, params, *, matmul_dtype=jnp.bfloat16,
                       t_block=4, b_block=8):
    """seq: (T, B) int32 time-major; lengths: (B,) int32.  Returns (B, n_out) f32 log-probs."""
    emb, w_ih, w_hh, b_ih, b_hh, w_out, b_out = params
    T, B = seq.shape
    V, E = emb.shape
    H = w_hh.shape[-1]
    O = w_out.shape[-1]

    LANE, SUB = 128, 8
    Vp, Ep, Hp, Op = (_round_up(V, LANE), _round_up(E, LANE),
                      _round_up(H, LANE), _round_up(O, LANE))
    Bblk = _round_up(max(b_block, SUB), SUB)
    Bp = _round_up(B, Bblk)
    Tblk = max(1, t_block)
    Tp = _round_up(T, Tblk)
    nb, nt = Bp // Bblk, Tp // Tblk

    # -------- wrapper-side layout prep (zero padding + gate/bias fusion), pure glue --------
    emb_p = jnp.zeros((Vp, Ep), matmul_dtype).at[:V, :E].set(emb.astype(matmul_dtype))
    w_ih_all = jnp.zeros((Ep, 3 * Hp), matmul_dtype)
    w_hh_all = jnp.zeros((Hp, 3 * Hp), matmul_dtype)
    for g in range(3):  # [r, z, n] gate order, matching torch nn.GRU
        w_ih_all = w_ih_all.at[:E, g * Hp:g * Hp + H].set(w_ih[g].astype(matmul_dtype))
        w_hh_all = w_hh_all.at[:H, g * Hp:g * Hp + H].set(w_hh[g].astype(matmul_dtype))
    # combined bias: b_hr/b_hz fold into the input side; b_hn must stay inside r*(.)
    b_comb = jnp.zeros((1, 3 * Hp), jnp.float32)
    b_comb = b_comb.at[:, 0 * Hp:0 * Hp + H].set(b_ih[0] + b_hh[0])
    b_comb = b_comb.at[:, 1 * Hp:1 * Hp + H].set(b_ih[1] + b_hh[1])
    b_comb = b_comb.at[:, 2 * Hp:2 * Hp + H].set(b_ih[2])
    b_hh_n = jnp.zeros((1, Hp), jnp.float32).at[:, :H].set(b_hh[2])
    w_out_p = jnp.zeros((Hp, Op), matmul_dtype).at[:H, :O].set(w_out.astype(matmul_dtype))
    b_out_p = jnp.zeros((1, Op), jnp.float32).at[:, :O].set(b_out)

    # token ids: 1-D time-major array -> SMEM via scalar prefetch (lane-dense, no VMEM column)
    seq_p = jnp.zeros((Tp, Bp), jnp.int32).at[:T, :B].set(seq.astype(jnp.int32))
    seq_flat = seq_p.reshape(Tp * Bp)
    lens_full = jnp.zeros((Bp,), jnp.int32).at[:B].set(lengths.astype(jnp.int32))
    len_p = lens_full[:, None]                                  # (Bp, 1) per-row mask source
    blk_max = jnp.max(lens_full.reshape(nb, Bblk), axis=1)      # (nb,) recurrence bound

    # VMEM budget sized to the actual resident buffers (double-buffered inputs + scratch),
    # with 2x headroom; clamped to what all generations (incl. v7x 64 MiB) can grant.
    w_bytes = jnp.finfo(matmul_dtype).bits // 8
    resident = (2 * w_bytes * (Vp * Ep + Ep * 3 * Hp + Hp * 3 * Hp + Hp * Op)
                + 2 * 4 * (4 * Hp + Op + Bblk + Bblk * Op)
                + 4 * (Vp * 3 * Hp + Bblk * Hp + Tblk * Bblk * 3 * Hp))
    vmem_limit = int(min(max(2 * resident, 4 * 1024 * 1024), 64 * 1024 * 1024))

    grid_spec = pltpu.PrefetchScalarGridSpec(
        num_scalar_prefetch=2,                    # token ids + per-block max length -> SMEM
        grid=(nb, nt),                            # (batch blocks, time blocks)
        in_specs=[
            pl.BlockSpec((Bblk, 1), lambda bi, ti, s, m: (bi, 0)),       # lengths
            pl.BlockSpec((Vp, Ep), lambda bi, ti, s, m: (0, 0)),         # emb table
            pl.BlockSpec((Ep, 3 * Hp), lambda bi, ti, s, m: (0, 0)),     # W_ih_all
            pl.BlockSpec((1, 3 * Hp), lambda bi, ti, s, m: (0, 0)),      # b_comb
            pl.BlockSpec((Hp, 3 * Hp), lambda bi, ti, s, m: (0, 0)),     # W_hh_all
            pl.BlockSpec((1, Hp), lambda bi, ti, s, m: (0, 0)),          # b_hn
            pl.BlockSpec((Hp, Op), lambda bi, ti, s, m: (0, 0)),         # W_out
            pl.BlockSpec((1, Op), lambda bi, ti, s, m: (0, 0)),          # b_out
        ],
        out_specs=pl.BlockSpec((Bblk, Op), lambda bi, ti, s, m: (bi, 0)),
        scratch_shapes=[
            pltpu.VMEM((Vp, 3 * Hp), jnp.float32),            # projected embedding table
            pltpu.VMEM((Bblk, Hp), jnp.float32),              # hidden-state carry
            pltpu.VMEM((Tblk * Bblk, 3 * Hp), jnp.float32),   # gathered x-proj of one block
        ],
    )

    out = pl.pallas_call(
        functools.partial(gru_kernel, n_out=O, t_block=Tblk, b_block=Bblk, b_pad=Bp),
        out_shape=jax.ShapeDtypeStruct((Bp, Op), jnp.float32),
        grid_spec=grid_spec,
        compiler_params=pltpu.CompilerParams(
            dimension_semantics=("parallel", "arbitrary"),    # batch blocks -> v7x dual-TC
            vmem_limit_bytes=vmem_limit),
    )(seq_flat, blk_max, len_p, emb_p, w_ih_all, b_comb, w_hh_all, b_hh_n,
      w_out_p, b_out_p)
    return out[:B, :O]


def init_params(key, vocab_size, embedding_dim, n_hidden, n_out):
    k = jax.random.split(key, 7)
    std = 1.0 / math.sqrt(n_hidden)
    emb_table = jax.random.normal(k[0], (vocab_size, embedding_dim), jnp.float32)
    # PyTorch GRU packs weights as (3H, E) in [r, z, n] order; we keep them
    # as (3, E, H) / (3, H, H), i.e. already transposed for x @ W.
    w_ih_t = jax.random.uniform(k[1], (3, embedding_dim, n_hidden), jnp.float32, -std, std)
    w_hh_t = jax.random.uniform(k[2], (3, n_hidden, n_hidden), jnp.float32, -std, std)
    b_ih = jax.random.uniform(k[3], (3, 1, n_hidden), jnp.float32, -std, std)
    b_hh = jax.random.uniform(k[4], (3, 1, n_hidden), jnp.float32, -std, std)
    w_out_t = jax.random.uniform(k[5], (n_hidden, n_out), jnp.float32, -std, std)
    b_out = jax.random.uniform(k[6], (1, n_out), jnp.float32, -std, std)
    return (emb_table, w_ih_t, w_hh_t, b_ih, b_hh, w_out_t, b_out)


def reference_forward(seq, lengths, params):
    """Pure-JAX f32 reference of the same math (for correctness checks)."""
    (emb_table, w_ih_t, w_hh_t, b_ih, b_hh, w_out_t, b_out) = params
    embs = jnp.take(emb_table, seq, axis=0).astype(jnp.float32)
    T, B, _ = embs.shape
    H = w_hh_t.shape[-1]
    h = jnp.zeros((B, H), jnp.float32)
    for t in range(T):
        x = embs[t]
        r = jax.nn.sigmoid(x @ w_ih_t[0] + b_ih[0] + h @ w_hh_t[0] + b_hh[0])
        z = jax.nn.sigmoid(x @ w_ih_t[1] + b_ih[1] + h @ w_hh_t[1] + b_hh[1])
        n = jnp.tanh(x @ w_ih_t[2] + b_ih[2] + r * (h @ w_hh_t[2] + b_hh[2]))
        h_new = (1.0 - z) * n + z * h
        h = jnp.where((t < lengths)[:, None], h_new, h)
    logits = h @ w_out_t + b_out
    return jax.nn.log_softmax(logits, axis=-1)


if __name__ == "__main__":
    # Module hyperparameters from GRU_senti.py
    embedding_dim = 4
    n_hidden = 5
    n_out = 5
    vocab_size = 10          # ['_PAD', '_UNK'] + small synthetic vocab

    T, B = 8, 2              # seq length, batch size

    key = jax.random.PRNGKey(0)
    pkey, skey = jax.random.split(key)
    params = init_params(pkey, vocab_size, embedding_dim, n_hidden, n_out)

    seq = jax.random.randint(skey, (T, B), 0, vocab_size, dtype=jnp.int32)
    lengths = jnp.array([8, 5], dtype=jnp.int32)  # sorted descending (pack_padded_sequence)

    ref = reference_forward(seq, lengths, params)

    # f32 MXU operands (not bit-identical to an f32 FMA reference, but tight tolerance).
    out_f32 = jax.block_until_ready(
        simple_gru_forward(seq, lengths, params, matmul_dtype=jnp.float32))
    assert out_f32.shape == (B, n_out)
    assert jnp.allclose(out_f32, ref, atol=1e-4, rtol=1e-4), (out_f32, ref)

    # bf16 MXU operands (v6e/v7x fast path); carry + nonlinearities stay f32.
    out_bf16 = jax.block_until_ready(
        simple_gru_forward(seq, lengths, params, matmul_dtype=jnp.bfloat16))
    assert out_bf16.shape == (B, n_out)
    assert bool(jnp.all(jnp.isfinite(out_bf16)))
    assert jnp.allclose(out_bf16, ref, atol=1e-1, rtol=1e-1), (out_bf16, ref)

    print("KERNEL_OK")
</pallas_src>

<mosaic_0001>
module attributes {stable_mosaic.version = 11 : i64} {
  func.func @gru_kernel(%arg0: i32, %arg1: i32, %arg2: memref<64xi32, #tpu.memory_space<smem>>, %arg3: memref<1xi32, #tpu.memory_space<smem>>, %arg4: memref<8x1xi32, #tpu.memory_space<vmem>>, %arg5: memref<128x128xf32, #tpu.memory_space<vmem>>, %arg6: memref<128x384xf32, #tpu.memory_space<vmem>>, %arg7: memref<1x384xf32, #tpu.memory_space<vmem>>, %arg8: memref<128x384xf32, #tpu.memory_space<vmem>>, %arg9: memref<1x128xf32, #tpu.memory_space<vmem>>, %arg10: memref<128x128xf32, #tpu.memory_space<vmem>>, %arg11: memref<1x128xf32, #tpu.memory_space<vmem>>, %arg12: memref<8x128xf32, #tpu.memory_space<vmem>>, %arg13: memref<128x384xf32, #tpu.memory_space<vmem>>, %arg14: memref<8x128xf32, #tpu.memory_space<vmem>>, %arg15: memref<32x384xf32, #tpu.memory_space<vmem>>) attributes {dimension_semantics = [#tpu.dimension_semantics<parallel>, #tpu.dimension_semantics<arbitrary>], iteration_bounds = array<i64: 1, 2>, scalar_prefetch = 2 : i64, scratch_operands = 3 : i64, tpu.core_type = #tpu.core_type<tc>, window_params = [{transform_indices = @transform_0, window_bounds = array<i64: 8, 1>}, {pipeline_mode = #tpu.pipeline_mode<synchronous>, transform_indices = @transform_1, window_bounds = array<i64: 128, 128>}, {pipeline_mode = #tpu.pipeline_mode<synchronous>, transform_indices = @transform_2, window_bounds = array<i64: 128, 384>}, {pipeline_mode = #tpu.pipeline_mode<synchronous>, transform_indices = @transform_3, window_bounds = array<i64: 1, 384>}, {pipeline_mode = #tpu.pipeline_mode<synchronous>, transform_indices = @transform_4, window_bounds = array<i64: 128, 384>}, {pipeline_mode = #tpu.pipeline_mode<synchronous>, transform_indices = @transform_5, window_bounds = array<i64: 1, 128>}, {pipeline_mode = #tpu.pipeline_mode<synchronous>, transform_indices = @transform_6, window_bounds = array<i64: 128, 128>}, {pipeline_mode = #tpu.pipeline_mode<synchronous>, transform_indices = @transform_7, window_bounds = array<i64: 1, 128>}, {transform_indices = @transform_8, window_bounds = array<i64: 8, 128>}]} {
    %c0_i32 = arith.constant 0 : i32
    %0 = arith.cmpi eq, %arg1, %c0_i32 : i32
    %1 = arith.extui %0 : i1 to i32
    %c0_i32_0 = arith.constant 0 : i32
    %2 = arith.cmpi ne, %1, %c0_i32_0 : i32
    scf.if %2 {
      %c0 = arith.constant 0 : index
      %c0_3 = arith.constant 0 : index
      %12 = vector.load %arg5[%c0, %c0_3] : memref<128x128xf32, #tpu.memory_space<vmem>>, vector<128x128xf32>
      %c0_4 = arith.constant 0 : index
      %c0_5 = arith.constant 0 : index
      %13 = vector.load %arg6[%c0_4, %c0_5] : memref<128x384xf32, #tpu.memory_space<vmem>>, vector<128x384xf32>
      %cst = arith.constant dense<0.000000e+00> : vector<128x384xf32>
      %14 = tpu.matmul %12, %13, %cst {dimension_numbers = #tpu.dot_dimension_numbers<[1], [0], [0], [1], [0, 0, 1, 1], [], []>} : vector<128x128xf32>, vector<128x384xf32>, vector<128x384xf32> -> vector<128x384xf32>
      %c0_6 = arith.constant 0 : index
      %c0_7 = arith.constant 0 : index
      %15 = vector.load %arg7[%c0_6, %c0_7] : memref<1x384xf32, #tpu.memory_space<vmem>>, vector<1x384xf32>
      %16 = vector.broadcast %15 : vector<1x384xf32> to vector<128x384xf32>
      %17 = arith.addf %14, %16 : vector<128x384xf32>
      %c0_8 = arith.constant 0 : index
      %c0_9 = arith.constant 0 : index
      %18 = vector.load %arg13[%c0_8, %c0_9] : memref<128x384xf32, #tpu.memory_space<vmem>>, vector<128x384xf32>
      tpu.vector_store %arg13[%c0_8, %c0_9], %17 {strides = array<i32>} : memref<128x384xf32, #tpu.memory_space<vmem>>, vector<128x384xf32>,
      %cst_10 = arith.constant 0.000000e+00 : f32
      %19 = vector.broadcast %cst_10 : f32 to vector<8x128xf32>
      %c0_11 = arith.constant 0 : index
      %c0_12 = arith.constant 0 : index
      %20 = vector.load %arg14[%c0_11, %c0_12] : memref<8x128xf32, #tpu.memory_space<vmem>>, vector<8x128xf32>
      tpu.vector_store %arg14[%c0_11, %c0_12], %19 {strides = array<i32>} : memref<8x128xf32, #tpu.memory_space<vmem>>, vector<8x128xf32>,
    } else {
    }
    %c4_i32 = arith.constant 4 : i32
    %3 = arith.muli %arg1, %c4_i32 : i32
    %4 = arith.index_cast %arg0 : i32 to index
    %5 = memref.load %arg3[%4] : memref<1xi32, #tpu.memory_space<smem>>
    %6 = arith.cmpi slt, %3, %5 : i32
    %7 = arith.extui %6 : i1 to i32
    %c0_i32_1 = arith.constant 0 : i32
    %8 = arith.cmpi ne, %7, %c0_i32_1 : i32
    scf.if %8 {
      %c0_i32_3 = arith.constant 0 : i32
      %12 = arith.addi %3, %c0_i32_3 : i32
      %c8_i32 = arith.constant 8 : i32
      %13 = arith.muli %12, %c8_i32 : i32
      %c8_i32_4 = arith.constant 8 : i32
      %14 = arith.muli %arg0, %c8_i32_4 : i32
      %15 = arith.addi %13, %14 : i32
      %c0_i32_5 = arith.constant 0 : i32
      %16 = arith.addi %15, %c0_i32_5 : i32
      %17 = arith.index_cast %16 : i32 to index
      %18 = memref.load %arg2[%17] : memref<64xi32, #tpu.memory_space<smem>>
      %19 = arith.index_cast %18 : i32 to index
      %c0 = arith.constant 0 : index
      %20 = vector.load %arg13[%19, %c0] : memref<128x384xf32, #tpu.memory_space<vmem>>, vector<1x384xf32>
      %c0_6 = arith.constant 0 : index
      %c0_7 = arith.constant 0 : index
      %21 = vector.load %arg15[%c0_6, %c0_7] : memref<32x384xf32, #tpu.memory_space<vmem>>, vector<1x384xf32>
      tpu.vector_store %arg15[%c0_6, %c0_7], %20 {strides = array<i32>} : memref<32x384xf32, #tpu.memory_space<vmem>>, vector<1x384xf32>,
      %c0_i32_8 = arith.constant 0 : i32
      %22 = arith.addi %3, %c0_i32_8 : i32
      %c8_i32_9 = arith.constant 8 : i32
      %23 = arith.muli %22, %c8_i32_9 : i32
      %c8_i32_10 = arith.constant 8 : i32
      %24 = arith.muli %arg0, %c8_i32_10 : i32
      %25 = arith.addi %23, %24 : i32
      %c1_i32_11 = arith.constant 1 : i32
      %26 = arith.addi %25, %c1_i32_11 : i32
      %27 = arith.index_cast %26 : i32 to index
      %28 = memref.load %arg2[%27] : memref<64xi32, #tpu.memory_space<smem>>
      %29 = arith.index_cast %28 : i32 to index
      %c0_12 = arith.constant 0 : index
      %30 = vector.load %arg13[%29, %c0_12] : memref<128x384xf32, #tpu.memory_space<vmem>>, vector<1x384xf32>
      %c1 = arith.constant 1 : index
      %c0_13 = arith.constant 0 : index
      %31 = vector.load %arg15[%c1, %c0_13] : memref<32x384xf32, #tpu.memory_space<vmem>>, vector<1x384xf32>
      tpu.vector_store %arg15[%c1, %c0_13], %30 {strides = array<i32>} : memref<32x384xf32, #tpu.memory_space<vmem>>, vector<1x384xf32>,
      %c0_i32_14 = arith.constant 0 : i32
      %32 = arith.addi %3, %c0_i32_14 : i32
      %c8_i32_15 = arith.constant 8 : i32
      %33 = arith.muli %32, %c8_i32_15 : i32
      %c8_i32_16 = arith.constant 8 : i32
      %34 = arith.muli %arg0, %c8_i32_16 : i32
      %35 = arith.addi %33, %34 : i32
      %c2_i32 = arith.constant 2 : i32
      %36 = arith.addi %35, %c2_i32 : i32
      %37 = arith.index_cast %36 : i32 to index
      %38 = memref.load %arg2[%37] : memref<64xi32, #tpu.memory_space<smem>>
      %39 = arith.index_cast %38 : i32 to index
      %c0_17 = arith.constant 0 : index
      %40 = vector.load %arg13[%39, %c0_17] : memref<128x384xf32, #tpu.memory_space<vmem>>, vector<1x384xf32>
      %c2 = arith.constant 2 : index
      %c0_18 = arith.constant 0 : index
      %41 = vector.load %arg15[%c2, %c0_18] : memref<32x384xf32, #tpu.memory_space<vmem>>, vector<1x384xf32>
      tpu.vector_store %arg15[%c2, %c0_18], %40 {strides = array<i32>} : memref<32x384xf32, #tpu.memory_space<vmem>>, vector<1x384xf32>,
      %c0_i32_19 = arith.constant 0 : i32
      %42 = arith.addi %3, %c0_i32_19 : i32
      %c8_i32_20 = arith.constant 8 : i32
      %43 = arith.muli %42, %c8_i32_20 : i32
      %c8_i32_21 = arith.constant 8 : i32
      %44 = arith.muli %arg0, %c8_i32_21 : i32
      %45 = arith.addi %43, %44 : i32
      %c3_i32 = arith.constant 3 : i32
      %46 = arith.addi %45, %c3_i32 : i32
      %47 = arith.index_cast %46 : i32 to index
      %48 = memref.load %arg2[%47] : memref<64xi32, #tpu.memory_space<smem>>
      %49 = arith.index_cast %48 : i32 to index
      %c0_22 = arith.constant 0 : index
      %50 = vector.load %arg13[%49, %c0_22] : memref<128x384xf32, #tpu.memory_space<vmem>>, vector<1x384xf32>
      %c3 = arith.constant 3 : index
      %c0_23 = arith.constant 0 : index
      %51 = vector.load %arg15[%c3, %c0_23] : memref<32x384xf32, #tpu.memory_space<vmem>>, vector<1x384xf32>
      tpu.vector_store %arg15[%c3, %c0_23], %50 {strides = array<i32>} : memref<32x384xf32, #tpu.memory_space<vmem>>, vector<1x384xf32>,
      %c0_i32_24 = arith.constant 0 : i32
      %52 = arith.addi %3, %c0_i32_24 : i32
      %c8_i32_25 = arith.constant 8 : i32
      %53 = arith.muli %52, %c8_i32_25 : i32
      %c8_i32_26 = arith.constant 8 : i32
      %54 = arith.muli %arg0, %c8_i32_26 : i32
      %55 = arith.addi %53, %54 : i32
      %c4_i32_27 = arith.constant 4 : i32
      %56 = arith.addi %55, %c4_i32_27 : i32
      %57 = arith.index_cast %56 : i32 to index
      %58 = memref.load %arg2[%57] : memref<64xi32, #tpu.memory_space<smem>>
      %59 = arith.index_cast %58 : i32 to index
      %c0_28 = arith.constant 0 : index
      %60 = vector.load %arg13[%59, %c0_28] : memref<128x384xf32, #tpu.memory_space<vmem>>, vector<1x384xf32>
      %c4 = arith.constant 4 : index
      %c0_29 = arith.constant 0 : index
      %61 = vector.load %arg15[%c4, %c0_29] : memref<32x384xf32, #tpu.memory_space<vmem>>, vector<1x384xf32>
      tpu.vector_store %arg15[%c4, %c0_29], %60 {strides = array<i32>} : memref<32x384xf32, #tpu.memory_space<vmem>>, vector<1x384xf32>,
      %c0_i32_30 = arith.constant 0 : i32
      %62 = arith.addi %3, %c0_i32_30 : i32
      %c8_i32_31 = arith.constant 8 : i32
      %63 = arith.muli %62, %c8_i32_31 : i32
      %c8_i32_32 = arith.constant 8 : i32
      %64 = arith.muli %arg0, %c8_i32_32 : i32
      %65 = arith.addi %63, %64 : i32
      %c5_i32 = arith.constant 5 : i32
      %66 = arith.addi %65, %c5_i32 : i32
      %67 = arith.index_cast %66 : i32 to index
      %68 = memref.load %arg2[%67] : memref<64xi32, #tpu.memory_space<smem>>
      %69 = arith.index_cast %68 : i32 to index
      %c0_33 = arith.constant 0 : index
      %70 = vector.load %arg13[%69, %c0_33] : memref<128x384xf32, #tpu.memory_space<vmem>>, vector<1x384xf32>
      %c5 = arith.constant 5 : index
      %c0_34 = arith.constant 0 : index
      %71 = vector.load %arg15[%c5, %c0_34] : memref<32x384xf32, #tpu.memory_space<vmem>>, vector<1x384xf32>
      tpu.vector_store %arg15[%c5, %c0_34], %70 {strides = array<i32>} : memref<32x384xf32, #tpu.memory_space<vmem>>, vector<1x384xf32>,
      %c0_i32_35 = arith.constant 0 : i32
      %72 = arith.addi %3, %c0_i32_35 : i32
      %c8_i32_36 = arith.constant 8 : i32
      %73 = arith.muli %72, %c8_i32_36 : i32
      %c8_i32_37 = arith.constant 8 : i32
      %74 = arith.muli %arg0, %c8_i32_37 : i32
      %75 = arith.addi %73, %74 : i32
      %c6_i32 = arith.constant 6 : i32
      %76 = arith.addi %75, %c6_i32 : i32
      %77 = arith.index_cast %76 : i32 to index
      %78 = memref.load %arg2[%77] : memref<64xi32, #tpu.memory_space<smem>>
      %79 = arith.index_cast %78 : i32 to index
      %c0_38 = arith.constant 0 : index
      %80 = vector.load %arg13[%79, %c0_38] : memref<128x384xf32, #tpu.memory_space<vmem>>, vector<1x384xf32>
      %c6 = arith.constant 6 : index
      %c0_39 = arith.constant 0 : index
      %81 = vector.load %arg15[%c6, %c0_39] : memref<32x384xf32, #tpu.memory_space<vmem>>, vector<1x384xf32>
      tpu.vector_store %arg15[%c6, %c0_39], %80 {strides = array<i32>} : memref<32x384xf32, #tpu.memory_space<vmem>>, vector<1x384xf32>,
      %c0_i32_40 = arith.constant 0 : i32
      %82 = arith.addi %3, %c0_i32_40 : i32
      %c8_i32_41 = arith.constant 8 : i32
      %83 = arith.muli %82, %c8_i32_41 : i32
      %c8_i32_42 = arith.constant 8 : i32
      %84 = arith.muli %arg0, %c8_i32_42 : i32
      %85 = arith.addi %83, %84 : i32
      %c7_i32 = arith.constant 7 : i32
      %86 = arith.addi %85, %c7_i32 : i32
      %87 = arith.index_cast %86 : i32 to index
      %88 = memref.load %arg2[%87] : memref<64xi32, #tpu.memory_space<smem>>
      %89 = arith.index_cast %88 : i32 to index
      %c0_43 = arith.constant 0 : index
      %90 = vector.load %arg13[%89, %c0_43] : memref<128x384xf32, #tpu.memory_space<vmem>>, vector<1x384xf32>
      %c7 = arith.constant 7 : index
      %c0_44 = arith.constant 0 : index
      %91 = vector.load %arg15[%c7, %c0_44] : memref<32x384xf32, #tpu.memory_space<vmem>>, vector<1x384xf32>
      tpu.vector_store %arg15[%c7, %c0_44], %90 {strides = array<i32>} : memref<32x384xf32, #tpu.memory_space<vmem>>, vector<1x384xf32>,
      %c1_i32_45 = arith.constant 1 : i32
      %92 = arith.addi %3, %c1_i32_45 : i32
      %c8_i32_46 = arith.constant 8 : i32
      %93 = arith.muli %92, %c8_i32_46 : i32
      %c8_i32_47 = arith.constant 8 : i32
      %94 = arith.muli %arg0, %c8_i32_47 : i32
      %95 = arith.addi %93, %94 : i32
      %c0_i32_48 = arith.constant 0 : i32
      %96 = arith.addi %95, %c0_i32_48 : i32
      %97 = arith.index_cast %96 : i32 to index
      %98 = memref.load %arg2[%97] : memref<64xi32, #tpu.memory_space<smem>>
      %99 = arith.index_cast %98 : i32 to index
      %c0_49 = arith.constant 0 : index
      %100 = vector.load %arg13[%99, %c0_49] : memref<128x384xf32, #tpu.memory_space<vmem>>, vector<1x384xf32>
      %c8 = arith.constant 8 : index
      %c0_50 = arith.constant 0 : index
      %101 = vector.load %arg15[%c8, %c0_50] : memref<32x384xf32, #tpu.memory_space<vmem>>, vector<1x384xf32>
      tpu.vector_store %arg15[%c8, %c0_50], %100 {strides = array<i32>} : memref<32x384xf32, #tpu.memory_space<vmem>>, vector<1x384xf32>,
      %c1_i32_51 = arith.constant 1 : i32
      %102 = arith.addi %3, %c1_i32_51 : i32
      %c8_i32_52 = arith.constant 8 : i32
      %103 = arith.muli %102, %c8_i32_52 : i32
      %c8_i32_53 = arith.constant 8 : i32
      %104 = arith.muli %arg0, %c8_i32_53 : i32
      %105 = arith.addi %103, %104 : i32
      %c1_i32_54 = arith.constant 1 : i32
      %106 = arith.addi %105, %c1_i32_54 : i32
      %107 = arith.index_cast %106 : i32 to index
      %108 = memref.load %arg2[%107] : memref<64xi32, #tpu.memory_space<smem>>
      %109 = arith.index_cast %108 : i32 to index
      %c0_55 = arith.constant 0 : index
      %110 = vector.load %arg13[%109, %c0_55] : memref<128x384xf32, #tpu.memory_space<vmem>>, vector<1x384xf32>
      %c9 = arith.constant 9 : index
      %c0_56 = arith.constant 0 : index
      %111 = vector.load %arg15[%c9, %c0_56] : memref<32x384xf32, #tpu.memory_space<vmem>>, vector<1x384xf32>
      tpu.vector_store %arg15[%c9, %c0_56], %110 {strides = array<i32>} : memref<32x384xf32, #tpu.memory_space<vmem>>, vector<1x384xf32>,
      %c1_i32_57 = arith.constant 1 : i32
      %112 = arith.addi %3, %c1_i32_57 : i32
      %c8_i32_58 = arith.constant 8 : i32
      %113 = arith.muli %112, %c8_i32_58 : i32
      %c8_i32_59 = arith.constant 8 : i32
      %114 = arith.muli %arg0, %c8_i32_59 : i32
      %115 = arith.addi %113, %114 : i32
      %c2_i32_60 = arith.constant 2 : i32
      %116 = arith.addi %115, %c2_i32_60 : i32
      %117 = arith.index_cast %116 : i32 to index
      %118 = memref.load %arg2[%117] : memref<64xi32, #tpu.memory_space<smem>>
      %119 = arith.index_cast %118 : i32 to index
      %c0_61 = arith.constant 0 : index
      %120 = vector.load %arg13[%119, %c0_61] : memref<128x384xf32, #tpu.memory_space<vmem>>, vector<1x384xf32>
      %c10 = arith.constant 10 : index
      %c0_62 = arith.constant 0 : index
      %121 = vector.load %arg15[%c10, %c0_62] : memref<32x384xf32, #tpu.memory_space<vmem>>, vector<1x384xf32>
      tpu.vector_store %arg15[%c10, %c0_62], %120 {strides = array<i32>} : memref<32x384xf32, #tpu.memory_space<vmem>>, vector<1x384xf32>,
      %c1_i32_63 = arith.constant 1 : i32
      %122 = arith.addi %3, %c1_i32_63 : i32
      %c8_i32_64 = arith.constant 8 : i32
      %123 = arith.muli %122, %c8_i32_64 : i32
      %c8_i32_65 = arith.constant 8 : i32
      %124 = arith.muli %arg0, %c8_i32_65 : i32
      %125 = arith.addi %123, %124 : i32
      %c3_i32_66 = arith.constant 3 : i32
      %126 = arith.addi %125, %c3_i32_66 : i32
      %127 = arith.index_cast %126 : i32 to index
      %128 = memref.load %arg2[%127] : memref<64xi32, #tpu.memory_space<smem>>
      %129 = arith.index_cast %128 : i32 to index
      %c0_67 = arith.constant 0 : index
      %130 = vector.load %arg13[%129, %c0_67] : memref<128x384xf32, #tpu.memory_space<vmem>>, vector<1x384xf32>
      %c11 = arith.constant 11 : index
      %c0_68 = arith.constant 0 : index
      %131 = vector.load %arg15[%c11, %c0_68] : memref<32x384xf32, #tpu.memory_space<vmem>>, vector<1x384xf32>
      tpu.vector_store %arg15[%c11, %c0_68], %130 {strides = array<i32>} : memref<32x384xf32, #tpu.memory_space<vmem>>, vector<1x384xf32>,
      %c1_i32_69 = arith.constant 1 : i32
      %132 = arith.addi %3, %c1_i32_69 : i32
      %c8_i32_70 = arith.constant 8 : i32
      %133 = arith.muli %132, %c8_i32_70 : i32
      %c8_i32_71 = arith.constant 8 : i32
      %134 = arith.muli %arg0, %c8_i32_71 : i32
      %135 = arith.addi %133, %134 : i32
      %c4_i32_72 = arith.constant 4 : i32
      %136 = arith.addi %135, %c4_i32_72 : i32
      %137 = arith.index_cast %136 : i32 to index
      %138 = memref.load %arg2[%137] : memref<64xi32, #tpu.memory_space<smem>>
      %139 = arith.index_cast %138 : i32 to index
      %c0_73 = arith.constant 0 : index
      %140 = vector.load %arg13[%139, %c0_73] : memref<128x384xf32, #tpu.memory_space<vmem>>, vector<1x384xf32>
      %c12 = arith.constant 12 : index
      %c0_74 = arith.constant 0 : index
      %141 = vector.load %arg15[%c12, %c0_74] : memref<32x384xf32, #tpu.memory_space<vmem>>, vector<1x384xf32>
      tpu.vector_store %arg15[%c12, %c0_74], %140 {strides = array<i32>} : memref<32x384xf32, #tpu.memory_space<vmem>>, vector<1x384xf32>,
      %c1_i32_75 = arith.constant 1 : i32
      %142 = arith.addi %3, %c1_i32_75 : i32
      %c8_i32_76 = arith.constant 8 : i32
      %143 = arith.muli %142, %c8_i32_76 : i32
      %c8_i32_77 = arith.constant 8 : i32
      %144 = arith.muli %arg0, %c8_i32_77 : i32
      %145 = arith.addi %143, %144 : i32
      %c5_i32_78 = arith.constant 5 : i32
      %146 = arith.addi %145, %c5_i32_78 : i32
      %147 = arith.index_cast %146 : i32 to index
      %148 = memref.load %arg2[%147] : memref<64xi32, #tpu.memory_space<smem>>
      %149 = arith.index_cast %148 : i32 to index
      %c0_79 = arith.constant 0 : index
      %150 = vector.load %arg13[%149, %c0_79] : memref<128x384xf32, #tpu.memory_space<vmem>>, vector<1x384xf32>
      %c13 = arith.constant 13 : index
      %c0_80 = arith.constant 0 : index
      %151 = vector.load %arg15[%c13, %c0_80] : memref<32x384xf32, #tpu.memory_space<vmem>>, vector<1x384xf32>
      tpu.vector_store %arg15[%c13, %c0_80], %150 {strides = array<i32>} : memref<32x384xf32, #tpu.memory_space<vmem>>, vector<1x384xf32>,
      %c1_i32_81 = arith.constant 1 : i32
      %152 = arith.addi %3, %c1_i32_81 : i32
      %c8_i32_82 = arith.constant 8 : i32
      %153 = arith.muli %152, %c8_i32_82 : i32
      %c8_i32_83 = arith.constant 8 : i32
      %154 = arith.muli %arg0, %c8_i32_83 : i32
      %155 = arith.addi %153, %154 : i32
      %c6_i32_84 = arith.constant 6 : i32
      %156 = arith.addi %155, %c6_i32_84 : i32
      %157 = arith.index_cast %156 : i32 to index
      %158 = memref.load %arg2[%157] : memref<64xi32, #tpu.memory_space<smem>>
      %159 = arith.index_cast %158 : i32 to index
      %c0_85 = arith.constant 0 : index
      %160 = vector.load %arg13[%159, %c0_85] : memref<128x384xf32, #tpu.memory_space<vmem>>, vector<1x384xf32>
      %c14 = arith.constant 14 : index
      %c0_86 = arith.constant 0 : index
      %161 = vector.load %arg15[%c14, %c0_86] : memref<32x384xf32, #tpu.memory_space<vmem>>, vector<1x384xf32>
      tpu.vector_store %arg15[%c14, %c0_86], %160 {strides = array<i32>} : memref<32x384xf32, #tpu.memory_space<vmem>>, vector<1x384xf32>,
      %c1_i32_87 = arith.constant 1 : i32
      %162 = arith.addi %3, %c1_i32_87 : i32
      %c8_i32_88 = arith.constant 8 : i32
      %163 = arith.muli %162, %c8_i32_88 : i32
      %c8_i32_89 = arith.constant 8 : i32
      %164 = arith.muli %arg0, %c8_i32_89 : i32
      %165 = arith.addi %163, %164 : i32
      %c7_i32_90 = arith.constant 7 : i32
      %166 = arith.addi %165, %c7_i32_90 : i32
      %167 = arith.index_cast %166 : i32 to index
      %168 = memref.load %arg2[%167] : memref<64xi32, #tpu.memory_space<smem>>
      %169 = arith.index_cast %168 : i32 to index
      %c0_91 = arith.constant 0 : index
      %170 = vector.load %arg13[%169, %c0_91] : memref<128x384xf32, #tpu.memory_space<vmem>>, vector<1x384xf32>
      %c15 = arith.constant 15 : index
      %c0_92 = arith.constant 0 : index
      %171 = vector.load %arg15[%c15, %c0_92] : memref<32x384xf32, #tpu.memory_space<vmem>>, vector<1x384xf32>
      tpu.vector_store %arg15[%c15, %c0_92], %170 {strides = array<i32>} : memref<32x384xf32, #tpu.memory_space<vmem>>, vector<1x384xf32>,
      %c2_i32_93 = arith.constant 2 : i32
      %172 = arith.addi %3, %c2_i32_93 : i32
      %c8_i32_94 = arith.constant 8 : i32
      %173 = arith.muli %172, %c8_i32_94 : i32
      %c8_i32_95 = arith.constant 8 : i32
      %174 = arith.muli %arg0, %c8_i32_95 : i32
      %175 = arith.addi %173, %174 : i32
      %c0_i32_96 = arith.constant 0 : i32
      %176 = arith.addi %175, %c0_i32_96 : i32
      %177 = arith.index_cast %176 : i32 to index
      %178 = memref.load %arg2[%177] : memref<64xi32, #tpu.memory_space<smem>>
      %179 = arith.index_cast %178 : i32 to index
      %c0_97 = arith.constant 0 : index
      %180 = vector.load %arg13[%179, %c0_97] : memref<128x384xf32, #tpu.memory_space<vmem>>, vector<1x384xf32>
      %c16 = arith.constant 16 : index
      %c0_98 = arith.constant 0 : index
      %181 = vector.load %arg15[%c16, %c0_98] : memref<32x384xf32, #tpu.memory_space<vmem>>, vector<1x384xf32>
      tpu.vector_store %arg15[%c16, %c0_98], %180 {strides = array<i32>} : memref<32x384xf32, #tpu.memory_space<vmem>>, vector<1x384xf32>,
      %c2_i32_99 = arith.constant 2 : i32
      %182 = arith.addi %3, %c2_i32_99 : i32
      %c8_i32_100 = arith.constant 8 : i32
      %183 = arith.muli %182, %c8_i32_100 : i32
      %c8_i32_101 = arith.constant 8 : i32
      %184 = arith.muli %arg0, %c8_i32_101 : i32
      %185 = arith.addi %183, %184 : i32
      %c1_i32_102 = arith.constant 1 : i32
      %186 = arith.addi %185, %c1_i32_102 : i32
      %187 = arith.index_cast %186 : i32 to index
      %188 = memref.load %arg2[%187] : memref<64xi32, #tpu.memory_space<smem>>
      %189 = arith.index_cast %188 : i32 to index
      %c0_103 = arith.constant 0 : index
      %190 = vector.load %arg13[%189, %c0_103] : memref<128x384xf32, #tpu.memory_space<vmem>>, vector<1x384xf32>
      %c17 = arith.constant 17 : index
      %c0_104 = arith.constant 0 : index
      %191 = vector.load %arg15[%c17, %c0_104] : memref<32x384xf32, #tpu.memory_space<vmem>>, vector<1x384xf32>
      tpu.vector_store %arg15[%c17, %c0_104], %190 {strides = array<i32>} : memref<32x384xf32, #tpu.memory_space<vmem>>, vector<1x384xf32>,
      %c2_i32_105 = arith.constant 2 : i32
      %192 = arith.addi %3, %c2_i32_105 : i32
      %c8_i32_106 = arith.constant 8 : i32
      %193 = arith.muli %192, %c8_i32_106 : i32
      %c8_i32_107 = arith.constant 8 : i32
      %194 = arith.muli %arg0, %c8_i32_107 : i32
      %195 = arith.addi %193, %194 : i32
      %c2_i32_108 = arith.constant 2 : i32
      %196 = arith.addi %195, %c2_i32_108 : i32
      %197 = arith.index_cast %196 : i32 to index
      %198 = memref.load %arg2[%197] : memref<64xi32, #tpu.memory_space<smem>>
      %199 = arith.index_cast %198 : i32 to index
      %c0_109 = arith.constant 0 : index
      %200 = vector.load %arg13[%199, %c0_109] : memref<128x384xf32, #tpu.memory_space<vmem>>, vector<1x384xf32>
      %c18 = arith.constant 18 : index
      %c0_110 = arith.constant 0 : index
      %201 = vector.load %arg15[%c18, %c0_110] : memref<32x384xf32, #tpu.memory_space<vmem>>, vector<1x384xf32>
      tpu.vector_store %arg15[%c18, %c0_110], %200 {strides = array<i32>} : memref<32x384xf32, #tpu.memory_space<vmem>>, vector<1x384xf32>,
      %c2_i32_111 = arith.constant 2 : i32
      %202 = arith.addi %3, %c2_i32_111 : i32
      %c8_i32_112 = arith.constant 8 : i32
      %203 = arith.muli %202, %c8_i32_112 : i32
      %c8_i32_113 = arith.constant 8 : i32
      %204 = arith.muli %arg0, %c8_i32_113 : i32
      %205 = arith.addi %203, %204 : i32
      %c3_i32_114 = arith.constant 3 : i32
      %206 = arith.addi %205, %c3_i32_114 : i32
      %207 = arith.index_cast %206 : i32 to index
      %208 = memref.load %arg2[%207] : memref<64xi32, #tpu.memory_space<smem>>
      %209 = arith.index_cast %208 : i32 to index
      %c0_115 = arith.constant 0 : index
      %210 = vector.load %arg13[%209, %c0_115] : memref<128x384xf32, #tpu.memory_space<vmem>>, vector<1x384xf32>
      %c19 = arith.constant 19 : index
      %c0_116 = arith.constant 0 : index
      %211 = vector.load %arg15[%c19, %c0_116] : memref<32x384xf32, #tpu.memory_space<vmem>>, vector<1x384xf32>
      tpu.vector_store %arg15[%c19, %c0_116], %210 {strides = array<i32>} : memref<32x384xf32, #tpu.memory_space<vmem>>, vector<1x384xf32>,
      %c2_i32_117 = arith.constant 2 : i32
      %212 = arith.addi %3, %c2_i32_117 : i32
      %c8_i32_118 = arith.constant 8 : i32
      %213 = arith.muli %212, %c8_i32_118 : i32
      %c8_i32_119 = arith.constant 8 : i32
      %214 = arith.muli %arg0, %c8_i32_119 : i32
      %215 = arith.addi %213, %214 : i32
      %c4_i32_120 = arith.constant 4 : i32
      %216 = arith.addi %215, %c4_i32_120 : i32
      %217 = arith.index_cast %216 : i32 to index
      %218 = memref.load %arg2[%217] : memref<64xi32, #tpu.memory_space<smem>>
      %219 = arith.index_cast %218 : i32 to index
      %c0_121 = arith.constant 0 : index
      %220 = vector.load %arg13[%219, %c0_121] : memref<128x384xf32, #tpu.memory_space<vmem>>, vector<1x384xf32>
      %c20 = arith.constant 20 : index
      %c0_122 = arith.constant 0 : index
      %221 = vector.load %arg15[%c20, %c0_122] : memref<32x384xf32, #tpu.memory_space<vmem>>, vector<1x384xf32>
      tpu.vector_store %arg15[%c20, %c0_122], %220 {strides = array<i32>} : memref<32x384xf32, #tpu.memory_space<vmem>>, vector<1x384xf32>,
      %c2_i32_123 = arith.constant 2 : i32
      %222 = arith.addi %3, %c2_i32_123 : i32
      %c8_i32_124 = arith.constant 8 : i32
      %223 = arith.muli %222, %c8_i32_124 : i32
      %c8_i32_125 = arith.constant 8 : i32
      %224 = arith.muli %arg0, %c8_i32_125 : i32
      %225 = arith.addi %223, %224 : i32
      %c5_i32_126 = arith.constant 5 : i32
      %226 = arith.addi %225, %c5_i32_126 : i32
      %227 = arith.index_cast %226 : i32 to index
      %228 = memref.load %arg2[%227] : memref<64xi32, #tpu.memory_space<smem>>
      %229 = arith.index_cast %228 : i32 to index
      %c0_127 = arith.constant 0 : index
      %230 = vector.load %arg13[%229, %c0_127] : memref<128x384xf32, #tpu.memory_space<vmem>>, vector<1x384xf32>
      %c21 = arith.constant 21 : index
      %c0_128 = arith.constant 0 : index
      %231 = vector.load %arg15[%c21, %c0_128] : memref<32x384xf32, #tpu.memory_space<vmem>>, vector<1x384xf32>
      tpu.vector_store %arg15[%c21, %c0_128], %230 {strides = array<i32>} : memref<32x384xf32, #tpu.memory_space<vmem>>, vector<1x384xf32>,
      %c2_i32_129 = arith.constant 2 : i32
      %232 = arith.addi %3, %c2_i32_129 : i32
      %c8_i32_130 = arith.constant 8 : i32
      %233 = arith.muli %232, %c8_i32_130 : i32
      %c8_i32_131 = arith.constant 8 : i32
      %234 = arith.muli %arg0, %c8_i32_131 : i32
      %235 = arith.addi %233, %234 : i32
      %c6_i32_132 = arith.constant 6 : i32
      %236 = arith.addi %235, %c6_i32_132 : i32
      %237 = arith.index_cast %236 : i32 to index
      %238 = memref.load %arg2[%237] : memref<64xi32, #tpu.memory_space<smem>>
      %239 = arith.index_cast %238 : i32 to index
      %c0_133 = arith.constant 0 : index
      %240 = vector.load %arg13[%239, %c0_133] : memref<128x384xf32, #tpu.memory_space<vmem>>, vector<1x384xf32>
      %c22 = arith.constant 22 : index
      %c0_134 = arith.constant 0 : index
      %241 = vector.load %arg15[%c22, %c0_134] : memref<32x384xf32, #tpu.memory_space<vmem>>, vector<1x384xf32>
      tpu.vector_store %arg15[%c22, %c0_134], %240 {strides = array<i32>} : memref<32x384xf32, #tpu.memory_space<vmem>>, vector<1x384xf32>,
      %c2_i32_135 = arith.constant 2 : i32
      %242 = arith.addi %3, %c2_i32_135 : i32
      %c8_i32_136 = arith.constant 8 : i32
      %243 = arith.muli %242, %c8_i32_136 : i32
      %c8_i32_137 = arith.constant 8 : i32
      %244 = arith.muli %arg0, %c8_i32_137 : i32
      %245 = arith.addi %243, %244 : i32
      %c7_i32_138 = arith.constant 7 : i32
      %246 = arith.addi %245, %c7_i32_138 : i32
      %247 = arith.index_cast %246 : i32 to index
      %248 = memref.load %arg2[%247] : memref<64xi32, #tpu.memory_space<smem>>
      %249 = arith.index_cast %248 : i32 to index
      %c0_139 = arith.constant 0 : index
      %250 = vector.load %arg13[%249, %c0_139] : memref<128x384xf32, #tpu.memory_space<vmem>>, vector<1x384xf32>
      %c23 = arith.constant 23 : index
      %c0_140 = arith.constant 0 : index
      %251 = vector.load %arg15[%c23, %c0_140] : memref<32x384xf32, #tpu.memory_space<vmem>>, vector<1x384xf32>
      tpu.vector_store %arg15[%c23, %c0_140], %250 {strides = array<i32>} : memref<32x384xf32, #tpu.memory_space<vmem>>, vector<1x384xf32>,
      %c3_i32_141 = arith.constant 3 : i32
      %252 = arith.addi %3, %c3_i32_141 : i32
      %c8_i32_142 = arith.constant 8 : i32
      %253 = arith.muli %252, %c8_i32_142 : i32
      %c8_i32_143 = arith.constant 8 : i32
      %254 = arith.muli %arg0, %c8_i32_143 : i32
      %255 = arith.addi %253, %254 : i32
      %c0_i32_144 = arith.constant 0 : i32
      %256 = arith.addi %255, %c0_i32_144 : i32
      %257 = arith.index_cast %256 : i32 to index
      %258 = memref.load %arg2[%257] : memref<64xi32, #tpu.memory_space<smem>>
      %259 = arith.index_cast %258 : i32 to index
      %c0_145 = arith.constant 0 : index
      %260 = vector.load %arg13[%259, %c0_145] : memref<128x384xf32, #tpu.memory_space<vmem>>, vector<1x384xf32>
      %c24 = arith.constant 24 : index
      %c0_146 = arith.constant 0 : index
      %261 = vector.load %arg15[%c24, %c0_146] : memref<32x384xf32, #tpu.memory_space<vmem>>, vector<1x384xf32>
      tpu.vector_store %arg15[%c24, %c0_146], %260 {strides = array<i32>} : memref<32x384xf32, #tpu.memory_space<vmem>>, vector<1x384xf32>,
      %c3_i32_147 = arith.constant 3 : i32
      %262 = arith.addi %3, %c3_i32_147 : i32
      %c8_i32_148 = arith.constant 8 : i32
      %263 = arith.muli %262, %c8_i32_148 : i32
      %c8_i32_149 = arith.constant 8 : i32
      %264 = arith.muli %arg0, %c8_i32_149 : i32
      %265 = arith.addi %263, %264 : i32
      %c1_i32_150 = arith.constant 1 : i32
      %266 = arith.addi %265, %c1_i32_150 : i32
      %267 = arith.index_cast %266 : i32 to index
      %268 = memref.load %arg2[%267] : memref<64xi32, #tpu.memory_space<smem>>
      %269 = arith.index_cast %268 : i32 to index
      %c0_151 = arith.constant 0 : index
      %270 = vector.load %arg13[%269, %c0_151] : memref<128x384xf32, #tpu.memory_space<vmem>>, vector<1x384xf32>
      %c25 = arith.constant 25 : index
      %c0_152 = arith.constant 0 : index
      %271 = vector.load %arg15[%c25, %c0_152] : memref<32x384xf32, #tpu.memory_space<vmem>>, vector<1x384xf32>
      tpu.vector_store %arg15[%c25, %c0_152], %270 {strides = array<i32>} : memref<32x384xf32, #tpu.memory_space<vmem>>, vector<1x384xf32>,
      %c3_i32_153 = arith.constant 3 : i32
      %272 = arith.addi %3, %c3_i32_153 : i32
      %c8_i32_154 = arith.constant 8 : i32
      %273 = arith.muli %272, %c8_i32_154 : i32
      %c8_i32_155 = arith.constant 8 : i32
      %274 = arith.muli %arg0, %c8_i32_155 : i32
      %275 = arith.addi %273, %274 : i32
      %c2_i32_156 = arith.constant 2 : i32
      %276 = arith.addi %275, %c2_i32_156 : i32
      %277 = arith.index_cast %276 : i32 to index
      %278 = memref.load %arg2[%277] : memref<64xi32, #tpu.memory_space<smem>>
      %279 = arith.index_cast %278 : i32 to index
      %c0_157 = arith.constant 0 : index
      %280 = vector.load %arg13[%279, %c0_157] : memref<128x384xf32, #tpu.memory_space<vmem>>, vector<1x384xf32>
      %c26 = arith.constant 26 : index
      %c0_158 = arith.constant 0 : index
      %281 = vector.load %arg15[%c26, %c0_158] : memref<32x384xf32, #tpu.memory_space<vmem>>, vector<1x384xf32>
      tpu.vector_store %arg15[%c26, %c0_158], %280 {strides = array<i32>} : memref<32x384xf32, #tpu.memory_space<vmem>>, vector<1x384xf32>,
      %c3_i32_159 = arith.constant 3 : i32
      %282 = arith.addi %3, %c3_i32_159 : i32
      %c8_i32_160 = arith.constant 8 : i32
      %283 = arith.muli %282, %c8_i32_160 : i32
      %c8_i32_161 = arith.constant 8 : i32
      %284 = arith.muli %arg0, %c8_i32_161 : i32
      %285 = arith.addi %283, %284 : i32
      %c3_i32_162 = arith.constant 3 : i32
      %286 = arith.addi %285, %c3_i32_162 : i32
      %287 = arith.index_cast %286 : i32 to index
      %288 = memref.load %arg2[%287] : memref<64xi32, #tpu.memory_space<smem>>
      %289 = arith.index_cast %288 : i32 to index
      %c0_163 = arith.constant 0 : index
      %290 = vector.load %arg13[%289, %c0_163] : memref<128x384xf32, #tpu.memory_space<vmem>>, vector<1x384xf32>
      %c27 = arith.constant 27 : index
      %c0_164 = arith.constant 0 : index
      %291 = vector.load %arg15[%c27, %c0_164] : memref<32x384xf32, #tpu.memory_space<vmem>>, vector<1x384xf32>
      tpu.vector_store %arg15[%c27, %c0_164], %290 {strides = array<i32>} : memref<32x384xf32, #tpu.memory_space<vmem>>, vector<1x384xf32>,
      %c3_i32_165 = arith.constant 3 : i32
      %292 = arith.addi %3, %c3_i32_165 : i32
      %c8_i32_166 = arith.constant 8 : i32
      %293 = arith.muli %292, %c8_i32_166 : i32
      %c8_i32_167 = arith.constant 8 : i32
      %294 = arith.muli %arg0, %c8_i32_167 : i32
      %295 = arith.addi %293, %294 : i32
      %c4_i32_168 = arith.constant 4 : i32
      %296 = arith.addi %295, %c4_i32_168 : i32
      %297 = arith.index_cast %296 : i32 to index
      %298 = memref.load %arg2[%297] : memref<64xi32, #tpu.memory_space<smem>>
      %299 = arith.index_cast %298 : i32 to index
      %c0_169 = arith.constant 0 : index
      %300 = vector.load %arg13[%299, %c0_169] : memref<128x384xf32, #tpu.memory_space<vmem>>, vector<1x384xf32>
      %c28 = arith.constant 28 : index
      %c0_170 = arith.constant 0 : index
      %301 = vector.load %arg15[%c28, %c0_170] : memref<32x384xf32, #tpu.memory_space<vmem>>, vector<1x384xf32>
      tpu.vector_store %arg15[%c28, %c0_170], %300 {strides = array<i32>} : memref<32x384xf32, #tpu.memory_space<vmem>>, vector<1x384xf32>,
      %c3_i32_171 = arith.constant 3 : i32
      %302 = arith.addi %3, %c3_i32_171 : i32
      %c8_i32_172 = arith.constant 8 : i32
      %303 = arith.muli %302, %c8_i32_172 : i32
      %c8_i32_173 = arith.constant 8 : i32
      %304 = arith.muli %arg0, %c8_i32_173 : i32
      %305 = arith.addi %303, %304 : i32
      %c5_i32_174 = arith.constant 5 : i32
      %306 = arith.addi %305, %c5_i32_174 : i32
      %307 = arith.index_cast %306 : i32 to index
      %308 = memref.load %arg2[%307] : memref<64xi32, #tpu.memory_space<smem>>
      %309 = arith.index_cast %308 : i32 to index
      %c0_175 = arith.constant 0 : index
      %310 = vector.load %arg13[%309, %c0_175] : memref<128x384xf32, #tpu.memory_space<vmem>>, vector<1x384xf32>
      %c29 = arith.constant 29 : index
      %c0_176 = arith.constant 0 : index
      %311 = vector.load %arg15[%c29, %c0_176] : memref<32x384xf32, #tpu.memory_space<vmem>>, vector<1x384xf32>
      tpu.vector_store %arg15[%c29, %c0_176], %310 {strides = array<i32>} : memref<32x384xf32, #tpu.memory_space<vmem>>, vector<1x384xf32>,
      %c3_i32_177 = arith.constant 3 : i32
      %312 = arith.addi %3, %c3_i32_177 : i32
      %c8_i32_178 = arith.constant 8 : i32
      %313 = arith.muli %312, %c8_i32_178 : i32
      %c8_i32_179 = arith.constant 8 : i32
      %314 = arith.muli %arg0, %c8_i32_179 : i32
      %315 = arith.addi %313, %314 : i32
      %c6_i32_180 = arith.constant 6 : i32
      %316 = arith.addi %315, %c6_i32_180 : i32
      %317 = arith.index_cast %316 : i32 to index
      %318 = memref.load %arg2[%317] : memref<64xi32, #tpu.memory_space<smem>>
      %319 = arith.index_cast %318 : i32 to index
      %c0_181 = arith.constant 0 : index
      %320 = vector.load %arg13[%319, %c0_181] : memref<128x384xf32, #tpu.memory_space<vmem>>, vector<1x384xf32>
      %c30 = arith.constant 30 : index
      %c0_182 = arith.constant 0 : index
      %321 = vector.load %arg15[%c30, %c0_182] : memref<32x384xf32, #tpu.memory_space<vmem>>, vector<1x384xf32>
      tpu.vector_store %arg15[%c30, %c0_182], %320 {strides = array<i32>} : memref<32x384xf32, #tpu.memory_space<vmem>>, vector<1x384xf32>,
      %c3_i32_183 = arith.constant 3 : i32
      %322 = arith.addi %3, %c3_i32_183 : i32
      %c8_i32_184 = arith.constant 8 : i32
      %323 = arith.muli %322, %c8_i32_184 : i32
      %c8_i32_185 = arith.constant 8 : i32
      %324 = arith.muli %arg0, %c8_i32_185 : i32
      %325 = arith.addi %323, %324 : i32
      %c7_i32_186 = arith.constant 7 : i32
      %326 = arith.addi %325, %c7_i32_186 : i32
      %327 = arith.index_cast %326 : i32 to index
      %328 = memref.load %arg2[%327] : memref<64xi32, #tpu.memory_space<smem>>
      %329 = arith.index_cast %328 : i32 to index
      %c0_187 = arith.constant 0 : index
      %330 = vector.load %arg13[%329, %c0_187] : memref<128x384xf32, #tpu.memory_space<vmem>>, vector<1x384xf32>
      %c31 = arith.constant 31 : index
      %c0_188 = arith.constant 0 : index
      %331 = vector.load %arg15[%c31, %c0_188] : memref<32x384xf32, #tpu.memory_space<vmem>>, vector<1x384xf32>
      tpu.vector_store %arg15[%c31, %c0_188], %330 {strides = array<i32>} : memref<32x384xf32, #tpu.memory_space<vmem>>, vector<1x384xf32>,
      %c0_189 = arith.constant 0 : index
      %c0_190 = arith.constant 0 : index
      %332 = vector.load %arg4[%c0_189, %c0_190] : memref<8x1xi32, #tpu.memory_space<vmem>>, vector<8x1xi32>
      %c0_191 = arith.constant 0 : index
      %c0_192 = arith.constant 0 : index
      %333 = vector.load %arg8[%c0_191, %c0_192] : memref<128x384xf32, #tpu.memory_space<vmem>>, vector<128x384xf32>
      %c0_193 = arith.constant 0 : index
      %c0_194 = arith.constant 0 : index
      %334 = vector.load %arg9[%c0_193, %c0_194] : memref<1x128xf32, #tpu.memory_space<vmem>>, vector<1x128xf32>
      %c0_195 = arith.constant 0 : index
      %c0_196 = arith.constant 0 : index
      %335 = vector.load %arg14[%c0_195, %c0_196] : memref<8x128xf32, #tpu.memory_space<vmem>>, vector<8x128xf32>
      %c0_i32_197 = arith.constant 0 : i32
      %c8_i32_198 = arith.constant 8 : i32
      %336 = arith.muli %c0_i32_197, %c8_i32_198 : i32
      %337 = tpu.assume_multiple %336, 8 : i32
      %338 = arith.index_cast %337 : i32 to index
      %c0_199 = arith.constant 0 : index
      %339 = vector.load %arg15[%338, %c0_199] : memref<32x384xf32, #tpu.memory_space<vmem>>, vector<8x384xf32>
      %cst = arith.constant dense<0.000000e+00> : vector<8x384xf32>
      %340 = tpu.matmul %335, %333, %cst {dimension_numbers = #tpu.dot_dimension_numbers<[1], [0], [0], [1], [0, 0, 1, 1], [], []>} : vector<8x128xf32>, vector<128x384xf32>, vector<8x384xf32> -> vector<8x384xf32>
      %341 = vector.extract_strided_slice %339 {offsets = [0, 0], sizes = [8, 128], strides = [1, 1]} : vector<8x384xf32> to vector<8x128xf32>
      %342 = vector.extract_strided_slice %340 {offsets = [0, 0], sizes = [8, 128], strides = [1, 1]} : vector<8x384xf32> to vector<8x128xf32>
      %343 = arith.addf %341, %342 : vector<8x128xf32>
      %344 = arith.negf %343 : vector<8x128xf32>
      %345 = math.exp %344 : vector<8x128xf32>
      %cst_200 = arith.constant 1.000000e+00 : f32
      %346 = vector.broadcast %cst_200 : f32 to vector<8x128xf32>
      %347 = arith.addf %346, %345 : vector<8x128xf32>
      %348 = arith.divf %346, %347 : vector<8x128xf32>
      %349 = vector.extract_strided_slice %339 {offsets = [0, 128], sizes = [8, 128], strides = [1, 1]} : vector<8x384xf32> to vector<8x128xf32>
      %350 = vector.extract_strided_slice %340 {offsets = [0, 128], sizes = [8, 128], strides = [1, 1]} : vector<8x384xf32> to vector<8x128xf32>
      %351 = arith.addf %349, %350 : vector<8x128xf32>
      %352 = arith.negf %351 : vector<8x128xf32>
      %353 = math.exp %352 : vector<8x128xf32>
      %cst_201 = arith.constant 1.000000e+00 : f32
      %354 = vector.broadcast %cst_201 : f32 to vector<8x128xf32>
      %355 = arith.addf %354, %353 : vector<8x128xf32>
      %356 = arith.divf %354, %355 : vector<8x128xf32>
      %357 = vector.extract_strided_slice %339 {offsets = [0, 256], sizes = [8, 128], strides = [1, 1]} : vector<8x384xf32> to vector<8x128xf32>
      %358 = vector.extract_strided_slice %340 {offsets = [0, 256], sizes = [8, 128], strides = [1, 1]} : vector<8x384xf32> to vector<8x128xf32>
      %359 = vector.broadcast %334 : vector<1x128xf32> to vector<8x128xf32>
      %360 = arith.addf %358, %359 : vector<8x128xf32>
      %361 = arith.mulf %348, %360 : vector<8x128xf32>
      %362 = arith.addf %357, %361 : vector<8x128xf32>
      %363 = math.tanh %362 : vector<8x128xf32>
      %cst_202 = arith.constant 1.000000e+00 : f32
      %364 = vector.broadcast %cst_202 : f32 to vector<8x128xf32>
      %365 = arith.subf %364, %356 : vector<8x128xf32>
      %366 = arith.mulf %365, %363 : vector<8x128xf32>
      %367 = arith.mulf %356, %335 : vector<8x128xf32>
      %368 = arith.addf %366, %367 : vector<8x128xf32>
      %369 = arith.addi %3, %c0_i32_197 : i32
      %370 = vector.broadcast %369 : i32 to vector<8x1xi32>
      %371 = arith.cmpi slt, %370, %332 : vector<8x1xi32>
      %372 = vector.shape_cast %371 : vector<8x1xi1> to vector<8x1xi1>
      %373 = vector.broadcast %372 : vector<8x1xi1> to vector<8x128xi1>
      %374 = arith.select %373, %368, %335 : vector<8x128xi1>, vector<8x128xf32>
      %c1_i32_203 = arith.constant 1 : i32
      %c8_i32_204 = arith.constant 8 : i32
      %375 = arith.muli %c1_i32_203, %c8_i32_204 : i32
      %376 = tpu.assume_multiple %375, 8 : i32
      %377 = arith.index_cast %376 : i32 to index
      %c0_205 = arith.constant 0 : index
      %378 = vector.load %arg15[%377, %c0_205] : memref<32x384xf32, #tpu.memory_space<vmem>>, vector<8x384xf32>
      %cst_206 = arith.constant dense<0.000000e+00> : vector<8x384xf32>
      %379 = tpu.matmul %374, %333, %cst_206 {dimension_numbers = #tpu.dot_dimension_numbers<[1], [0], [0], [1], [0, 0, 1, 1], [], []>} : vector<8x128xf32>, vector<128x384xf32>, vector<8x384xf32> -> vector<8x384xf32>
      %380 = vector.extract_strided_slice %378 {offsets = [0, 0], sizes = [8, 128], strides = [1, 1]} : vector<8x384xf32> to vector<8x128xf32>
      %381 = vector.extract_strided_slice %379 {offsets = [0, 0], sizes = [8, 128], strides = [1, 1]} : vector<8x384xf32> to vector<8x128xf32>
      %382 = arith.addf %380, %381 : vector<8x128xf32>
      %383 = arith.negf %382 : vector<8x128xf32>
      %384 = math.exp %383 : vector<8x128xf32>
      %cst_207 = arith.constant 1.000000e+00 : f32
      %385 = vector.broadcast %cst_207 : f32 to vector<8x128xf32>
      %386 = arith.addf %385, %384 : vector<8x128xf32>
      %387 = arith.divf %385, %386 : vector<8x128xf32>
      %388 = vector.extract_strided_slice %378 {offsets = [0, 128], sizes = [8, 128], strides = [1, 1]} : vector<8x384xf32> to vector<8x128xf32>
      %389 = vector.extract_strided_slice %379 {offsets = [0, 128], sizes = [8, 128], strides = [1, 1]} : vector<8x384xf32> to vector<8x128xf32>
      %390 = arith.addf %388, %389 : vector<8x128xf32>
      %391 = arith.negf %390 : vector<8x128xf32>
      %392 = math.exp %391 : vector<8x128xf32>
      %cst_208 = arith.constant 1.000000e+00 : f32
      %393 = vector.broadcast %cst_208 : f32 to vector<8x128xf32>
      %394 = arith.addf %393, %392 : vector<8x128xf32>
      %395 = arith.divf %393, %394 : vector<8x128xf32>
      %396 = vector.extract_strided_slice %378 {offsets = [0, 256], sizes = [8, 128], strides = [1, 1]} : vector<8x384xf32> to vector<8x128xf32>
      %397 = vector.extract_strided_slice %379 {offsets = [0, 256], sizes = [8, 128], strides = [1, 1]} : vector<8x384xf32> to vector<8x128xf32>
      %398 = vector.broadcast %334 : vector<1x128xf32> to vector<8x128xf32>
      %399 = arith.addf %397, %398 : vector<8x128xf32>
      %400 = arith.mulf %387, %399 : vector<8x128xf32>
      %401 = arith.addf %396, %400 : vector<8x128xf32>
      %402 = math.tanh %401 : vector<8x128xf32>
      %cst_209 = arith.constant 1.000000e+00 : f32
      %403 = vector.broadcast %cst_209 : f32 to vector<8x128xf32>
      %404 = arith.subf %403, %395 : vector<8x128xf32>
      %405 = arith.mulf %404, %402 : vector<8x128xf32>
      %406 = arith.mulf %395, %374 : vector<8x128xf32>
      %407 = arith.addf %405, %406 : vector<8x128xf32>
      %408 = arith.addi %3, %c1_i32_203 : i32
      %409 = vector.broadcast %408 : i32 to vector<8x1xi32>
      %410 = arith.cmpi slt, %409, %332 : vector<8x1xi32>
      %411 = vector.shape_cast %410 : vector<8x1xi1> to vector<8x1xi1>
      %412 = vector.broadcast %411 : vector<8x1xi1> to vector<8x128xi1>
      %413 = arith.select %412, %407, %374 : vector<8x128xi1>, vector<8x128xf32>
      %c2_i32_210 = arith.constant 2 : i32
      %c8_i32_211 = arith.constant 8 : i32
      %414 = arith.muli %c2_i32_210, %c8_i32_211 : i32
      %415 = tpu.assume_multiple %414, 8 : i32
      %416 = arith.index_cast %415 : i32 to index
      %c0_212 = arith.constant 0 : index
      %417 = vector.load %arg15[%416, %c0_212] : memref<32x384xf32, #tpu.memory_space<vmem>>, vector<8x384xf32>
      %cst_213 = arith.constant dense<0.000000e+00> : vector<8x384xf32>
      %418 = tpu.matmul %413, %333, %cst_213 {dimension_numbers = #tpu.dot_dimension_numbers<[1], [0], [0], [1], [0, 0, 1, 1], [], []>} : vector<8x128xf32>, vector<128x384xf32>, vector<8x384xf32> -> vector<8x384xf32>
      %419 = vector.extract_strided_slice %417 {offsets = [0, 0], sizes = [8, 128], strides = [1, 1]} : vector<8x384xf32> to vector<8x128xf32>
      %420 = vector.extract_strided_slice %418 {offsets = [0, 0], sizes = [8, 128], strides = [1, 1]} : vector<8x384xf32> to vector<8x128xf32>
      %421 = arith.addf %419, %420 : vector<8x128xf32>
      %422 = arith.negf %421 : vector<8x128xf32>
      %423 = math.exp %422 : vector<8x128xf32>
      %cst_214 = arith.constant 1.000000e+00 : f32
      %424 = vector.broadcast %cst_214 : f32 to vector<8x128xf32>
      %425 = arith.addf %424, %423 : vector<8x128xf32>
      %426 = arith.divf %424, %425 : vector<8x128xf32>
      %427 = vector.extract_strided_slice %417 {offsets = [0, 128], sizes = [8, 128], strides = [1, 1]} : vector<8x384xf32> to vector<8x128xf32>
      %428 = vector.extract_strided_slice %418 {offsets = [0, 128], sizes = [8, 128], strides = [1, 1]} : vector<8x384xf32> to vector<8x128xf32>
      %429 = arith.addf %427, %428 : vector<8x128xf32>
      %430 = arith.negf %429 : vector<8x128xf32>
      %431 = math.exp %430 : vector<8x128xf32>
      %cst_215 = arith.constant 1.000000e+00 : f32
      %432 = vector.broadcast %cst_215 : f32 to vector<8x128xf32>
      %433 = arith.addf %432, %431 : vector<8x128xf32>
      %434 = arith.divf %432, %433 : vector<8x128xf32>
      %435 = vector.extract_strided_slice %417 {offsets = [0, 256], sizes = [8, 128], strides = [1, 1]} : vector<8x384xf32> to vector<8x128xf32>
      %436 = vector.extract_strided_slice %418 {offsets = [0, 256], sizes = [8, 128], strides = [1, 1]} : vector<8x384xf32> to vector<8x128xf32>
      %437 = vector.broadcast %334 : vector<1x128xf32> to vector<8x128xf32>
      %438 = arith.addf %436, %437 : vector<8x128xf32>
      %439 = arith.mulf %426, %438 : vector<8x128xf32>
      %440 = arith.addf %435, %439 : vector<8x128xf32>
      %441 = math.tanh %440 : vector<8x128xf32>
      %cst_216 = arith.constant 1.000000e+00 : f32
      %442 = vector.broadcast %cst_216 : f32 to vector<8x128xf32>
      %443 = arith.subf %442, %434 : vector<8x128xf32>
      %444 = arith.mulf %443, %441 : vector<8x128xf32>
      %445 = arith.mulf %434, %413 : vector<8x128xf32>
      %446 = arith.addf %444, %445 : vector<8x128xf32>
      %447 = arith.addi %3, %c2_i32_210 : i32
      %448 = vector.broadcast %447 : i32 to vector<8x1xi32>
      %449 = arith.cmpi slt, %448, %332 : vector<8x1xi32>
      %450 = vector.shape_cast %449 : vector<8x1xi1> to vector<8x1xi1>
      %451 = vector.broadcast %450 : vector<8x1xi1> to vector<8x128xi1>
      %452 = arith.select %451, %446, %413 : vector<8x128xi1>, vector<8x128xf32>
      %c3_i32_217 = arith.constant 3 : i32
      %c8_i32_218 = arith.constant 8 : i32
      %453 = arith.muli %c3_i32_217, %c8_i32_218 : i32
      %454 = tpu.assume_multiple %453, 8 : i32
      %455 = arith.index_cast %454 : i32 to index
      %c0_219 = arith.constant 0 : index
      %456 = vector.load %arg15[%455, %c0_219] : memref<32x384xf32, #tpu.memory_space<vmem>>, vector<8x384xf32>
      %cst_220 = arith.constant dense<0.000000e+00> : vector<8x384xf32>
      %457 = tpu.matmul %452, %333, %cst_220 {dimension_numbers = #tpu.dot_dimension_numbers<[1], [0], [0], [1], [0, 0, 1, 1], [], []>} : vector<8x128xf32>, vector<128x384xf32>, vector<8x384xf32> -> vector<8x384xf32>
      %458 = vector.extract_strided_slice %456 {offsets = [0, 0], sizes = [8, 128], strides = [1, 1]} : vector<8x384xf32> to vector<8x128xf32>
      %459 = vector.extract_strided_slice %457 {offsets = [0, 0], sizes = [8, 128], strides = [1, 1]} : vector<8x384xf32> to vector<8x128xf32>
      %460 = arith.addf %458, %459 : vector<8x128xf32>
      %461 = arith.negf %460 : vector<8x128xf32>
      %462 = math.exp %461 : vector<8x128xf32>
      %cst_221 = arith.constant 1.000000e+00 : f32
      %463 = vector.broadcast %cst_221 : f32 to vector<8x128xf32>
      %464 = arith.addf %463, %462 : vector<8x128xf32>
      %465 = arith.divf %463, %464 : vector<8x128xf32>
      %466 = vector.extract_strided_slice %456 {offsets = [0, 128], sizes = [8, 128], strides = [1, 1]} : vector<8x384xf32> to vector<8x128xf32>
      %467 = vector.extract_strided_slice %457 {offsets = [0, 128], sizes = [8, 128], strides = [1, 1]} : vector<8x384xf32> to vector<8x128xf32>
      %468 = arith.addf %466, %467 : vector<8x128xf32>
      %469 = arith.negf %468 : vector<8x128xf32>
      %470 = math.exp %469 : vector<8x128xf32>
      %cst_222 = arith.constant 1.000000e+00 : f32
      %471 = vector.broadcast %cst_222 : f32 to vector<8x128xf32>
      %472 = arith.addf %471, %470 : vector<8x128xf32>
      %473 = arith.divf %471, %472 : vector<8x128xf32>
      %474 = vector.extract_strided_slice %456 {offsets = [0, 256], sizes = [8, 128], strides = [1, 1]} : vector<8x384xf32> to vector<8x128xf32>
      %475 = vector.extract_strided_slice %457 {offsets = [0, 256], sizes = [8, 128], strides = [1, 1]} : vector<8x384xf32> to vector<8x128xf32>
      %476 = vector.broadcast %334 : vector<1x128xf32> to vector<8x128xf32>
      %477 = arith.addf %475, %476 : vector<8x128xf32>
      %478 = arith.mulf %465, %477 : vector<8x128xf32>
      %479 = arith.addf %474, %478 : vector<8x128xf32>
      %480 = math.tanh %479 : vector<8x128xf32>
      %cst_223 = arith.constant 1.000000e+00 : f32
      %481 = vector.broadcast %cst_223 : f32 to vector<8x128xf32>
      %482 = arith.subf %481, %473 : vector<8x128xf32>
      %483 = arith.mulf %482, %480 : vector<8x128xf32>
      %484 = arith.mulf %473, %452 : vector<8x128xf32>
      %485 = arith.addf %483, %484 : vector<8x128xf32>
      %486 = arith.addi %3, %c3_i32_217 : i32
      %487 = vector.broadcast %486 : i32 to vector<8x1xi32>
      %488 = arith.cmpi slt, %487, %332 : vector<8x1xi32>
      %489 = vector.shape_cast %488 : vector<8x1xi1> to vector<8x1xi1>
      %490 = vector.broadcast %489 : vector<8x1xi1> to vector<8x128xi1>
      %491 = arith.select %490, %485, %452 : vector<8x128xi1>, vector<8x128xf32>
      %c4_i32_224 = arith.constant 4 : i32
      %c0_225 = arith.constant 0 : index
      %c0_226 = arith.constant 0 : index
      %492 = vector.load %arg14[%c0_225, %c0_226] : memref<8x128xf32, #tpu.memory_space<vmem>>, vector<8x128xf32>
      tpu.vector_store %arg14[%c0_225, %c0_226], %491 {strides = array<i32>} : memref<8x128xf32, #tpu.memory_space<vmem>>, vector<8x128xf32>,
    } else {
    }
    %c1_i32 = arith.constant 1 : i32
    %9 = arith.cmpi eq, %arg1, %c1_i32 : i32
    %10 = arith.extui %9 : i1 to i32
    %c0_i32_2 = arith.constant 0 : i32
    %11 = arith.cmpi ne, %10, %c0_i32_2 : i32
    scf.if %11 {
      %c0 = arith.constant 0 : index
      %c0_3 = arith.constant 0 : index
      %12 = vector.load %arg14[%c0, %c0_3] : memref<8x128xf32, #tpu.memory_space<vmem>>, vector<8x128xf32>
      %c0_4 = arith.constant 0 : index
      %c0_5 = arith.constant 0 : index
      %13 = vector.load %arg10[%c0_4, %c0_5] : memref<128x128xf32, #tpu.memory_space<vmem>>, vector<128x128xf32>
      %cst = arith.constant dense<0.000000e+00> : vector<8x128xf32>
      %14 = tpu.matmul %12, %13, %cst {dimension_numbers = #tpu.dot_dimension_numbers<[1], [0], [0], [1], [0, 0, 1, 1], [], []>} : vector<8x128xf32>, vector<128x128xf32>, vector<8x128xf32> -> vector<8x128xf32>
      %c0_6 = arith.constant 0 : index
      %c0_7 = arith.constant 0 : index
      %15 = vector.load %arg11[%c0_6, %c0_7] : memref<1x128xf32, #tpu.memory_space<vmem>>, vector<1x128xf32>
      %16 = vector.broadcast %15 : vector<1x128xf32> to vector<8x128xf32>
      %17 = arith.addf %14, %16 : vector<8x128xf32>
      %18 = tpu.iota {dimensions = array<i32: 1>} : vector<8x128xi32>
      %c5_i32 = arith.constant 5 : i32
      %19 = vector.broadcast %c5_i32 : i32 to vector<8x128xi32>
      %20 = arith.cmpi slt, %18, %19 : vector<8x128xi32>
      %cst_8 = arith.constant -1.000000e+30 : f32
      %21 = vector.broadcast %cst_8 : f32 to vector<8x128xf32>
      %22 = arith.select %20, %17, %21 : vector<8x128xi1>, vector<8x128xf32>
      %cst_9 = arith.constant dense<0xFF800000> : vector<8xf32>
      %23 = vector.multi_reduction <maximumf>, %22, %cst_9 [1] : vector<8x128xf32> to vector<8xf32>
      %24 = vector.shape_cast %23 : vector<8xf32> to vector<8x1xf32>
      %25 = vector.broadcast %24 : vector<8x1xf32> to vector<8x128xf32>
      %26 = arith.subf %22, %25 : vector<8x128xf32>
      %27 = math.exp %26 : vector<8x128xf32>
      %cst_10 = arith.constant dense<0.000000e+00> : vector<8xf32>
      %28 = vector.multi_reduction <add>, %27, %cst_10 [1] : vector<8x128xf32> to vector<8xf32>
      %29 = vector.shape_cast %28 : vector<8xf32> to vector<8x1xf32>
      %30 = math.log %29 : vector<8x1xf32>
      %31 = arith.addf %24, %30 : vector<8x1xf32>
      %32 = vector.broadcast %31 : vector<8x1xf32> to vector<8x128xf32>
      %33 = arith.subf %22, %32 : vector<8x128xf32>
      %c0_11 = arith.constant 0 : index
      %c0_12 = arith.constant 0 : index
      %34 = vector.load %arg12[%c0_11, %c0_12] : memref<8x128xf32, #tpu.memory_space<vmem>>, vector<8x128xf32>
      tpu.vector_store %arg12[%c0_11, %c0_12], %33 {strides = array<i32>} : memref<8x128xf32, #tpu.memory_space<vmem>>, vector<8x128xf32>,
    } else {
    }
    return
  }
  func.func @transform_0(%arg0: i32, %arg1: i32, %arg2: memref<64xi32, #tpu.memory_space<smem>>, %arg3: memref<1xi32, #tpu.memory_space<smem>>) -> (i32, i32) {
    %c0_i32 = arith.constant 0 : i32
    %c0_i32_0 = arith.constant 0 : i32
    return %arg0, %c0_i32 : i32, i32
  }
  func.func @transform_1(%arg0: i32, %arg1: i32, %arg2: memref<64xi32, #tpu.memory_space<smem>>, %arg3: memref<1xi32, #tpu.memory_space<smem>>) -> (i32, i32) {
    %c0_i32 = arith.constant 0 : i32
    %c0_i32_0 = arith.constant 0 : i32
    %c0_i32_1 = arith.constant 0 : i32
    return %c0_i32, %c0_i32_0 : i32, i32
  }
  func.func @transform_2(%arg0: i32, %arg1: i32, %arg2: memref<64xi32, #tpu.memory_space<smem>>, %arg3: memref<1xi32, #tpu.memory_space<smem>>) -> (i32, i32) {
    %c0_i32 = arith.constant 0 : i32
    %c0_i32_0 = arith.constant 0 : i32
    %c0_i32_1 = arith.constant 0 : i32
    return %c0_i32, %c0_i32_0 : i32, i32
  }
  func.func @transform_3(%arg0: i32, %arg1: i32, %arg2: memref<64xi32, #tpu.memory_space<smem>>, %arg3: memref<1xi32, #tpu.memory_space<smem>>) -> (i32, i32) {
    %c0_i32 = arith.constant 0 : i32
    %c0_i32_0 = arith.constant 0 : i32
    %c0_i32_1 = arith.constant 0 : i32
    return %c0_i32, %c0_i32_0 : i32, i32
  }
  func.func @transform_4(%arg0: i32, %arg1: i32, %arg2: memref<64xi32, #tpu.memory_space<smem>>, %arg3: memref<1xi32, #tpu.memory_space<smem>>) -> (i32, i32) {
    %c0_i32 = arith.constant 0 : i32
    %c0_i32_0 = arith.constant 0 : i32
    %c0_i32_1 = arith.constant 0 : i32
    return %c0_i32, %c0_i32_0 : i32, i32
  }
  func.func @transform_5(%arg0: i32, %arg1: i32, %arg2: memref<64xi32, #tpu.memory_space<smem>>, %arg3: memref<1xi32, #tpu.memory_space<smem>>) -> (i32, i32) {
    %c0_i32 = arith.constant 0 : i32
    %c0_i32_0 = arith.constant 0 : i32
    %c0_i32_1 = arith.constant 0 : i32
    return %c0_i32, %c0_i32_0 : i32, i32
  }
  func.func @transform_6(%arg0: i32, %arg1: i32, %arg2: memref<64xi32, #tpu.memory_space<smem>>, %arg3: memref<1xi32, #tpu.memory_space<smem>>) -> (i32, i32) {
    %c0_i32 = arith.constant 0 : i32
    %c0_i32_0 = arith.constant 0 : i32
    %c0_i32_1 = arith.constant 0 : i32
    return %c0_i32, %c0_i32_0 : i32, i32
  }
  func.func @transform_7(%arg0: i32, %arg1: i32, %arg2: memref<64xi32, #tpu.memory_space<smem>>, %arg3: memref<1xi32, #tpu.memory_space<smem>>) -> (i32, i32) {
    %c0_i32 = arith.constant 0 : i32
    %c0_i32_0 = arith.constant 0 : i32
    %c0_i32_1 = arith.constant 0 : i32
    return %c0_i32, %c0_i32_0 : i32, i32
  }
  func.func @transform_8(%arg0: i32, %arg1: i32, %arg2: memref<64xi32, #tpu.memory_space<smem>>, %arg3: memref<1xi32, #tpu.memory_space<smem>>) -> (i32, i32) {
    %c0_i32 = arith.constant 0 : i32
    %c0_i32_0 = arith.constant 0 : i32
    return %arg0, %c0_i32 : i32, i32
  }
}

</mosaic_0001>

<bundles_post_ra>
// kernel: tpu_custom_call.1
= control target key start
LH: loop header
LB: loop body
LE: loop exit
PB: predicated region body
PF: predicated region fallthrough
CT: control target
= control target key end

     0   :  { %s4222_s0 = inlined_call_operand.vmem [shape: s32[64], index: 0, kind: input, shape index: {}]   ;;  %s4223_s1 = inlined_call_operand.<no memory space> [shape: s32[1], index: 1, kind: input, shape index: {}]   ;;  %s4224_s2 = inlined_call_operand.vmem [shape: s32[8,1], index: 2, kind: input, shape index: {}]   ;;  %s4225_s3 = inlined_call_operand.hbm [shape: f32[128,128], index: 3, kind: input, shape index: {}]   ;;  %s4226_s4 = inlined_call_operand.hbm [shape: f32[128,384], index: 4, kind: input, shape index: {}]   ;;  %s4227_s5 = inlined_call_operand.vmem [shape: f32[1,384], index: 5, kind: input, shape index: {}]   ;;  %s4228_s6 = inlined_call_operand.hbm [shape: f32[128,384], index: 6, kind: input, shape index: {}]   ;;  %s4229_s7 = inlined_call_operand.vmem [shape: f32[1,128], index: 7, kind: input, shape index: {}]   ;;  %s4230_s8 = inlined_call_operand.hbm [shape: f32[128,128], index: 8, kind: input, shape index: {}]   ;;  %s4231_s9 = inlined_call_operand.vmem [shape: f32[1,128], index: 9, kind: input, shape index: {}]   ;;  %s4232_s10 = inlined_call_operand.hbm [shape: f32[8,128], index: 10, kind: output, shape index: {}]  }
   0x1   :  { %4239 = sst [smem:[#allocation23_spill]] %s4224_s2  ;;  %s15_s15 = sshll.u32 %s4222_s0, 4  ;;  %s16_s15 = int_to_ptr.vmem [resolvable:$true] %s15_s15 }
   0x2   :  { %4240 = sst [smem:[#allocation24_spill]] %s4225_s3  ;;  %s3227_s18 = scalar_lea.vmem %s16_s15, 16 }
   0x3   :  { %4241 = sst [smem:[#allocation25_spill]] %s4226_s4  ;;  %p3228_p0 = scmp.ne.s32.totalorder %s16_s15, %s3227_s18 }
   0x4   :  { %19 = sst [smem:[#allocation7]] %s4223_s1  ;;  %p3232_p1 = scmp.lt.s32.totalorder %s16_s15, %s16_s15 }
   0x5   :  { %p3233_p2 = scmp.lt.s32.totalorder %s3227_s18, %s3227_s18 }
   0x7   :  { %p3234_p3 = por %p3233_p2, %p3232_p1 }
   0x9   :  { %p3235_p4 = pnand %p3234_p3, %p3228_p0 }
   0xb   :  { %3238 = shalt.err (!%p3235_p4)  }
   0xc   :  { %s3419_s19 = smov [#allocation6]  }
   0xd   :  { %18 = dma.vmem_to_smem %s16_s15, 16, %s3419_s19, [#allocation5] }
   0xe   :  { %3389 = dma.done.wait [#allocation5], 16 }
   0xf   :  { %3390 = vsyncadd [#allocation5], 4294967280 }
  0x10   :  { %21 = sfence }
  0x11   :  { %22 = vsyncpa [#allocation9], 0 }
  0x12   :  { %23 = vsyncpa [#allocation12], 0 }
  0x13   :  { %24 = vsyncpa [#allocation15], 0 }
  0x14   :  { %25 = vsyncpa [#allocation10], 0  ;;  %s3498_s0 = smov 0   ;;  %s3500_s1 = smov 0  }
  0x15   :  { %s3502_s20 = smov 0  }
  0x16 LB: > { %s3420_s21 = smov [#allocation11]   ;;  %s4235_s23 = sadd.s32 4294967295, %s3417_s20   ;;  %s3417_s20 = sphi %s3502_s20, %s31_s20   ;;  %s3413_s1 = sphi %s3500_s1, %s4261_s1   ;;  %s3409_s0 = sphi %s3498_s0, %s4260_s0  }
  0x17   : > { %s279_s22 = sshll.u32 %s3420_s21, 4  ;;  %p2362_p5 = scmp.ge.s32.totalorder %s3417_s20, 1  ;;  %s3522_s22 = int_to_ptr.vmem [resolvable:$true] %s279_s22 }
  0x18   : > { %p247_p6 = scmp.lt.s32.totalorder %s3417_s20, 3  ;;  %p3518_p7 = scmp.eq.s32.totalorder %s4235_s23, 0 }
  0x19   : > { %s40_s27 = sadd.s32 1, %s3413_s1  ;;  %s3421_s29 = smov [#allocation8]  }
  0x1a   : > { %s4242_s24 = scalar_select %p3518_p7, 1, 0 }
  0x1b   : > { %p3524_p8 = pnand %p2362_p5, %p247_p6  ;;  %p3537_p11 = scmp.ge.s32.totalorder %s40_s27, 2 }
  0x1c   : > { %s266_s30 = sshll.u32 %s3421_s29, 4  ;;  %s4246_s4 = sld [smem:[#allocation25_spill]]  ;;  %s267_s30 = int_to_ptr.vmem [resolvable:$true] %s266_s30 }
  0x1d   : > { %s4243_s25 = scalar_select %p3524_p8, 1, 0 }
  0x1e   : > { %p3116_p9 = pneg %p3524_p8 }
  0x20   : > { %p3532_p10 = pnand %p3518_p7, %p3116_p9 }
  0x22   : > { %s3239_s13 = scalar_lea.hbm %s4246_s4, 6144  ;;  %p3549_p13 = pneg %p3532_p10 }
  0x23   : > { %p3240_p12 = scmp.ne.s32.totalorder %s4246_s4, %s3239_s13  ;;  %p3246_p2 = scmp.lt.u32.totalorder %s3239_s13, %s4246_s4 }
  0x25   : > { %p3242_p0 = pnand %p3549_p13, %p3240_p12 }
  0x27   : > { %p3243_p1 = pneg %p3242_p0 }
  0x29   : > { %p3248_p3 = pnand %p3246_p2, %p3243_p1 }
  0x2b   : > { %3251 = shalt.err (!%p3248_p3)
}
  0x2c   : > { %s3252_s19 = scalar_lea.vmem %s3522_s22, 6144  ;;  %p3260_p9 = scmp.lt.s32.totalorder %s3522_s22, %s3522_s22 }
  0x2d   : > { %p3253_p4 = scmp.ne.s32.totalorder %s3522_s22, %s3252_s19  ;;  %p3261_p7 = scmp.lt.s32.totalorder %s3252_s19, %s3252_s19 }
  0x2f   : > { %p3255_p5 = pnand %p3253_p4, %p3549_p13  ;;  %p3262_p12 = por %p3261_p7, %p3260_p9 }
  0x31   : > { %p3256_p6 = pneg %p3255_p5 }
  0x33   : > { %p3263_p0 = pnand %p3262_p12, %p3256_p6 }
  0x35   : > { %3266 = shalt.err (!%p3263_p0)
}
  0x36   : > { %s4237_s21 = smov 384   ;;  %s4238_s29 = smov 24  }
  0x37   : > { %3122 = dma.hbm_to_vmem [thread:$0]  (!%p3532_p10), %s4246_s4, 6144, %s3522_s22, [#allocation12], %s4237_s21, %s4237_s21, %s4238_s29  }
  0x38   : > { %s4263_s27 = smov (%p3537_p11, %s40_s27), 0  ;;  %s4249_s3 = sld [smem:[#allocation24_spill]] }
  0x39   : > { %4248 = sst [smem:[#allocation22_spill]] %s4263_s27 }
  0x3e   : > { %s3267_s15 = scalar_lea.hbm %s4249_s3, 2048 }
  0x3f   : > { %p3268_p7 = scmp.ne.s32.totalorder %s4249_s3, %s3267_s15  ;;  %p3274_p3 = scmp.lt.u32.totalorder %s3267_s15, %s4249_s3 }
  0x41   : > { %p3270_p1 = pnand %p3268_p7, %p3549_p13 }
  0x43   : > { %p3271_p2 = pneg %p3270_p1 }
  0x45   : > { %p3276_p4 = pnand %p3274_p3, %p3271_p2 }
  0x47   : > { %3279 = shalt.err (!%p3276_p4)
}
  0x48   : > { %s3280_s22 = scalar_lea.vmem %s267_s30, 2048  ;;  %p3288_p9 = scmp.lt.s32.totalorder %s267_s30, %s267_s30 }
  0x49   : > { %p3281_p11 = scmp.ne.s32.totalorder %s267_s30, %s3280_s22  ;;  %p3289_p12 = scmp.lt.s32.totalorder %s3280_s22, %s3280_s22 }
  0x4b   : > { %p3283_p5 = pnand %p3281_p11, %p3549_p13  ;;  %p3290_p0 = por %p3289_p12, %p3288_p9 }
  0x4d   : > { %p3284_p6 = pneg %p3283_p5 }
  0x4f   : > { %p3291_p8 = pnand %p3290_p0, %p3284_p6 }
  0x51   : > { %3294 = shalt.err (!%p3291_p8)
}
  0x52   : > { %s3424_s28 = smov 128   ;;  %s3425_s11 = smov 8  }
  0x53   : > { %3119 = dma.hbm_to_vmem [thread:$0]  (!%p3532_p10), %s4249_s3, 2048, %s267_s30, [#allocation9], %s3424_s28, %s3424_s28, %s3425_s11  }
  0x54   : > { %s3426_s13 = smov [#allocation13]   ;;  %s3427_s15 = smov [#allocation14]  }
  0x55   : > { %s295_s14 = sshll.u32 %s3426_s13, 4  ;;  %s311_s17 = sshll.u32 %s3427_s15, 4  ;;  %s296_s14 = int_to_ptr.vmem [resolvable:$true] %s295_s14  ;;  %s312_s17 = int_to_ptr.vmem [resolvable:$true] %s311_s17 }
  0x56   : > { %s3295_s22 = scalar_lea.hbm %s4228_s6, 6144 }
  0x57   : > { %p3296_p8 = scmp.ne.s32.totalorder %s4228_s6, %s3295_s22  ;;  %p3302_p2 = scmp.lt.u32.totalorder %s3295_s22, %s4228_s6 }
  0x59   : > { %p3298_p7 = pnand %p3296_p8, %p3549_p13 }
  0x5b   : > { %p3299_p1 = pneg %p3298_p7 }
  0x5d   : > { %p3304_p3 = pnand %p3302_p2, %p3299_p1 }
  0x5f   : > { %3307 = shalt.err (!%p3304_p3)
}
  0x60   : > { %s3308_s30 = scalar_lea.vmem %s296_s14, 6144  ;;  %p3316_p6 = scmp.lt.s32.totalorder %s296_s14, %s296_s14 }
  0x61   : > { %p3309_p4 = scmp.ne.s32.totalorder %s296_s14, %s3308_s30  ;;  %p3317_p9 = scmp.lt.s32.totalorder %s3308_s30, %s3308_s30 }
  0x63   : > { %p3311_p11 = pnand %p3309_p4, %p3549_p13  ;;  %p3318_p12 = por %p3317_p9, %p3316_p6 }
  0x65   : > { %p3312_p5 = pneg %p3311_p11 }
  0x67   : > { %p3319_p0 = pnand %p3318_p12, %p3312_p5 }
  0x69   : > { %3322 = shalt.err (!%p3319_p0)
}
  0x6a   : > { %s4250_s21 = smov 24   ;;  %s4251_s29 = smov 384  }
  0x6b   : > { %3125 = dma.hbm_to_vmem [thread:$0]  (!%p3532_p10), %s4228_s6, 6144, %s296_s14, [#allocation12], %s4251_s29, %s4251_s29, %s4250_s21  }
  0x6c   : > { %s3323_s13 = scalar_lea.hbm %s4230_s8, 2048 }
  0x6d   : > { %p3324_p8 = scmp.ne.s32.totalorder %s4230_s8, %s3323_s13  ;;  %p3330_p2 = scmp.lt.u32.totalorder %s3323_s13, %s4230_s8 }
  0x6f   : > { %p3326_p7 = pnand %p3324_p8, %p3549_p13 }
  0x71   : > { %p3327_p1 = pneg %p3326_p7 }
  0x73   : > { %p3332_p3 = pnand %p3330_p2, %p3327_p1 }
  0x75   : > { %3335 = shalt.err (!%p3332_p3)
}
  0x76   : > { %s3336_s30 = scalar_lea.vmem %s312_s17, 2048  ;;  %p3344_p6 = scmp.lt.s32.totalorder %s312_s17, %s312_s17 }
  0x77   : > { %p3337_p4 = scmp.ne.s32.totalorder %s312_s17, %s3336_s30  ;;  %p3345_p9 = scmp.lt.s32.totalorder %s3336_s30, %s3336_s30 }
  0x79   : > { %p3339_p11 = pnand %p3337_p4, %p3549_p13  ;;  %p3346_p12 = por %p3345_p9, %p3344_p6 }
  0x7b   : > { %p3340_p5 = pneg %p3339_p11 }
  0x7d   : > { %p3347_p0 = pnand %p3346_p12, %p3340_p5 }
  0x7f   : > { %3350 = shalt.err (!%p3347_p0)
}
  0x80   : > { %3128 = dma.hbm_to_vmem [thread:$0]  (!%p3532_p10), %s4230_s8, 2048, %s312_s17, [#allocation15], %s3424_s28, %s3424_s28, %s3425_s11  }
  0x81   : > { %p4252_p8 = scmp.ne.s32.totalorder %s4243_s25, 0 }
  0x82   : > { %p4253_p13 = scmp.ne.s32.totalorder (!%p4252_p8), %s4242_s24, 0 }
  0x83   : > { %330 = sbr.rel (%p4252_p8) target bundleno = 2130 (0x852), region = 52 }
  0x8a   : > { %3392 = dma.done.wait (%p4253_p13), [#allocation9], 2048  }
  0x8b   : > { %3394 = vsyncadd (%p4253_p13), [#allocation9], 4294965248 }
  0x8c   : > { %3396 = dma.done.wait (%p4253_p13), [#allocation12], 12288  }
  0x8d   : > { %3398 = vsyncadd (%p4253_p13), [#allocation12], 4294955008 }
  0x8e   : > { %3400 = dma.done.wait (%p4253_p13), [#allocation15], 2048  }
  0x8f   : > { %3402 = vsyncadd (%p4253_p13), [#allocation15], 4294965248  ;;  %p2373_p10 = scmp.ne.s32.totalorder %s3409_s0, 0 }
  0x90   : > { %v395_v0 = vld [vmem:[#allocation11 + $0x8] sm:$0xff] (!%p2373_p10)  ;;  %v398_v1 = vld [vmem:[#allocation11 + $0x20] sm:$0xff] (!%p2373_p10)  ;;  %v397_v4 = vld [vmem:[#allocation11 + $0x18] sm:$0xff] (!%p2373_p10)  ;;  %v3428_v7 = vmov (!%p2373_p10), 0.0  }
  0x91   : > { %377 = sbr.rel (%p2373_p10) target bundleno = 455 (0x1c7), region = 72  ;;  %v394_v2 = vld [vmem:[#allocation11] sm:$0xff] (!%p2373_p10)  ;;  %v2784_v3 = vpack.c.bf16 (!%p2373_p10), %v398_v1, %v395_v0  ;;  %v401_v5 = vld [vmem:[#allocation11 + $0x38] sm:$0xff] (!%p2373_p10)  ;;  %v404_v6 = vld [vmem:[#allocation11 + $0x50] sm:$0xff] (!%p2373_p10)  ;;  %523 = vmatprep.mubr.f32.mxu0 (!%p2373_p10), %v3428_v7  ;;  %813 = vst [vmem:[#allocation3] sm:$0xff] (!%p2373_p10), %v3428_v7 }
  0x92   : > { %v2786_v8 = vpack.c.bf16 (!%p2373_p10), %v397_v4, %v394_v2  ;;  %v2788_v9 = vpack.c.bf16 (!%p2373_p10), %v404_v6, %v401_v5  ;;  %v400_v10 = vld [vmem:[#allocation11 + $0x30] sm:$0xff] (!%p2373_p10)  ;;  %v403_v11 = vld [vmem:[#allocation11 + $0x48] sm:$0xff] (!%p2373_p10)  ;;  %v410_v13 = vld [vmem:[#allocation11 + $0x80] sm:$0xff] (!%p2373_p10) }
  0x93   : > { %v407_v12 = vld [vmem:[#allocation11 + $0x68] sm:$0xff] (!%p2373_p10)  ;;  %2785 = vmatprep.subr.bf16.mxu0 (!%p2373_p10), %v2784_v3  ;;  %v2790_v14 = vpack.c.bf16 (!%p2373_p10), %v403_v11, %v400_v10  ;;  %v406_v16 = vld [vmem:[#allocation11 + $0x60] sm:$0xff] (!%p2373_p10)  ;;  %v409_v17 = vld [vmem:[#allocation11 + $0x78] sm:$0xff] (!%p2373_p10) }
  0x94   : > { %2787 = vmatpush1.bf16.msra.mxu0 (!%p2373_p10), %v2786_v8  ;;  %v2792_v15 = vpack.c.bf16 (!%p2373_p10), %v410_v13, %v407_v12  ;;  %v413_v18 = vld [vmem:[#allocation11 + $0x98] sm:$0xff] (!%p2373_p10)  ;;  %v416_v19 = vld [vmem:[#allocation11 + $0xb0] sm:$0xff] (!%p2373_p10)  ;;  %v2794_v20 = vpack.c.bf16 (!%p2373_p10), %v409_v17, %v406_v16  ;;  %v415_v23 = vld [vmem:[#allocation11 + $0xa8] sm:$0xff] (!%p2373_p10) }
  0x95   : > { %2789 = vmatprep.subr.bf16.mxu0 (!%p2373_p10), %v2788_v9  ;;  %v2796_v21 = vpack.c.bf16 (!%p2373_p10), %v416_v19, %v413_v18  ;;  %v412_v22 = vld [vmem:[#allocation11 + $0x90] sm:$0xff] (!%p2373_p10)  ;;  %v419_v24 = vld [vmem:[#allocation11 + $0xc8] sm:$0xff] (!%p2373_p10)  ;;  %v422_v25 = vld [vmem:[#allocation11 + $0xe0] sm:$0xff] (!%p2373_p10) }
  0x96   : > { %v396_v26 = vld [vmem:[#allocation11 + $0x10] sm:$0xff] (!%p2373_p10)  ;;  %v399_v27 = vld [vmem:[#allocation11 + $0x28] sm:$0xff] (!%p2373_p10)  ;;  %v3657_v28 = vld [vmem:[#allocation8] sm:$0xff] (!%p2373_p10)  ;;  %v2798_v30 = vpack.c.bf16 (!%p2373_p10), %v415_v23, %v412_v22  ;;  %v2800_v34 = vpack.c.bf16 (!%p2373_p10), %v422_v25, %v419_v24 }
  0x97   : > { %v402_v29 = vld [vmem:[#allocation11 + $0x40] sm:$0xff] (!%p2373_p10)  ;;  %v2816_v32 = vpack.c.bf16 (!%p2373_p10), %v399_v27, %v396_v26  ;;  %v405_v33 = vld [vmem:[#allocation11 + $0x58] sm:$0xff] (!%p2373_p10)  ;;  %2585 = vmatprep.mubr.f32.mxu1 (!%p2373_p10), %v3657_v28  ;;  %v408_v37 = vld [vmem:[#allocation11 + $0x70] sm:$0xff] (!%p2373_p10)  ;;  %v444_v26 = vlaneseq (!%p2373_p10) }
  0x98   : > { %2791 = vmatpush1.bf16.msra.mxu0 %v2790_v14  ;;  %v418_v31 = vld [vmem:[#allocation11 + $0xc0] sm:$0xff]  ;;  %v421_v35 = vld [vmem:[#allocation11 + $0xd8] sm:$0xff]  ;;  %v2820_v36 = vpack.c.bf16 %v405_v33, %v402_v29  ;;  %v411_v38 = vld [vmem:[#allocation11 + $0x88] sm:$0xff] }
  0x99   : > { %2793 = vmatprep.subr.bf16.mxu0 %v2792_v15  ;;  %v425_v39 = vld [vmem:[#allocation11 + $0xf8] sm:$0xff]  ;;  %v428_v40 = vld [vmem:[#allocation11 + $0x110] sm:$0xff]  ;;  %2817 = vmatprep.subr.bf16.mxu1 %v2816_v32  ;;  %v2802_v41 = vpack.c.bf16 %v421_v35, %v418_v31  ;;  %v2824_v43 = vpack.c.bf16 %v411_v38, %v408_v37  ;;  %v427_v45 = vld [vmem:[#allocation11 + $0x108] sm:$0xff]  ;;  %v445_v27 = vshrl.u32 %v444_v26, 7 }
  0x9a   : > { %2819 = vmatpush3.bf16.msra.mxu1 %v2816_v32  ;;  %v424_v42 = vld [vmem:[#allocation11 + $0xf0] sm:$0xff]  ;;  %v2804_v44 = vpack.c.bf16 %v428_v40, %v425_v39  ;;  %v414_v46 = vld [vmem:[#allocation11 + $0xa0] sm:$0xff]  ;;  %v417_v47 = vld [vmem:[#allocation11 + $0xb8] sm:$0xff] }
  0x9b   : > { %2821 = vmatprep.subr.bf16.mxu1 %v2820_v36  ;;  %v431_v48 = vld [vmem:[#allocation11 + $0x128] sm:$0xff]  ;;  %v434_v49 = vld [vmem:[#allocation11 + $0x140] sm:$0xff]  ;;  %v2806_v50 = vpack.c.bf16 %v427_v45, %v424_v42  ;;  %v2828_v52 = vpack.c.bf16 %v417_v47, %v414_v46  ;;  %v433_v54 = vld [vmem:[#allocation11 + $0x138] sm:$0xff]  ;;  %v454_v37 = vsub.s32 2, %v445_v27 }
  0x9c   : > { %2795 = vmatpush1.bf16.msra.mxu0 %v2794_v20  ;;  %v430_v51 = vld [vmem:[#allocation11 + $0x120] sm:$0xff]  ;;  %v2808_v53 = vpack.c.bf16 %v434_v49, %v431_v48  ;;  %v420_v55 = vld [vmem:[#allocation11 + $0xd0] sm:$0xff]  ;;  %v423_v56 = vld [vmem:[#allocation11 + $0xe8] sm:$0xff] }
  0x9d   : > { %2797 = vmatprep.subr.bf16.mxu0 %v2796_v21  ;;  %v437_v57 = vld [vmem:[#allocation11 + $0x158] sm:$0xff]  ;;  %v440_v58 = vld [vmem:[#allocation11 + $0x170] sm:$0xff]  ;;  %v2810_v59 = vpack.c.bf16 %v433_v54, %v430_v51  ;;  %v2832_v61 = vpack.c.bf16 %v423_v56, %v420_v55  ;;  %v439_v63 = vld [vmem:[#allocation11 + $0x168] sm:$0xff] }
  0x9e   : > { %2823 = vmatpush3.bf16.msra.mxu1 %v2820_v36  ;;  %v436_v60 = vld [vmem:[#allocation11 + $0x150] sm:$0xff]  ;;  %v2812_v62 = vpack.c.bf16 %v440_v58, %v437_v57  ;;  %v426_v0 = vld [vmem:[#allocation11 + $0x100] sm:$0xff]  ;;  %v429_v1 = vld [vmem:[#allocation11 + $0x118] sm:$0xff] }
  0x9f   : > { %2825 = vmatprep.subr.bf16.mxu1 %v2824_v43  ;;  %v2814_v2 = vpack.c.bf16 %v439_v63, %v436_v60  ;;  %v2836_v3 = vpack.c.bf16 %v429_v1, %v426_v0  ;;  %v432_v4 = vld [vmem:[#allocation11 + $0x130] sm:$0xff]  ;;  %v435_v5 = vld [vmem:[#allocation11 + $0x148] sm:$0xff]  ;;  %v438_v8 = vld [vmem:[#allocation11 + $0x160] sm:$0xff] }
  0xa0   : > { %2799 = vmatpush1.bf16.msra.mxu0 %v2798_v30  ;;  %v2840_v6 = vpack.c.bf16 %v435_v5, %v432_v4  ;;  %v441_v9 = vld [vmem:[#allocation11 + $0x178] sm:$0xff]  ;;  %v379_v10 = vld [vmem:[#allocation8 + $0x8] sm:$0xff]  ;;  %v380_v12 = vld [vmem:[#allocation8 + $0x10] sm:$0xff]  ;;  %v450_v30 = vsub.s32 1, %v445_v27 }
  0xa1   : > { %2801 = vmatprep.subr.bf16.mxu0 %v2800_v34  ;;  %v2844_v11 = vpack.c.bf16 %v441_v9, %v438_v8  ;;  %v381_v13 = vld [vmem:[#allocation8 + $0x18] sm:$0xff]  ;;  %v382_v14 = vld [vmem:[#allocation8 + $0x20] sm:$0xff]  ;;  %v383_v15 = vld [vmem:[#allocation8 + $0x28] sm:$0xff] }
  0xa2   : > { %2827 = vmatpush3.bf16.msra.mxu1 %v2824_v43  ;;  %v384_v16 = vld [vmem:[#allocation8 + $0x30] sm:$0xff]  ;;  %v385_v17 = vld [vmem:[#allocation8 + $0x38] sm:$0xff]  ;;  %v386_v18 = vld [vmem:[#allocation8 + $0x40] sm:$0xff] }
  0xa3   : > { %2829 = vmatprep.subr.bf16.mxu1 %v2828_v52  ;;  %v387_v19 = vld [vmem:[#allocation8 + $0x48] sm:$0xff]  ;;  %v388_v20 = vld [vmem:[#allocation8 + $0x50] sm:$0xff]  ;;  %v389_v21 = vld [vmem:[#allocation8 + $0x58] sm:$0xff] }
  0xa4   : > { %2803 = vmatpush1.bf16.msra.mxu0 %v2802_v41  ;;  %v390_v22 = vld [vmem:[#allocation8 + $0x60] sm:$0xff]  ;;  %v391_v23 = vld [vmem:[#allocation8 + $0x68] sm:$0xff]  ;;  %v392_v24 = vld [vmem:[#allocation8 + $0x70] sm:$0xff] }
  0xa5   : > { %2805 = vmatprep.subr.bf16.mxu0 %v2804_v44  ;;  %v393_v25 = vld [vmem:[#allocation8 + $0x78] sm:$0xff] }
  0xa6   : > { %2831 = vmatpush3.bf16.msra.mxu1 %v2828_v52  ;;  %v442_v29 = vld [vmem:[%s4227_s5] sm:$0x7] }
  0xa7   : > { %2833 = vmatprep.subr.bf16.mxu1 %v2832_v61  ;;  %v3681_v32 = vrot.slane %v442_v29, %v450_v30  ;;  %v3687_v42 = vrot.slane %v442_v29, %v454_v37 }
  0xa8   : > { %2807 = vmatpush1.bf16.msra.mxu0 %v2806_v50 }
  0xa9   : > { %2809 = vmatprep.subr.bf16.mxu0 %v2808_v53 }
  0xaa   : > { %2835 = vmatpush3.bf16.msra.mxu1 %v2832_v61 }
  0xab   : > { %2837 = vmatprep.subr.bf16.mxu1 %v2836_v3 }
  0xac   : > { %2811 = vmatpush1.bf16.msra.mxu0 %v2810_v59 }
  0xad   : > { %2813 = vmatprep.subr.bf16.mxu0 %v2812_v62 }
  0xae   : > { %2839 = vmatpush3.bf16.msra.mxu1 %v2836_v3 }
  0xaf   : > { %2841 = vmatprep.subr.bf16.mxu1 %v2840_v6 }
  0xb0   : > { %2815 = vmatpush1.bf16.msra.mxu0 %v2814_v2 }
  0xb2   : > { %2843 = vmatpush3.bf16.msra.mxu1 %v2840_v6 }
  0xb3   : > { %524 = vmatmul.mubr.f32.vlgmr.msra.gmra.mrb[0].mxu0 %v3657_v28  ;;  %2845 = vmatprep.subr.bf16.mxu1 %v2844_v11  ;;  %v446_v28 = vsub.s32 0, %v445_v27 }
  0xb4   : > { %529 = vmatprep.mubr.f32.mxu0 %v3428_v7 }
  0xb5   : > { %v3679_v31 = vrot.slane %v442_v29, %v446_v28 }
  0xb6   : > { %2847 = vmatpush3.bf16.msra.mxu1 %v2844_v11 }
  0xb7   : > { %530 = vmatmul.mubr.f32.gmra.mrb[2].mxu0 %v379_v10 }
  0xb8   : > { %535 = vmatprep.mubr.f32.mxu0 %v3428_v7 }
  0xb9   : > { %2586 = vmatmul.mubr.f32.vlgmr.msra.gmra.mrb[0].mxu1 %v379_v10 }
  0xba   : > { %2588 = vmatprep.mubr.f32.mxu1 %v380_v12 }
  0xbb   : > { %536 = vmatmul.mubr.f32.gmra.mrb[4].mxu0 %v380_v12 }
  0xbc   : > { %541 = vmatprep.mubr.f32.mxu0 %v3428_v7 }
  0xbd   : > { %2589 = vmatmul.mubr.f32.gmra.mrb[2].mxu1 %v381_v13 }
  0xbe   : > { %2591 = vmatprep.mubr.f32.mxu1 %v382_v14 }
  0xbf   : > { %542 = vmatmul.mubr.f32.gmra.mrb[6].mxu0 %v381_v13 }
  0xc0   : > { %547 = vmatprep.mubr.f32.mxu0 %v3428_v7 }
  0xc1   : > { %2592 = vmatmul.mubr.f32.gmra.mrb[4].mxu1 %v383_v15 }
  0xc2   : > { %2594 = vmatprep.mubr.f32.mxu1 %v384_v16 }
  0xc3   : > { %548 = vmatmul.mubr.f32.gmra.mrb[8].mxu0 %v382_v14 }
  0xc4   : > { %553 = vmatprep.mubr.f32.mxu0 %v3428_v7 }
  0xc5   : > { %2595 = vmatmul.mubr.f32.gmra.mrb[6].mxu1 %v385_v17 }
  0xc6   : > { %2597 = vmatprep.mubr.f32.mxu1 %v386_v18 }
  0xc7   : > { %554 = vmatmul.mubr.f32.gmra.mrb[10].mxu0 %v383_v15 }
  0xc8   : > { %559 = vmatprep.mubr.f32.mxu0 %v3428_v7 }
  0xc9   : > { %2598 = vmatmul.mubr.f32.gmra.mrb[8].mxu1 %v387_v19 }
  0xca   : > { %2600 = vmatprep.mubr.f32.mxu1 %v388_v20 }
  0xcb   : > { %560 = vmatmul.mubr.f32.gmra.mrb[12].mxu0 %v384_v16 }
  0xcc   : > { %565 = vmatprep.mubr.f32.mxu0 %v3428_v7 }
  0xcd   : > { %2601 = vmatmul.mubr.f32.gmra.mrb[10].mxu1 %v389_v21 }
  0xce   : > { %2603 = vmatprep.mubr.f32.mxu1 %v390_v22 }
  0xcf   : > { %566 = vmatmul.mubr.f32.gmra.mrb[14].mxu0 %v385_v17 }
  0xd0   : > { %571 = vmatprep.mubr.f32.mxu0 %v3428_v7 }
  0xd1   : > { %2604 = vmatmul.mubr.f32.gmra.mrb[12].mxu1 %v391_v23 }
  0xd2   : > { %2606 = vmatprep.mubr.f32.mxu1 %v392_v24 }
  0xd3   : > { %572 = vmatmul.mubr.f32.gmra.mrb[16].mxu0 %v386_v18 }
  0xd4   : > { %577 = vmatprep.mubr.f32.mxu0 %v3428_v7 }
  0xd5   : > { %2607 = vmatmul.mubr.f32.gmra.mrb[14].mxu1 %v393_v25 }
  0xd7   : > { %578 = vmatmul.mubr.f32.gmra.mrb[18].mxu0 %v387_v19 }
  0xd8   : > { %583 = vmatprep.mubr.f32.mxu0 %v3428_v7 }
  0xdb   : > { %584 = vmatmul.mubr.f32.gmra.mrb[20].mxu0 %v388_v20 }
  0xdc   : > { %589 = vmatprep.mubr.f32.mxu0 %v3428_v7 }
  0xdf   : > { %590 = vmatmul.mubr.f32.gmra.mrb[22].mxu0 %v389_v21 }
  0xe0   : > { %595 = vmatprep.mubr.f32.mxu0 %v3428_v7 }
  0xe3   : > { %596 = vmatmul.mubr.f32.gmra.mrb[24].mxu0 %v390_v22 }
  0xe4   : > { %601 = vmatprep.mubr.f32.mxu0 %v3428_v7 }
  0xe7   : > { %602 = vmatmul.mubr.f32.gmra.mrb[26].mxu0 %v391_v23 }
  0xe8   : > { %607 = vmatprep.mubr.f32.mxu0 %v3428_v7 }
  0xeb   : > { %608 = vmatmul.mubr.f32.gmra.mrb[28].mxu0 %v392_v24 }
  0xec   : > { %613 = vmatprep.mubr.f32.mxu0 %v3428_v7 }
  0xef   : > { %614 = vmatmul.mubr.f32.gmra.mrb[30].mxu0 %v393_v25 }
 0x186   : > { %v525_v33 = vpop.f32.mrb[0].mxu0 }
 0x187   : > { %v526_v34 = vadd.f32 %v525_v33, %v3679_v31  ;;  %v527_v35 = vpop.f32.mrb[1].mxu0 }
 0x188   : > { %v528_v36 = vadd.f32 %v527_v35, %v3681_v32 }
 0x189   : > { %765 = vst [vmem:[#allocation2] sm:$0xff] %v526_v34 }
 0x18a   : > { %766 = vst [vmem:[#allocation2 + $0x8] sm:$0xff] %v528_v36  ;;  %v531_v7 = vpop.f32.mrb[2].mxu0 }
 0x18b   : > { %v532_v38 = vadd.f32 %v531_v7, %v3679_v31  ;;  %v533_v39 = vpop.f32.mrb[3].mxu0 }
 0x18c   : > { %v534_v40 = vadd.f32 %v533_v39, %v3681_v32  ;;  %v2587_v46 = vpop.f32.mrb[0].mxu1 }
 0x18d   : > { %768 = vst [vmem:[#allocation2 + $0x18] sm:$0xff] %v532_v38  ;;  %v692_v48 = vadd.f32 %v2587_v46, %v3687_v42  ;;  %v686_v49 = vpop.f32.mrb[1].mxu1 }
 0x18e   : > { %769 = vst [vmem:[#allocation2 + $0x20] sm:$0xff] %v534_v40  ;;  %v537_v41 = vpop.f32.mrb[4].mxu0  ;;  %v687_v52 = vadd.f32 %v686_v49, %v3687_v42 }
 0x18f   : > { %v538_v43 = vadd.f32 %v537_v41, %v3679_v31  ;;  %v539_v44 = vpop.f32.mrb[5].mxu0  ;;  %770 = vst [vmem:[#allocation2 + $0x28] sm:$0xff] %v692_v48 }
 0x190   : > { %v540_v45 = vadd.f32 %v539_v44, %v3681_v32  ;;  %767 = vst [vmem:[#allocation2 + $0x10] sm:$0xff] %v687_v52  ;;  %v2590_v54 = vpop.f32.mrb[2].mxu1 }
 0x191   : > { %771 = vst [vmem:[#allocation2 + $0x30] sm:$0xff] %v538_v43  ;;  %v702_v56 = vadd.f32 %v2590_v54, %v3687_v42  ;;  %v696_v57 = vpop.f32.mrb[3].mxu1 }
 0x192   : > { %772 = vst [vmem:[#allocation2 + $0x38] sm:$0xff] %v540_v45  ;;  %v543_v47 = vpop.f32.mrb[6].mxu0  ;;  %v697_v60 = vadd.f32 %v696_v57, %v3687_v42 }
 0x193   : > { %v544_v50 = vadd.f32 %v543_v47, %v3679_v31  ;;  %v545_v51 = vpop.f32.mrb[7].mxu0  ;;  %776 = vst [vmem:[#allocation2 + $0x58] sm:$0xff] %v702_v56 }
 0x194   : > { %v546_v53 = vadd.f32 %v545_v51, %v3681_v32  ;;  %773 = vst [vmem:[#allocation2 + $0x40] sm:$0xff] %v697_v60  ;;  %v2593_v62 = vpop.f32.mrb[4].mxu1 }
 0x195   : > { %774 = vst [vmem:[#allocation2 + $0x48] sm:$0xff] %v544_v50  ;;  %v712_v0 = vadd.f32 %v2593_v62, %v3687_v42  ;;  %v706_v1 = vpop.f32.mrb[5].mxu1 }
 0x196   : > { %775 = vst [vmem:[#allocation2 + $0x50] sm:$0xff] %v546_v53  ;;  %v549_v55 = vpop.f32.mrb[8].mxu0  ;;  %v707_v4 = vadd.f32 %v706_v1, %v3687_v42 }
 0x197   : > { %v550_v58 = vadd.f32 %v549_v55, %v3679_v31  ;;  %v551_v59 = vpop.f32.mrb[9].mxu0  ;;  %782 = vst [vmem:[#allocation2 + $0x88] sm:$0xff] %v712_v0 }
 0x198   : > { %v552_v61 = vadd.f32 %v551_v59, %v3681_v32  ;;  %779 = vst [vmem:[#allocation2 + $0x70] sm:$0xff] %v707_v4  ;;  %v2596_v6 = vpop.f32.mrb[6].mxu1 }
 0x199   : > { %777 = vst [vmem:[#allocation2 + $0x60] sm:$0xff] %v550_v58  ;;  %v722_v9 = vadd.f32 %v2596_v6, %v3687_v42  ;;  %v716_v10 = vpop.f32.mrb[7].mxu1 }
 0x19a   : > { %778 = vst [vmem:[#allocation2 + $0x68] sm:$0xff] %v552_v61  ;;  %v555_v63 = vpop.f32.mrb[10].mxu0  ;;  %v717_v13 = vadd.f32 %v716_v10, %v3687_v42 }
 0x19b   : > { %v556_v2 = vadd.f32 %v555_v63, %v3679_v31  ;;  %v557_v3 = vpop.f32.mrb[11].mxu0  ;;  %788 = vst [vmem:[#allocation2 + $0xb8] sm:$0xff] %v722_v9 }
 0x19c   : > { %v558_v5 = vadd.f32 %v557_v3, %v3681_v32  ;;  %785 = vst [vmem:[#allocation2 + $0xa0] sm:$0xff] %v717_v13  ;;  %v2599_v15 = vpop.f32.mrb[8].mxu1 }
 0x19d   : > { %780 = vst [vmem:[#allocation2 + $0x78] sm:$0xff] %v556_v2  ;;  %v732_v17 = vadd.f32 %v2599_v15, %v3687_v42  ;;  %v726_v18 = vpop.f32.mrb[9].mxu1 }
 0x19e   : > { %781 = vst [vmem:[#allocation2 + $0x80] sm:$0xff] %v558_v5  ;;  %v561_v8 = vpop.f32.mrb[12].mxu0  ;;  %v727_v21 = vadd.f32 %v726_v18, %v3687_v42 }
 0x19f   : > { %v562_v11 = vadd.f32 %v561_v8, %v3679_v31  ;;  %v563_v12 = vpop.f32.mrb[13].mxu0  ;;  %794 = vst [vmem:[#allocation2 + $0xe8] sm:$0xff] %v732_v17 }
 0x1a0   : > { %v564_v14 = vadd.f32 %v563_v12, %v3681_v32  ;;  %791 = vst [vmem:[#allocation2 + $0xd0] sm:$0xff] %v727_v21  ;;  %v2602_v23 = vpop.f32.mrb[10].mxu1 }
 0x1a1   : > { %783 = vst [vmem:[#allocation2 + $0x90] sm:$0xff] %v562_v11  ;;  %v742_v25 = vadd.f32 %v2602_v23, %v3687_v42  ;;  %v736_v26 = vpop.f32.mrb[11].mxu1 }
 0x1a2   : > { %784 = vst [vmem:[#allocation2 + $0x98] sm:$0xff] %v564_v14  ;;  %v567_v16 = vpop.f32.mrb[14].mxu0  ;;  %v737_v29 = vadd.f32 %v736_v26, %v3687_v42 }
 0x1a3   : > { %v568_v19 = vadd.f32 %v567_v16, %v3679_v31  ;;  %v569_v20 = vpop.f32.mrb[15].mxu0  ;;  %800 = vst [vmem:[#allocation2 + $0x118] sm:$0xff] %v742_v25 }
 0x1a4   : > { %v570_v22 = vadd.f32 %v569_v20, %v3681_v32  ;;  %797 = vst [vmem:[#allocation2 + $0x100] sm:$0xff] %v737_v29  ;;  %v2605_v33 = vpop.f32.mrb[12].mxu1 }
 0x1a5   : > { %786 = vst [vmem:[#allocation2 + $0xa8] sm:$0xff] %v568_v19  ;;  %v752_v35 = vadd.f32 %v2605_v33, %v3687_v42  ;;  %v746_v36 = vpop.f32.mrb[13].mxu1 }
 0x1a6   : > { %787 = vst [vmem:[#allocation2 + $0xb0] sm:$0xff] %v570_v22  ;;  %v573_v24 = vpop.f32.mrb[16].mxu0  ;;  %v747_v38 = vadd.f32 %v746_v36, %v3687_v42 }
 0x1a7   : > { %v574_v27 = vadd.f32 %v573_v24, %v3679_v31  ;;  %v575_v28 = vpop.f32.mrb[17].mxu0  ;;  %806 = vst [vmem:[#allocation2 + $0x148] sm:$0xff] %v752_v35 }
 0x1a8   : > { %v576_v30 = vadd.f32 %v575_v28, %v3681_v32  ;;  %803 = vst [vmem:[#allocation2 + $0x130] sm:$0xff] %v747_v38  ;;  %v2608_v40 = vpop.f32.mrb[14].mxu1 }
 0x1a9   : > { %789 = vst [vmem:[#allocation2 + $0xc0] sm:$0xff] %v574_v27  ;;  %v762_v43 = vadd.f32 %v2608_v40, %v3687_v42  ;;  %v756_v44 = vpop.f32.mrb[15].mxu1 }
 0x1aa   : > { %790 = vst [vmem:[#allocation2 + $0xc8] sm:$0xff] %v576_v30  ;;  %v579_v34 = vpop.f32.mrb[18].mxu0  ;;  %v757_v47 = vadd.f32 %v756_v44, %v3687_v42 }
 0x1ab   : > { %v580_v7 = vadd.f32 %v579_v34, %v3679_v31  ;;  %v581_v37 = vpop.f32.mrb[19].mxu0  ;;  %812 = vst [vmem:[#allocation2 + $0x178] sm:$0xff] %v762_v43 }
 0x1ac   : > { %v582_v39 = vadd.f32 %v581_v37, %v3681_v32  ;;  %809 = vst [vmem:[#allocation2 + $0x160] sm:$0xff] %v757_v47 }
 0x1ad   : > { %792 = vst [vmem:[#allocation2 + $0xd8] sm:$0xff] %v580_v7 }
 0x1ae   : > { %793 = vst [vmem:[#allocation2 + $0xe0] sm:$0xff] %v582_v39  ;;  %v585_v41 = vpop.f32.mrb[20].mxu0 }
 0x1af   : > { %v586_v45 = vadd.f32 %v585_v41, %v3679_v31  ;;  %v587_v46 = vpop.f32.mrb[21].mxu0 }
 0x1b0   : > { %v588_v48 = vadd.f32 %v587_v46, %v3681_v32 }
 0x1b1   : > { %795 = vst [vmem:[#allocation2 + $0xf0] sm:$0xff] %v586_v45 }
 0x1b2   : > { %796 = vst [vmem:[#allocation2 + $0xf8] sm:$0xff] %v588_v48  ;;  %v591_v49 = vpop.f32.mrb[22].mxu0 }
 0x1b3   : > { %v592_v50 = vadd.f32 %v591_v49, %v3679_v31  ;;  %v593_v51 = vpop.f32.mrb[23].mxu0 }
 0x1b4   : > { %v594_v52 = vadd.f32 %v593_v51, %v3681_v32 }
 0x1b5   : > { %798 = vst [vmem:[#allocation2 + $0x108] sm:$0xff] %v592_v50 }
 0x1b6   : > { %799 = vst [vmem:[#allocation2 + $0x110] sm:$0xff] %v594_v52  ;;  %v597_v53 = vpop.f32.mrb[24].mxu0 }
 0x1b7   : > { %v598_v54 = vadd.f32 %v597_v53, %v3679_v31  ;;  %v599_v55 = vpop.f32.mrb[25].mxu0 }
 0x1b8   : > { %v600_v42 = vadd.f32 %v599_v55, %v3681_v32 }
 0x1b9   : > { %801 = vst [vmem:[#allocation2 + $0x120] sm:$0xff] %v598_v54 }
 0x1ba   : > { %802 = vst [vmem:[#allocation2 + $0x128] sm:$0xff] %v600_v42  ;;  %v603_v56 = vpop.f32.mrb[26].mxu0 }
 0x1bb   : > { %v604_v57 = vadd.f32 %v603_v56, %v3679_v31  ;;  %v605_v58 = vpop.f32.mrb[27].mxu0 }
 0x1bc   : > { %v606_v59 = vadd.f32 %v605_v58, %v3681_v32 }
 0x1bd   : > { %804 = vst [vmem:[#allocation2 + $0x138] sm:$0xff] %v604_v57 }
 0x1be   : > { %805 = vst [vmem:[#allocation2 + $0x140] sm:$0xff] %v606_v59  ;;  %v609_v60 = vpop.f32.mrb[28].mxu0 }
 0x1bf   : > { %v610_v61 = vadd.f32 %v609_v60, %v3679_v31  ;;  %v611_v62 = vpop.f32.mrb[29].mxu0 }
 0x1c0   : > { %v612_v63 = vadd.f32 %v611_v62, %v3681_v32 }
 0x1c1   : > { %807 = vst [vmem:[#allocation2 + $0x150] sm:$0xff] %v610_v61 }
 0x1c2   : > { %808 = vst [vmem:[#allocation2 + $0x158] sm:$0xff] %v612_v63  ;;  %v615_v0 = vpop.f32.mrb[30].mxu0 }
 0x1c3   : > { %v616_v1 = vadd.f32 %v615_v0, %v3679_v31  ;;  %v617_v2 = vpop.f32.mrb[31].mxu0 }
 0x1c4   : > { %v618_v3 = vadd.f32 %v617_v2, %v3681_v32 }
 0x1c5   : > { %810 = vst [vmem:[#allocation2 + $0x168] sm:$0xff] %v616_v1 }
 0x1c6   : > { %811 = vst [vmem:[#allocation2 + $0x170] sm:$0xff] %v618_v3 }
 0x1c7 PF: > { %s3734_s26 = sshll.u32 %s3409_s0, 2  ;;  %s815_s16 = sld [smem:[#allocation7]] }
 0x1cd   : > { %p2375_p7 = scmp.ge.s32.totalorder %s3734_s26, %s815_s16 }
 0x1ce   : > { %v1281_v4 = vld [vmem:[#allocation13 + $0x8] sm:$0xff] (!%p2375_p7)  ;;  %v1284_v5 = vld [vmem:[#allocation13 + $0x20] sm:$0xff] (!%p2375_p7)  ;;  %v1283_v31 = vld [vmem:[#allocation13 + $0x18] sm:$0xff] (!%p2375_p7)  ;;  %v3429_v10 = vmov (!%p2375_p7), 0.0|0.0   ;;  %v3430_v11 = vmov (!%p2375_p7), 0.0   ;;  %s937_s28 = sadd.s32 (!%p2375_p7), 1, %s3734_s26  ;;  %v833_v36 = vlaneseq (!%p2375_p7)  ;;  %v1505_v48 = vstv (!%p2375_p7), %s3734_s26 }
 0x1cf   : > { %819 = sbr.rel (%p2375_p7) target bundleno = 1538 (0x602), region = 76  ;;  %v1280_v6 = vld [vmem:[#allocation13] sm:$0xff] (!%p2375_p7)  ;;  %v3737_v8 = vpack.c.bf16 (!%p2375_p7), %v1284_v5, %v1281_v4  ;;  %v1287_v9 = vld [vmem:[#allocation13 + $0x38] sm:$0xff] (!%p2375_p7)  ;;  %v1290_v32 = vld [vmem:[#allocation13 + $0x50] sm:$0xff] (!%p2375_p7)  ;;  %2880 = vmatprep.subr.bf16.mxu1 (!%p2375_p7), %v3429_v10  ;;  %1400 = vmatprep.mubr.f32.mxu0 (!%p2375_p7), %v3430_v11  ;;  %s3743_s11 = sshll.u32 (!%p2375_p7), %s3409_s0, 5  ;;  %vm3431_vm0 = vmmov (!%p2375_p7), 0   ;;  %v1682_v49 = vstv (!%p2375_p7), %s937_s28 }
 0x1d0   : > { %v3745_v12 = vpack.c.bf16 (!%p2375_p7), %v1283_v31, %v1280_v6  ;;  %v3747_v13 = vpack.c.bf16 (!%p2375_p7), %v1290_v32, %v1287_v9  ;;  %v1286_v14 = vld [vmem:[#allocation13 + $0x30] sm:$0xff] (!%p2375_p7)  ;;  %v1289_v15 = vld [vmem:[#allocation13 + $0x48] sm:$0xff] (!%p2375_p7)  ;;  %2641 = vmatprep.mubr.msk.f32.mxu1 (!%p2375_p7), %vm3431_vm0, %v3430_v11  ;;  %v3432_v17 = vmov (!%p2375_p7), 0   ;;  %s3753_s17 = sld [smem:[#allocation6 + %s3743_s11]] (!%p2375_p7)  ;;  %s839_s29 = sadd.s32 (!%p2375_p7), 1, %s3743_s11  ;;  %v1296_v18 = vld [vmem:[#allocation13 + $0x80] sm:$0xff] (!%p2375_p7) }
 0x1d1   : > { %v1293_v16 = vld [vmem:[#allocation13 + $0x68] sm:$0xff] (!%p2375_p7)  ;;  %3181 = vset.pattern.permute.xlu0 (!%p2375_p7), %v3432_v17  ;;  %2849 = vmatprep.subr.bf16.mxu0 (!%p2375_p7), %v3737_v8  ;;  %s3757_s4 = sld [smem:[#allocation6 + %s839_s29]] (!%p2375_p7)  ;;  %s853_s27 = sadd.s32 (!%p2375_p7), 2, %s3743_s11  ;;  %v3762_v19 = vpack.c.bf16 (!%p2375_p7), %v1289_v15, %v1286_v14  ;;  %v1292_v21 = vld [vmem:[#allocation13 + $0x60] sm:$0xff] (!%p2375_p7)  ;;  %v1295_v22 = vld [vmem:[#allocation13 + $0x78] sm:$0xff] (!%p2375_p7)  ;;  %vm3810_vm1 = vcmp.lt.s32.totalorder (!%p2375_p7), %v833_v36, 384 }
 0x1d2   : > { %3182 = vset.pattern.permute.xlu1 (!%p2375_p7), %v3432_v17  ;;  %2851 = vmatpush1.bf16.msra.mxu0 (!%p2375_p7), %v3745_v12  ;;  %s3764_s23 = sld [smem:[#allocation6 + %s853_s27]] (!%p2375_p7)  ;;  %s867_s12 = sadd.s32 (!%p2375_p7), 3, %s3743_s11  ;;  %v3768_v20 = vpack.c.bf16 (!%p2375_p7), %v1296_v18, %v1293_v16  ;;  %v1299_v23 = vld [vmem:[#allocation13 + $0x98] sm:$0xff] (!%p2375_p7)  ;;  %v1302_v24 = vld [vmem:[#allocation13 + $0xb0] sm:$0xff] (!%p2375_p7)  ;;  %v3780_v25 = vpack.c.bf16 (!%p2375_p7), %v1295_v22, %v1292_v21  ;;  %v1301_v28 = vld [vmem:[#allocation13 + $0xa8] sm:$0xff] (!%p2375_p7) }
 0x1d3   : > { %2853 = vmatprep.subr.bf16.mxu0 (!%p2375_p7), %v3747_v13  ;;  %s3770_s13 = sld [smem:[#allocation6 + %s867_s12]] (!%p2375_p7)  ;;  %s881_s15 = sadd.s32 (!%p2375_p7), 4, %s3743_s11  ;;  %v1298_v26 = vld [vmem:[#allocation13 + $0x90] sm:$0xff] (!%p2375_p7)  ;;  %v3785_v27 = vpack.c.bf16 (!%p2375_p7), %v1302_v24, %v1299_v23  ;;  %v1285_v30 = vld [vmem:[#allocation13 + $0x28] sm:$0xff] (!%p2375_p7)  ;;  %v1308_v34 = vld [vmem:[#allocation13 + $0xe0] sm:$0xff] (!%p2375_p7) }
 0x1d4   : > { %s3773_s18 = sld [smem:[#allocation6 + %s881_s15]] (!%p2375_p7)  ;;  %s895_s19 = sadd.s32 (!%p2375_p7), 5, %s3743_s11  ;;  %v1282_v29 = vld [vmem:[#allocation13 + $0x10] sm:$0xff] (!%p2375_p7)  ;;  %v1305_v33 = vld [vmem:[#allocation13 + $0xc8] sm:$0xff] (!%p2375_p7)  ;;  %v1288_v7 = vld [vmem:[#allocation13 + $0x40] sm:$0xff] (!%p2375_p7)  ;;  %v3795_v38 = vpack.c.bf16 (!%p2375_p7), %v1301_v28, %v1298_v26 }
 0x1d5   : > { %s3776_s22 = sld [smem:[#allocation6 + %s895_s19]] (!%p2375_p7)  ;;  %s909_s30 = sadd.s32 (!%p2375_p7), 6, %s3743_s11  ;;  %v3788_v35 = vpack.c.bf16 (!%p2375_p7), %v1285_v30, %v1282_v29  ;;  %v1291_v37 = vld [vmem:[#allocation13 + $0x58] sm:$0xff] (!%p2375_p7)  ;;  %v1304_v39 = vld [vmem:[#allocation13 + $0xc0] sm:$0xff] (!%p2375_p7)  ;;  %v3803_v41 = vpack.c.bf16 (!%p2375_p7), %v1308_v34, %v1305_v33  ;;  %v1294_v44 = vld [vmem:[#allocation13 + $0x70] sm:$0xff] (!%p2375_p7) }
 0x1d6   : > { %2855 = vmatpush1.bf16.msra.mxu0 %v3762_v19  ;;  %s824_s14 = sshra.s32 %s3753_s17, 3  ;;  %s827_s21 = sand.u32 7, %s3753_s17  ;;  %v3798_v40 = vpack.c.bf16 %v1291_v37, %v1288_v7  ;;  %v1307_v43 = vld [vmem:[#allocation13 + $0xd8] sm:$0xff]  ;;  %v1297_v45 = vld [vmem:[#allocation13 + $0x88] sm:$0xff]  ;;  %v1314_v47 = vld [vmem:[#allocation13 + $0x110] sm:$0xff] }
 0x1d7   : > { %2857 = vmatprep.subr.bf16.mxu0 %v3768_v20  ;;  %s2377_s24 = smul.u32 24, %s824_s14  ;;  %s841_s25 = sshra.s32 %s3757_s4, 3  ;;  %2882 = vmatpush3.bf16.msra.mxu1 %v3788_v35  ;;  %v1311_v46 = vld [vmem:[#allocation13 + $0xf8] sm:$0xff]  ;;  %v1310_v51 = vld [vmem:[#allocation13 + $0xf0] sm:$0xff]  ;;  %v1313_v52 = vld [vmem:[#allocation13 + $0x108] sm:$0xff]  ;;  %v3817_v53 = vpack.c.bf16 %v1307_v43, %v1304_v39  ;;  %v3820_v55 = vpack.c.bf16 %v1297_v45, %v1294_v44 }
 0x1d8   : > { %s844_s16 = sand.u32 7, %s3757_s4  ;;  %s2378_s29 = smul.u32 24, %s841_s25  ;;  %2883 = vmatprep.subr.bf16.mxu1 %v3429_v10  ;;  %v1317_v54 = vld [vmem:[#allocation13 + $0x128] sm:$0xff]  ;;  %v3830_v57 = vpack.c.bf16 %v1314_v47, %v1311_v46  ;;  %v1300_v58 = vld [vmem:[#allocation13 + $0xa0] sm:$0xff]  ;;  %v1303_v59 = vld [vmem:[#allocation13 + $0xb8] sm:$0xff]  ;;  %v3845_v1 = vpack.c.bf16 %v1313_v52, %v1310_v51 }
 0x1d9   : > { %s3791_s17 = sadd.s32 %s2377_s24, %s827_s21  ;;  %s855_s27 = sshra.s32 %s3764_s23, 3  ;;  %v1320_v61 = vld [vmem:[#allocation13 + $0x140] sm:$0xff]  ;;  %v3848_v3 = vpack.c.bf16 %v1303_v59, %v1300_v58  ;;  %v1319_v6 = vld [vmem:[#allocation13 + $0x138] sm:$0xff]  ;;  %v1306_v31 = vld [vmem:[#allocation13 + $0xd0] sm:$0xff] }
 0x1da   : > { %2859 = vmatpush1.bf16.msra.mxu0 %v3780_v25  ;;  %s3800_s4 = sadd.s32 %s2378_s29, %s844_s16  ;;  %s858_s12 = sand.u32 7, %s3764_s23  ;;  %v1316_v2 = vld [vmem:[#allocation13 + $0x120] sm:$0xff]  ;;  %v3858_v5 = vpack.c.bf16 %v1320_v61, %v1317_v54  ;;  %v1309_v9 = vld [vmem:[#allocation13 + $0xe8] sm:$0xff]  ;;  %v1323_v32 = vld [vmem:[#allocation13 + $0x158] sm:$0xff] }
 0x1db   : > { %2861 = vmatprep.subr.bf16.mxu0 %v3785_v27  ;;  %s2379_s15 = smul.u32 24, %s855_s27  ;;  %s869_s19 = sshra.s32 %s3770_s13, 3  ;;  %2885 = vmatpush3.bf16.msra.mxu1 %v3798_v40  ;;  %v1326_v14 = vld [vmem:[#allocation13 + $0x170] sm:$0xff]  ;;  %v3867_v16 = vpack.c.bf16 %v1319_v6, %v1316_v2  ;;  %v1325_v21 = vld [vmem:[#allocation13 + $0x168] sm:$0xff]  ;;  %v3870_v22 = vpack.c.bf16 %v1309_v9, %v1306_v31  ;;  %v1312_v24 = vld [vmem:[#allocation13 + $0x100] sm:$0xff] }
 0x1dc   : > { %s872_s14 = sand.u32 7, %s3770_s13  ;;  %s2380_s21 = smul.u32 24, %s869_s19  ;;  %2886 = vmatprep.subr.bf16.mxu1 %v3429_v10  ;;  %v1322_v18 = vld [vmem:[#allocation13 + $0x150] sm:$0xff]  ;;  %v3877_v23 = vpack.c.bf16 %v1326_v14, %v1323_v32  ;;  %v1315_v26 = vld [vmem:[#allocation13 + $0x118] sm:$0xff]  ;;  %v1321_v34 = vld [vmem:[#allocation13 + $0x148] sm:$0xff] }
 0x1dd   : > { %s4256_s2 = sld [smem:[#allocation23_spill]]  ;;  %s831_s24 = scalar_lea.vmem [#allocation2], %s3791_s17  ;;  %v3883_v29 = vpack.c.bf16 %v1325_v21, %v1322_v18  ;;  %v3886_v30 = vpack.c.bf16 %v1315_v26, %v1312_v24  ;;  %v1318_v33 = vld [vmem:[#allocation13 + $0x130] sm:$0xff]  ;;  %v3895_v36 = vld [vmem:[#allocation3] sm:$0xff]  ;;  %v1324_v37 = vld [vmem:[#allocation13 + $0x160] sm:$0xff] }
 0x1de   : > { %2863 = vmatpush1.bf16.msra.mxu0 %v3795_v38  ;;  %v832_v56 = vld [vmem:[%s831_s24] ss:$8 sm:$0x7]  ;;  %s861_s25 = sadd.s32 %s2379_s15, %s858_s12  ;;  %s883_s13 = sshra.s32 %s3773_s18, 3  ;;  %v3898_v7 = vpack.c.bf16 %v1321_v34, %v1318_v33 }
 0x1df   : > { %2865 = vmatprep.subr.bf16.mxu0 %v3803_v41  ;;  %837 = vst.msk [vmem:[#allocation4] ss:$8 sm:$0x7] %vm3810_vm1, %v832_v56  ;;  %s848_s16 = scalar_lea.vmem [#allocation2], %s3800_s4  ;;  %s875_s29 = sadd.s32 %s2380_s21, %s872_s14  ;;  %2888 = vmatpush3.bf16.msra.mxu1 %v3820_v55  ;;  %v1327_v39 = vld [vmem:[#allocation13 + $0x178] sm:$0xff] }
 0x1e0   : > { %v849_v60 = vld [vmem:[%s848_s16] ss:$8 sm:$0x7]  ;;  %s862_s17 = scalar_lea.vmem [#allocation2], %s861_s25  ;;  %s876_s27 = scalar_lea.vmem [#allocation2], %s875_s29  ;;  %2889 = vmatprep.subr.bf16.mxu1 %v3429_v10  ;;  %v3906_v45 = vpack.c.bf16 %v1327_v39, %v1324_v37 }
 0x1e1   : > { %851 = vst.msk [vmem:[#allocation4 + $0x1] ss:$8 sm:$0x7] %vm3810_vm1, %v849_v60  ;;  %v863_v63 = vld [vmem:[%s862_s17] ss:$8 sm:$0x7] }
 0x1e2   : > { %865 = vst.msk [vmem:[#allocation4 + $0x2] ss:$8 sm:$0x7] %vm3810_vm1, %v863_v63  ;;  %v877_v0 = vld [vmem:[%s876_s27] ss:$8 sm:$0x7]  ;;  %2867 = vmatpush1.bf16.msra.mxu0 %v3817_v53 }
 0x1e3   : > { %v3825_v42 = vld [vmem:[%s4256_s2] sm:$0xff]  ;;  %s886_s12 = sand.u32 7, %s3773_s18  ;;  %s2381_s4 = smul.u32 24, %s883_s13  ;;  %879 = vst.msk [vmem:[#allocation4 + $0x3] ss:$8 sm:$0x7] %vm3810_vm1, %v877_v0  ;;  %2869 = vmatprep.subr.bf16.mxu0 %v3830_v57  ;;  %2891 = vmatpush3.bf16.msra.mxu1 %v3848_v3 }
 0x1e4   : > { %vm1506_vm2 = vcmp.lt.s32.totalorder %v1505_v48, %v3825_v42  ;;  %vm1683_vm3 = vcmp.lt.s32.totalorder %v1682_v49, %v3825_v42  ;;  %s897_s15 = sshra.s32 %s3776_s22, 3  ;;  %s900_s18 = sand.u32 7, %s3776_s22  ;;  %2892 = vmatprep.subr.bf16.mxu1 %v3429_v10  ;;  %v3997_v14 = vld [vmem:[%s4229_s7] ss:$0 sm:$0xff] }
 0x1e5   : > { %v1507_v62 = vsel %vm1506_vm2, 1, %v3432_v17  ;;  %v1684_v4 = vsel %vm1683_vm3, 1, %v3432_v17  ;;  %s889_s19 = sadd.s32 %s2381_s4, %s886_s12  ;;  %s2382_s14 = smul.u32 24, %s897_s15 }
 0x1e6   : > { %1509 = vperm.xlu0 %3181, %v1507_v62   ;;  %s3863_s21 = sld [smem:[#allocation6 + %s909_s30]]  ;;  %s890_s28 = scalar_lea.vmem [#allocation2], %s889_s19  ;;  %2871 = vmatpush1.bf16.msra.mxu0 %v3845_v1 }
 0x1e7   : > { %v891_v15 = vld [vmem:[%s890_s28] ss:$8 sm:$0x7]  ;;  %s903_s22 = sadd.s32 %s2382_s14, %s900_s18  ;;  %s923_s23 = sadd.s32 7, %s3743_s11  ;;  %2873 = vmatprep.subr.bf16.mxu0 %v3858_v5  ;;  %2894 = vmatpush3.bf16.msra.mxu1 %v3870_v22 }
 0x1e8   : > { %893 = vst.msk [vmem:[#allocation4 + $0x4] ss:$8 sm:$0x7] %vm3810_vm1, %v891_v15  ;;  %s3874_s30 = sld [smem:[#allocation6 + %s923_s23]]  ;;  %s904_s24 = scalar_lea.vmem [#allocation2], %s903_s22  ;;  %2895 = vmatprep.subr.bf16.mxu1 %v3429_v10 }
 0x1e9   : > { %v905_v28 = vld [vmem:[%s904_s24] ss:$8 sm:$0x7]  ;;  %s3950_s19 = sadd.s32 8, %s3743_s11 }
 0x1ea   : > { %1686 = vperm.xlu0 %3181, %v1684_v4   ;;  %907 = vst.msk [vmem:[#allocation4 + $0x5] ss:$8 sm:$0x7] %vm3810_vm1, %v905_v28  ;;  %2875 = vmatpush1.bf16.msra.mxu0 %v3867_v16  ;;  %s940_s14 = sld [smem:[#allocation6 + %s3950_s19]]  ;;  %s967_s22 = sadd.s32 2, %s3950_s19 }
 0x1eb   : > { %2877 = vmatprep.subr.bf16.mxu0 %v3877_v23  ;;  %2897 = vmatpush3.bf16.msra.mxu1 %v3886_v30  ;;  %s3955_s23 = sld [smem:[#allocation6 + %s967_s22]] }
 0x1ec   : > { %s911_s25 = sshra.s32 %s3863_s21, 3  ;;  %s914_s13 = sand.u32 7, %s3863_s21  ;;  %2898 = vmatprep.subr.bf16.mxu1 %v3429_v10 }
 0x1ed   : > { %s2383_s16 = smul.u32 24, %s911_s25  ;;  %s953_s21 = sadd.s32 1, %s3950_s19 }
 0x1ee   : > { %s925_s29 = sshra.s32 %s3874_s30, 3  ;;  %s928_s17 = sand.u32 7, %s3874_s30  ;;  %2879 = vmatpush1.bf16.msra.mxu0 %v3883_v29 }
 0x1ef   : > { %s917_s27 = sadd.s32 %s2383_s16, %s914_s13  ;;  %s2384_s12 = smul.u32 24, %s925_s29  ;;  %2905 = vmatprep.subr.bf16.mxu0 %v3737_v8  ;;  %2900 = vmatpush3.bf16.msra.mxu1 %v3898_v7 }
 0x1f0   : > { %s918_s4 = scalar_lea.vmem [#allocation2], %s917_s27  ;;  %2901 = vmatprep.subr.bf16.mxu1 %v3429_v10  ;;  %s954_s28 = sld [smem:[#allocation6 + %s953_s21]] }
 0x1f1   : > { %v919_v43 = vld [vmem:[%s918_s4] ss:$8 sm:$0x7]  ;;  %s931_s15 = sadd.s32 %s2384_s12, %s928_s17  ;;  %1401 = vmatmul.mubr.f32.vlgmr.msra.gmra.mrb[0].mxu0 %v3895_v36  ;;  %s981_s30 = sadd.s32 3, %s3950_s19 }
 0x1f2   : > { %921 = vst.msk [vmem:[#allocation4 + $0x6] ss:$8 sm:$0x7] %vm3810_vm1, %v919_v43  ;;  %s932_s18 = scalar_lea.vmem [#allocation2], %s931_s15  ;;  %2907 = vmatpush1.bf16.msra.mxu0 %v3745_v12  ;;  %1583 = vmatprep.mubr.f32.mxu0 %v3430_v11  ;;  %s3958_s24 = sld [smem:[#allocation6 + %s981_s30]] }
 0x1f3   : > { %v933_v44 = vld [vmem:[%s932_s18] ss:$8 sm:$0x7]  ;;  %2909 = vmatprep.subr.bf16.mxu0 %v3747_v13  ;;  %2903 = vmatpush3.bf16.msra.mxu1 %v3906_v45  ;;  %s995_s25 = sadd.s32 4, %s3950_s19  ;;  %s1009_s16 = sadd.s32 5, %s3950_s19 }
 0x1f4   : > { %935 = vst.msk [vmem:[#allocation4 + $0x7] ss:$8 sm:$0x7] %vm3810_vm1, %v933_v44  ;;  %2936 = vmatprep.subr.bf16.mxu1 %v3429_v10  ;;  %s3961_s13 = sld [smem:[#allocation6 + %s995_s25]]  ;;  %s1023_s17 = sadd.s32 6, %s3950_s19 }
 0x1f5   : > { %s3964_s29 = sld [smem:[#allocation6 + %s1009_s16]]  ;;  %s941_s27 = sshra.s32 %s940_s14, 3 }
 0x1f6   : > { %2911 = vmatpush1.bf16.msra.mxu0 %v3762_v19  ;;  %2642 = vmatmul.mubr.f32.vlgmr.msra.gmra.mrb[0].mxu1 %v3895_v36  ;;  %s944_s12 = sand.u32 7, %s940_s14  ;;  %s2386_s4 = smul.u32 24, %s941_s27 }
 0x1f7   : > { %2913 = vmatprep.subr.bf16.mxu0 %v3768_v20  ;;  %2938 = vmatpush3.bf16.msra.mxu1 %v3788_v35  ;;  %s955_s15 = sshra.s32 %s954_s28, 3  ;;  %s958_s18 = sand.u32 7, %s954_s28 }
 0x1f8   : > { %2939 = vmatprep.subr.bf16.mxu1 %v3429_v10  ;;  %2676 = vmatprep.mubr.msk.f32.mxu1 %vm3431_vm0, %v3430_v11  ;;  %s2387_s21 = smul.u32 24, %s955_s15  ;;  %s947_s22 = sadd.s32 %s2386_s4, %s944_s12 }
 0x1f9   : > { %s969_s30 = sshra.s32 %s3955_s23, 3  ;;  %s948_s3 = scalar_lea.vmem [#allocation2], %s947_s22 }
 0x1fa   : > { %2915 = vmatpush1.bf16.msra.mxu0 %v3780_v25  ;;  %s961_s2 = sadd.s32 %s2387_s21, %s958_s18  ;;  %v949_v46 = vld [vmem:[%s948_s3] ss:$8 sm:$0x7]  ;;  %s972_s25 = sand.u32 7, %s3955_s23 }
 0x1fb   : > { %2917 = vmatprep.subr.bf16.mxu0 %v3785_v27  ;;  %2941 = vmatpush3.bf16.msra.mxu1 %v3798_v40  ;;  %951 = vst.msk [vmem:[#allocation4 + $0x18] ss:$8 sm:$0x7] %vm3810_vm1, %v949_v46  ;;  %s962_s16 = scalar_lea.vmem [#allocation2], %s961_s2  ;;  %s2388_s14 = smul.u32 24, %s969_s30  ;;  %v1333_v58 = vld [vmem:[#allocation4] sm:$0xff] }
 0x1fc   : > { %2942 = vmatprep.subr.bf16.mxu1 %v3429_v10  ;;  %v963_v47 = vld [vmem:[%s962_s16] ss:$8 sm:$0x7]  ;;  %s983_s27 = sshra.s32 %s3958_s24, 3  ;;  %s986_s28 = sand.u32 7, %s3958_s24  ;;  %v1335_v24 = vld [vmem:[#allocation4 + $0x10] sm:$0xff] }
 0x1fd   : > { %965 = vst.msk [vmem:[#allocation4 + $0x19] ss:$8 sm:$0x7] %vm3810_vm1, %v963_v47  ;;  %s2389_s12 = smul.u32 24, %s983_s27  ;;  %s975_s4 = sadd.s32 %s2388_s14, %s972_s25  ;;  %v1334_v61 = vld [vmem:[#allocation4 + $0x8] sm:$0xff] }
 0x1fe   : > { %2919 = vmatpush1.bf16.msra.mxu0 %v3795_v38  ;;  %s997_s15 = sshra.s32 %s3961_s13, 3  ;;  %s976_s3 = scalar_lea.vmem [#allocation2], %s975_s4 }
 0x1ff   : > { %2921 = vmatprep.subr.bf16.mxu0 %v3803_v41  ;;  %2944 = vmatpush3.bf16.msra.mxu1 %v3820_v55  ;;  %s989_s18 = sadd.s32 %s2389_s12, %s986_s28  ;;  %v977_v48 = vld [vmem:[%s976_s3] ss:$8 sm:$0x7]  ;;  %s1000_s23 = sand.u32 7, %s3961_s13 }
 0x200   : > { %2945 = vmatprep.subr.bf16.mxu1 %v3429_v10  ;;  %979 = vst.msk [vmem:[#allocation4 + $0x1a] ss:$8 sm:$0x7] %vm3810_vm1, %v977_v48  ;;  %s990_s2 = scalar_lea.vmem [#allocation2], %s989_s18  ;;  %s2390_s21 = smul.u32 24, %s997_s15 }
 0x201   : > { %v991_v49 = vld [vmem:[%s990_s2] ss:$8 sm:$0x7]  ;;  %s1011_s22 = sshra.s32 %s3964_s29, 3  ;;  %s1014_s24 = sand.u32 7, %s3964_s29 }
 0x202   : > { %2923 = vmatpush1.bf16.msra.mxu0 %v3817_v53  ;;  %993 = vst.msk [vmem:[#allocation4 + $0x1b] ss:$8 sm:$0x7] %vm3810_vm1, %v991_v49  ;;  %s2391_s30 = smul.u32 24, %s1011_s22  ;;  %s1003_s16 = sadd.s32 %s2390_s21, %s1000_s23 }
 0x203   : > { %2925 = vmatprep.subr.bf16.mxu0 %v3830_v57  ;;  %2947 = vmatpush3.bf16.msra.mxu1 %v3848_v3  ;;  %s1024_s25 = sld [smem:[#allocation6 + %s1023_s17]]  ;;  %s1004_s27 = scalar_lea.vmem [#allocation2], %s1003_s16 }
 0x204   : > { %2948 = vmatprep.subr.bf16.mxu1 %v3429_v10  ;;  %s1017_s14 = sadd.s32 %s2391_s30, %s1014_s24  ;;  %v1005_v51 = vld [vmem:[%s1004_s27] ss:$8 sm:$0x7]  ;;  %s1037_s28 = sadd.s32 7, %s3950_s19 }
 0x205   : > { %1007 = vst.msk [vmem:[#allocation4 + $0x1c] ss:$8 sm:$0x7] %vm3810_vm1, %v1005_v51  ;;  %s1018_s13 = scalar_lea.vmem [#allocation2], %s1017_s14  ;;  %s1038_s12 = sld [smem:[#allocation6 + %s1037_s28]] }
 0x206   : > { %2927 = vmatpush1.bf16.msra.mxu0 %v3845_v1  ;;  %v1019_v52 = vld [vmem:[%s1018_s13] ss:$8 sm:$0x7]  ;;  %s1051_s30 = sadd.s32 2, %s3734_s26  ;;  %s1165_s16 = sadd.s32 3, %s3734_s26 }
 0x207   : > { %2929 = vmatprep.subr.bf16.mxu0 %v3858_v5  ;;  %2950 = vmatpush3.bf16.msra.mxu1 %v3870_v22  ;;  %1021 = vst.msk [vmem:[#allocation4 + $0x1d] ss:$8 sm:$0x7] %vm3810_vm1, %v1019_v52  ;;  %v2036_v48 = vstv %s1165_s16 }
 0x208   : > { %2951 = vmatprep.subr.bf16.mxu1 %v3429_v10  ;;  %vm2037_vm6 = vcmp.lt.s32.totalorder %v2036_v48, %v3825_v42 }
 0x209   : > { %s1025_s4 = sshra.s32 %s1024_s25, 3  ;;  %s1028_s15 = sand.u32 7, %s1024_s25  ;;  %v2038_v49 = vsel %vm2037_vm6, 1, %v3432_v17 }
 0x20a   : > { %2931 = vmatpush1.bf16.msra.mxu0 %v3867_v16  ;;  %s2392_s29 = smul.u32 24, %s1025_s4  ;;  %s4044_s25 = sadd.s32 16, %s3743_s11 }
 0x20b   : > { %2933 = vmatprep.subr.bf16.mxu0 %v3877_v23  ;;  %2953 = vmatpush3.bf16.msra.mxu1 %v3886_v30  ;;  %s1039_s3 = sshra.s32 %s1038_s12, 3  ;;  %s1042_s23 = sand.u32 7, %s1038_s12 }
 0x20c   : > { %2954 = vmatprep.subr.bf16.mxu1 %v3429_v10  ;;  %s1031_s18 = sadd.s32 %s2392_s29, %s1028_s15  ;;  %s2393_s2 = smul.u32 24, %s1039_s3 }
 0x20d   : > { %s1032_s17 = scalar_lea.vmem [#allocation2], %s1031_s18  ;;  %s1054_s14 = sld [smem:[#allocation6 + %s4044_s25]] }
 0x20e   : > { %2935 = vmatpush1.bf16.msra.mxu0 %v3883_v29  ;;  %v1033_v54 = vld [vmem:[%s1032_s17] ss:$8 sm:$0x7]  ;;  %s1045_s19 = sadd.s32 %s2393_s2, %s1042_s23  ;;  %s1067_s27 = sadd.s32 1, %s4044_s25 }
 0x20f   : > { %2961 = vmatprep.subr.bf16.mxu0 %v3737_v8  ;;  %2956 = vmatpush3.bf16.msra.mxu1 %v3898_v7  ;;  %1035 = vst.msk [vmem:[#allocation4 + $0x1e] ss:$8 sm:$0x7] %vm3810_vm1, %v1033_v54  ;;  %s1046_s21 = scalar_lea.vmem [#allocation2], %s1045_s19  ;;  %s1068_s26 = sld [smem:[#allocation6 + %s1067_s27]] }
 0x210   : > { %2957 = vmatprep.subr.bf16.mxu1 %v3429_v10  ;;  %v1047_v56 = vld [vmem:[%s1046_s21] ss:$8 sm:$0x7]  ;;  %s1081_s28 = sadd.s32 2, %s4044_s25  ;;  %s1095_s12 = sadd.s32 3, %s4044_s25 }
 0x211   : > { %1049 = vst.msk [vmem:[#allocation4 + $0x1f] ss:$8 sm:$0x7] %vm3810_vm1, %v1047_v56  ;;  %s4052_s13 = sld [smem:[#allocation6 + %s1081_s28]]  ;;  %s1109_s15 = sadd.s32 4, %s4044_s25 }
 0x212   : > { %s4056_s4 = sld [smem:[#allocation6 + %s1095_s12]]  ;;  %s1123_s18 = sadd.s32 5, %s4044_s25 }
 0x213   : > { %2959 = vmatpush3.bf16.msra.mxu1 %v3906_v45  ;;  %s4059_s29 = sld [smem:[#allocation6 + %s1109_s15]]  ;;  %s1137_s23 = sadd.s32 6, %s4044_s25 }
 0x214   : > { %2992 = vmatprep.subr.bf16.mxu1 %v3429_v10  ;;  %s4062_s3 = sld [smem:[#allocation6 + %s1123_s18]]  ;;  %s1055_s17 = sshra.s32 %s1054_s14, 3 }
 0x215   : > { %s1058_s2 = sand.u32 7, %s1054_s14  ;;  %s2395_s19 = smul.u32 24, %s1055_s17 }
 0x216   : > { %s1069_s21 = sshra.s32 %s1068_s26, 3  ;;  %s1072_s22 = sand.u32 7, %s1068_s26 }
 0x217   : > { %s2396_s24 = smul.u32 24, %s1069_s21  ;;  %s1083_s16 = sshra.s32 %s4052_s13, 3 }
 0x218   : > { %s1086_s12 = sand.u32 7, %s4052_s13  ;;  %s2397_s14 = smul.u32 24, %s1083_s16 }
 0x219   : > { %s1075_s27 = sadd.s32 %s2396_s24, %s1072_s22  ;;  %s1097_s18 = sshra.s32 %s4056_s4, 3 }
 0x21a   : > { %s1076_s15 = scalar_lea.vmem [#allocation2], %s1075_s27  ;;  %s1100_s26 = sand.u32 7, %s4056_s4 }
 0x21b   : > { %s2398_s17 = smul.u32 24, %s1097_s18  ;;  %s1114_s13 = sand.u32 7, %s4059_s29 }
 0x21c   : > { %s1125_s16 = sshra.s32 %s4062_s3, 3  ;;  %s1128_s4 = sand.u32 7, %s4062_s3 }
 0x21d   : > { %s1103_s21 = sadd.s32 %s2398_s17, %s1100_s26  ;;  %s2400_s27 = smul.u32 24, %s1125_s16 }
 0x21e   : > { %s1104_s24 = scalar_lea.vmem [#allocation2], %s1103_s21  ;;  %s1151_s18 = sadd.s32 7, %s4044_s25 }
 0x21f   : > { %v1105_v52 = vld [vmem:[%s1104_s24] ss:$8 sm:$0x7]  ;;  %s1152_s26 = sld [smem:[#allocation6 + %s1151_s18]] }
 0x220   : > { %1107 = vst.msk [vmem:[#allocation4 + $0x33] ss:$8 sm:$0x7] %vm3810_vm1, %v1105_v52 }
 0x225   : > { %s1153_s21 = sshra.s32 %s1152_s26, 3 }
 0x265   : > { %v1510_v39 = vpop.permute.xlu0 %1509 }
 0x266   : > { %vm1511_vm4 = vcmp.eq.s32.totalorder %v1510_v39, 1 }
 0x2c4   : > { %v1402_v59 = vpop.f32.mrb[0].mxu0 }
 0x2c5   : > { %v1477_v60 = vadd.f32 %v1402_v59, %v1333_v58  ;;  %v1404_v62 = vpop.f32.mrb[1].mxu0 }
 0x2c6   : > { %v1484_v0 = vadd.f32 %v1404_v62, %v1334_v61 }
 0x2c7   : > { %v2412_v63 = vmul.f32 -1.442695, %v1477_v60  ;;  %v1516_v60 = vld [vmem:[#allocation4 + $0x18] sm:$0xff] }
 0x2c8   : > { %v2413_v2 = vmul.f32 -1.442695, %v1484_v0  ;;  %v1517_v0 = vld [vmem:[#allocation4 + $0x20] sm:$0xff] }
 0x2c9   : > { %3183 = vpow2.f32 %v2412_v63  ;;  %v1473_v4 = vpop.f32.mrb[0].mxu1 }
 0x2ca   : > { %v2643_v6 = vpop.f32.mrb[1].mxu1  ;;  %3185 = vpow2.f32 %v2413_v2  ;;  %v1497_v18 = vadd.f32 %v3997_v14, %v1473_v4 }
 0x2d3   : > { %v3184_v31 = vpop.eup %3183 }
 0x2d4   : > { %v1481_v9 = vadd.f32 1.0, %v3184_v31  ;;  %v3186_v32 = vpop.eup %3185 }
 0x2d5   : > { %v1488_v15 = vadd.f32 1.0, %v3186_v32 }
 0x2d6   : > { %3187 = vrcp.f32 %v1481_v9 }
 0x2d7   : > { %3189 = vrcp.f32 %v1488_v15 }
 0x2e0   : > { %v3188_v21 = vpop.eup %3187 }
 0x2e1   : > { %v1498_v26 = vmul.f32 %v3188_v21, %v1497_v18  ;;  %v3190_v33 = vpop.eup %3189 }
 0x2e2   : > { %v1501_v34 = vsub.f32 1.0, %v3190_v33  ;;  %v1503_v44 = vmul.f32 %v3190_v33, %v3895_v36 }
 0x2e3   : > { %v1499_v28 = vadd.f32 %v1498_v26, %v1335_v24 }
 0x2e5   : > { %3191 = vtanh.f32 %v1499_v28  ;;  %v1518_v28 = vld [vmem:[#allocation4 + $0x28] sm:$0xff] }
 0x2ef   : > { %v3192_v37 = vpop.eup %3191 }
 0x2f0   : > { %v1502_v43 = vmul.f32 %v3192_v37, %v1501_v34 }
 0x2f2   : > { %v1504_v46 = vadd.f32 %v1503_v44, %v1502_v43  ;;  %v1687_v44 = vpop.permute.xlu0 %1686 }
 0x2f3   : > { %vm1688_vm7 = vcmp.eq.s32.totalorder %v1687_v44, 1 }
 0x2f4   : > { %v4002_v47 = vsel %vm1511_vm4, %v1504_v46, %v3895_v36  ;;  %v1859_v36 = vstv %s1051_s30  ;;  %s1061_s30 = sadd.s32 %s2395_s19, %s1058_s2  ;;  %s1089_s2 = sadd.s32 %s2397_s14, %s1086_s12 }
 0x2f5   : > { %1584 = vmatmul.mubr.f32.vlgmr.msra.gmra.mrb[2].mxu0 %v4002_v47  ;;  %2677 = vmatmul.mubr.f32.vlgmr.msra.gmra.mrb[2].mxu1 %v4002_v47  ;;  %vm1860_vm5 = vcmp.lt.s32.totalorder %v1859_v36, %v3825_v42  ;;  %s1062_s28 = scalar_lea.vmem [#allocation2], %s1061_s30  ;;  %v1077_v42 = vld [vmem:[%s1076_s15] ss:$8 sm:$0x7]  ;;  %s1111_s19 = sshra.s32 %s4059_s29, 3 }
 0x2f6   : > { %2963 = vmatpush1.bf16.msra.mxu0 %v3745_v12  ;;  %2994 = vmatpush3.bf16.msra.mxu1 %v3788_v35  ;;  %1079 = vst.msk [vmem:[#allocation4 + $0x31] ss:$8 sm:$0x7] %vm3810_vm1, %v1077_v42  ;;  %s1090_s22 = scalar_lea.vmem [#allocation2], %s1089_s2  ;;  %s2399_s30 = smul.u32 24, %s1111_s19 }
 0x2f7   : > { %2965 = vmatprep.subr.bf16.mxu0 %v3747_v13  ;;  %2995 = vmatprep.subr.bf16.mxu1 %v3429_v10  ;;  %v1091_v51 = vld [vmem:[%s1090_s22] ss:$8 sm:$0x7]  ;;  %s1138_s12 = sld [smem:[#allocation6 + %s1137_s23]]  ;;  %s1131_s15 = sadd.s32 %s2400_s27, %s1128_s4 }
 0x2f8   : > { %1760 = vmatprep.mubr.f32.mxu0 %v3430_v11  ;;  %2711 = vmatprep.mubr.msk.f32.mxu1 %vm3431_vm0, %v3430_v11  ;;  %1093 = vst.msk [vmem:[#allocation4 + $0x32] ss:$8 sm:$0x7] %vm3810_vm1, %v1091_v51  ;;  %s1132_s29 = scalar_lea.vmem [#allocation2], %s1131_s15  ;;  %s1156_s22 = sand.u32 7, %s1152_s26 }
 0x2f9   : > { %v1133_v56 = vld [vmem:[%s1132_s29] ss:$8 sm:$0x7] }
 0x2fa   : > { %2967 = vmatpush1.bf16.msra.mxu0 %v3762_v19  ;;  %2997 = vmatpush3.bf16.msra.mxu1 %v3798_v40  ;;  %1135 = vst.msk [vmem:[#allocation4 + $0x35] ss:$8 sm:$0x7] %vm3810_vm1, %v1133_v56 }
 0x2fb   : > { %2969 = vmatprep.subr.bf16.mxu0 %v3768_v20  ;;  %2998 = vmatprep.subr.bf16.mxu1 %v3429_v10 }
 0x2fd   : > { %s1139_s17 = sshra.s32 %s1138_s12, 3  ;;  %s1142_s2 = sand.u32 7, %s1138_s12 }
 0x2fe   : > { %2971 = vmatpush1.bf16.msra.mxu0 %v3780_v25  ;;  %3000 = vmatpush3.bf16.msra.mxu1 %v3820_v55  ;;  %s2401_s3 = smul.u32 24, %s1139_s17 }
 0x2ff   : > { %2973 = vmatprep.subr.bf16.mxu0 %v3785_v27  ;;  %3001 = vmatprep.subr.bf16.mxu1 %v3429_v10 }
 0x300   : > { %s1145_s19 = sadd.s32 %s2401_s3, %s1142_s2 }
 0x301   : > { %s1146_s23 = scalar_lea.vmem [#allocation2], %s1145_s19 }
 0x302   : > { %2975 = vmatpush1.bf16.msra.mxu0 %v3795_v38  ;;  %3003 = vmatpush3.bf16.msra.mxu1 %v3848_v3  ;;  %v1147_v58 = vld [vmem:[%s1146_s23] ss:$8 sm:$0x7] }
 0x303   : > { %2977 = vmatprep.subr.bf16.mxu0 %v3803_v41  ;;  %3004 = vmatprep.subr.bf16.mxu1 %v3429_v10  ;;  %1149 = vst.msk [vmem:[#allocation4 + $0x36] ss:$8 sm:$0x7] %vm3810_vm1, %v1147_v58 }
 0x306   : > { %2979 = vmatpush1.bf16.msra.mxu0 %v3817_v53  ;;  %3006 = vmatpush3.bf16.msra.mxu1 %v3870_v22 }
 0x307   : > { %2981 = vmatprep.subr.bf16.mxu0 %v3830_v57  ;;  %3007 = vmatprep.subr.bf16.mxu1 %v3429_v10 }
 0x30a   : > { %2983 = vmatpush1.bf16.msra.mxu0 %v3845_v1  ;;  %3009 = vmatpush3.bf16.msra.mxu1 %v3886_v30 }
 0x30b   : > { %2985 = vmatprep.subr.bf16.mxu0 %v3858_v5  ;;  %3010 = vmatprep.subr.bf16.mxu1 %v3429_v10 }
 0x30e   : > { %2987 = vmatpush1.bf16.msra.mxu0 %v3867_v16  ;;  %3012 = vmatpush3.bf16.msra.mxu1 %v3898_v7 }
 0x30f   : > { %2989 = vmatprep.subr.bf16.mxu0 %v3877_v23  ;;  %3013 = vmatprep.subr.bf16.mxu1 %v3429_v10 }
 0x312   : > { %2991 = vmatpush1.bf16.msra.mxu0 %v3883_v29  ;;  %3015 = vmatpush3.bf16.msra.mxu1 %v3906_v45 }
 0x313   : > { %3017 = vmatprep.subr.bf16.mxu0 %v3737_v8  ;;  %3048 = vmatprep.subr.bf16.mxu1 %v3429_v10  ;;  %v1861_v8 = vsel %vm1860_vm5, 1, %v3432_v17  ;;  %v1063_v17 = vld [vmem:[%s1062_s28] ss:$8 sm:$0x7]  ;;  %s1117_s28 = sadd.s32 %s2399_s30, %s1114_s13  ;;  %s2402_s13 = smul.u32 24, %s1153_s21 }
 0x314   : > { %1863 = vperm.xlu1 %3182, %v1861_v8   ;;  %1065 = vst.msk [vmem:[#allocation4 + $0x30] ss:$8 sm:$0x7] %vm3810_vm1, %v1063_v17  ;;  %s1118_s14 = scalar_lea.vmem [#allocation2], %s1117_s28  ;;  %s4133_s30 = sadd.s32 24, %s3743_s11 }
 0x315   : > { %v1119_v54 = vld [vmem:[%s1118_s14] ss:$8 sm:$0x7]  ;;  %s1159_s25 = sadd.s32 %s2402_s13, %s1156_s22  ;;  %s1168_s16 = sld [smem:[#allocation6 + %s4133_s30]] }
 0x316   : > { %1121 = vst.msk [vmem:[#allocation4 + $0x34] ss:$8 sm:$0x7] %vm3810_vm1, %v1119_v54  ;;  %s1160_s24 = scalar_lea.vmem [#allocation2], %s1159_s25  ;;  %s1181_s4 = sadd.s32 1, %s4133_s30 }
 0x317   : > { %v1161_v59 = vld [vmem:[%s1160_s24] ss:$8 sm:$0x7]  ;;  %s1182_s27 = sld [smem:[#allocation6 + %s1181_s4]]  ;;  %s1195_s28 = sadd.s32 2, %s4133_s30 }
 0x318   : > { %2040 = vperm.xlu1 %3182, %v2038_v49   ;;  %1163 = vst.msk [vmem:[#allocation4 + $0x37] ss:$8 sm:$0x7] %vm3810_vm1, %v1161_v59  ;;  %s4138_s12 = sld [smem:[#allocation6 + %s1195_s28]]  ;;  %s1209_s15 = sadd.s32 3, %s4133_s30 }
 0x319   : > { %s4141_s14 = sld [smem:[#allocation6 + %s1209_s15]]  ;;  %s1223_s18 = sadd.s32 4, %s4133_s30 }
 0x31a   : > { %s4144_s11 = sld [smem:[#allocation6 + %s1223_s18]]  ;;  %s1237_s29 = sadd.s32 5, %s4133_s30 }
 0x31b   : > { %s4147_s26 = sld [smem:[#allocation6 + %s1237_s29]]  ;;  %s1251_s17 = sadd.s32 6, %s4133_s30 }
 0x31c   : > { %s1169_s2 = sshra.s32 %s1168_s16, 3  ;;  %s1172_s3 = sand.u32 7, %s1168_s16 }
 0x31d   : > { %s2404_s19 = smul.u32 24, %s1169_s2  ;;  %s1183_s21 = sshra.s32 %s1182_s27, 3 }
 0x31e   : > { %s1186_s22 = sand.u32 7, %s1182_s27  ;;  %s2405_s23 = smul.u32 24, %s1183_s21 }
 0x31f   : > { %s1175_s13 = sadd.s32 %s2404_s19, %s1172_s3  ;;  %s1197_s25 = sshra.s32 %s4138_s12, 3 }
 0x320   : > { %s1189_s24 = sadd.s32 %s2405_s23, %s1186_s22  ;;  %s1176_s4 = scalar_lea.vmem [#allocation2], %s1175_s13 }
 0x321   : > { %s1200_s28 = sand.u32 7, %s4138_s12  ;;  %s1190_s15 = scalar_lea.vmem [#allocation2], %s1189_s24 }
 0x322   : > { %s2406_s16 = smul.u32 24, %s1197_s25  ;;  %s1211_s18 = sshra.s32 %s4141_s14, 3 }
 0x323   : > { %s1214_s27 = sand.u32 7, %s4141_s14  ;;  %s2407_s29 = smul.u32 24, %s1211_s18 }
 0x324   : > { %s1203_s2 = sadd.s32 %s2406_s16, %s1200_s28  ;;  %s1225_s3 = sshra.s32 %s4144_s11, 3 }
 0x325   : > { %s1217_s19 = sadd.s32 %s2407_s29, %s1214_s27  ;;  %s1204_s21 = scalar_lea.vmem [#allocation2], %s1203_s2 }
 0x326   : > { %s1228_s12 = sand.u32 7, %s4144_s11  ;;  %s1218_s22 = scalar_lea.vmem [#allocation2], %s1217_s19 }
 0x327   : > { %s2408_s23 = smul.u32 24, %s1225_s3  ;;  %s1239_s13 = sshra.s32 %s4147_s26, 3 }
 0x328   : > { %s1242_s14 = sand.u32 7, %s4147_s26  ;;  %s2409_s25 = smul.u32 24, %s1239_s13 }
 0x329   : > { %s1231_s24 = sadd.s32 %s2408_s23, %s1228_s12  ;;  %s1265_s16 = sadd.s32 7, %s4133_s30 }
 0x32a   : > { %s1245_s28 = sadd.s32 %s2409_s25, %s1242_s14  ;;  %s1266_s18 = sld [smem:[#allocation6 + %s1265_s16]] }
 0x32b   : > { %s1246_s11 = scalar_lea.vmem [#allocation2], %s1245_s28 }
 0x330   : > { %s1267_s3 = sshra.s32 %s1266_s18, 3  ;;  %s1270_s19 = sand.u32 7, %s1266_s18 }
 0x393   : > { %v1864_v51 = vpop.permute.xlu1 %1863 }
 0x394   : > { %vm1865_vm8 = vcmp.eq.s32.totalorder %v1864_v51, 1 }
 0x3c8   : > { %v1585_v61 = vpop.f32.mrb[2].mxu0  ;;  %v1656_v62 = vpop.f32.mrb[2].mxu1 }
 0x3c9   : > { %v1660_v63 = vadd.f32 %v1585_v61, %v1516_v60  ;;  %v1587_v2 = vpop.f32.mrb[3].mxu0  ;;  %v2678_v4 = vpop.f32.mrb[3].mxu1  ;;  %v1674_v24 = vadd.f32 %v3997_v14, %v1656_v62 }
 0x3ca   : > { %v1667_v31 = vadd.f32 %v1587_v2, %v1517_v0 }
 0x3cb   : > { %v2415_v6 = vmul.f32 -1.442695, %v1660_v63 }
 0x3cc   : > { %v2416_v9 = vmul.f32 -1.442695, %v1667_v31 }
 0x3cd   : > { %3193 = vpow2.f32 %v2415_v6 }
 0x3ce   : > { %3195 = vpow2.f32 %v2416_v9 }
 0x3d7   : > { %v3194_v32 = vpop.eup %3193 }
 0x3d8   : > { %v1664_v15 = vadd.f32 1.0, %v3194_v32  ;;  %v3196_v18 = vpop.eup %3195 }
 0x3d9   : > { %v1671_v21 = vadd.f32 1.0, %v3196_v18 }
 0x3da   : > { %3197 = vrcp.f32 %v1664_v15 }
 0x3db   : > { %3199 = vrcp.f32 %v1671_v21 }
 0x3e4   : > { %v3198_v26 = vpop.eup %3197 }
 0x3e5   : > { %v1675_v33 = vmul.f32 %v3198_v26, %v1674_v24  ;;  %v3200_v37 = vpop.eup %3199 }
 0x3e6   : > { %v1678_v39 = vsub.f32 1.0, %v3200_v37  ;;  %v1680_v36 = vmul.f32 %v3200_v37, %v4002_v47 }
 0x3e7   : > { %v1676_v34 = vadd.f32 %v1675_v33, %v1518_v28 }
 0x3e9   : > { %3201 = vtanh.f32 %v1676_v34 }
 0x3f3   : > { %v3202_v43 = vpop.eup %3201 }
 0x3f4   : > { %v1679_v46 = vmul.f32 %v3202_v43, %v1678_v39  ;;  %v2041_v43 = vpop.permute.xlu1 %2040 }
 0x3f5   : > { %vm2042_vm9 = vcmp.eq.s32.totalorder %v2041_v43, 1 }
 0x3f6   : > { %v1681_v48 = vadd.f32 %v1680_v36, %v1679_v46 }
 0x3f8   : > { %v4095_v8 = vsel %vm1688_vm7, %v1681_v48, %v4002_v47 }
 0x3f9   : > { %1761 = vmatmul.mubr.f32.vlgmr.msra.gmra.mrb[4].mxu0 %v4095_v8  ;;  %2712 = vmatmul.mubr.f32.vlgmr.msra.gmra.mrb[4].mxu1 %v4095_v8 }
 0x3fa   : > { %3019 = vmatpush1.bf16.msra.mxu0 %v3745_v12  ;;  %3050 = vmatpush3.bf16.msra.mxu1 %v3788_v35  ;;  %v1205_v12 = vld [vmem:[%s1204_s21] ss:$8 sm:$0x7]  ;;  %s2411_s21 = smul.u32 24, %s1267_s3  ;;  %v1693_v35 = vld [vmem:[#allocation4 + $0x30] sm:$0xff] }
 0x3fb   : > { %3021 = vmatprep.subr.bf16.mxu0 %v3747_v13  ;;  %3051 = vmatprep.subr.bf16.mxu1 %v3429_v10  ;;  %1207 = vst.msk [vmem:[#allocation4 + $0x4a] ss:$8 sm:$0x7] %vm3810_vm1, %v1205_v12  ;;  %v1219_v13 = vld [vmem:[%s1218_s22] ss:$8 sm:$0x7] }
 0x3fc   : > { %1937 = vmatprep.mubr.f32.mxu0 %v3430_v11  ;;  %2746 = vmatprep.mubr.msk.f32.mxu1 %vm3431_vm0, %v3430_v11  ;;  %v1191_v11 = vld [vmem:[%s1190_s15] ss:$8 sm:$0x7]  ;;  %1221 = vst.msk [vmem:[#allocation4 + $0x4b] ss:$8 sm:$0x7] %vm3810_vm1, %v1219_v13  ;;  %s1273_s30 = sadd.s32 %s2411_s21, %s1270_s19 }
 0x3fd   : > { %1193 = vst.msk [vmem:[#allocation4 + $0x49] ss:$8 sm:$0x7] %vm3810_vm1, %v1191_v11  ;;  %s1232_s15 = scalar_lea.vmem [#allocation2], %s1231_s24  ;;  %s1274_s12 = scalar_lea.vmem [#allocation2], %s1273_s30 }
 0x3fe   : > { %3023 = vmatpush1.bf16.msra.mxu0 %v3762_v19  ;;  %3053 = vmatpush3.bf16.msra.mxu1 %v3798_v40  ;;  %v1233_v19 = vld [vmem:[%s1232_s15] ss:$8 sm:$0x7] }
 0x3ff   : > { %3025 = vmatprep.subr.bf16.mxu0 %v3768_v20  ;;  %3054 = vmatprep.subr.bf16.mxu1 %v3429_v10  ;;  %1235 = vst.msk [vmem:[#allocation4 + $0x4c] ss:$8 sm:$0x7] %vm3810_vm1, %v1233_v19  ;;  %v1247_v20 = vld [vmem:[%s1246_s11] ss:$8 sm:$0x7] }
 0x400   : > { %1249 = vst.msk [vmem:[#allocation4 + $0x4d] ss:$8 sm:$0x7] %vm3810_vm1, %v1247_v20 }
 0x402   : > { %3027 = vmatpush1.bf16.msra.mxu0 %v3780_v25  ;;  %3056 = vmatpush3.bf16.msra.mxu1 %v3820_v55 }
 0x403   : > { %3029 = vmatprep.subr.bf16.mxu0 %v3785_v27  ;;  %3057 = vmatprep.subr.bf16.mxu1 %v3429_v10  ;;  %v1275_v27 = vld [vmem:[%s1274_s12] ss:$8 sm:$0x7] }
 0x404   : > { %1277 = vst.msk [vmem:[#allocation4 + $0x4f] ss:$8 sm:$0x7] %vm3810_vm1, %v1275_v27 }
 0x406   : > { %3031 = vmatpush1.bf16.msra.mxu0 %v3795_v38  ;;  %3059 = vmatpush3.bf16.msra.mxu1 %v3848_v3 }
 0x407   : > { %3033 = vmatprep.subr.bf16.mxu0 %v3803_v41  ;;  %3060 = vmatprep.subr.bf16.mxu1 %v3429_v10 }
 0x40a   : > { %3035 = vmatpush1.bf16.msra.mxu0 %v3817_v53  ;;  %3062 = vmatpush3.bf16.msra.mxu1 %v3870_v22  ;;  %v1694_v53 = vld [vmem:[#allocation4 + $0x38] sm:$0xff] }
 0x40b   : > { %3037 = vmatprep.subr.bf16.mxu0 %v3830_v57  ;;  %3063 = vmatprep.subr.bf16.mxu1 %v3429_v10 }
 0x40e   : > { %3039 = vmatpush1.bf16.msra.mxu0 %v3845_v1  ;;  %3065 = vmatpush3.bf16.msra.mxu1 %v3886_v30 }
 0x40f   : > { %3041 = vmatprep.subr.bf16.mxu0 %v3858_v5  ;;  %3066 = vmatprep.subr.bf16.mxu1 %v3429_v10 }
 0x412   : > { %3043 = vmatpush1.bf16.msra.mxu0 %v3867_v16  ;;  %3068 = vmatpush3.bf16.msra.mxu1 %v3898_v7  ;;  %v1695_v7 = vld [vmem:[#allocation4 + $0x40] sm:$0xff] }
 0x413   : > { %3045 = vmatprep.subr.bf16.mxu0 %v3877_v23  ;;  %3069 = vmatprep.subr.bf16.mxu1 %v3429_v10  ;;  %v1177_v10 = vld [vmem:[%s1176_s4] ss:$8 sm:$0x7]  ;;  %s1252_s4 = sld [smem:[#allocation6 + %s1251_s17]] }
 0x414   : > { %1179 = vst.msk [vmem:[#allocation4 + $0x48] ss:$8 sm:$0x7] %vm3810_vm1, %v1177_v10 }
 0x416   : > { %3047 = vmatpush1.bf16.msra.mxu0 %v3883_v29  ;;  %3071 = vmatpush3.bf16.msra.mxu1 %v3906_v45 }
 0x419   : > { %s1253_s27 = sshra.s32 %s1252_s4, 3  ;;  %s1256_s29 = sand.u32 7, %s1252_s4 }
 0x41a   : > { %s2410_s26 = smul.u32 24, %s1253_s27 }
 0x41c   : > { %s1259_s2 = sadd.s32 %s2410_s26, %s1256_s29 }
 0x41d   : > { %s1260_s17 = scalar_lea.vmem [#allocation2], %s1259_s2 }
 0x41e   : > { %v1261_v25 = vld [vmem:[%s1260_s17] ss:$8 sm:$0x7] }
 0x41f   : > { %1263 = vst.msk [vmem:[#allocation4 + $0x4e] ss:$8 sm:$0x7] %vm3810_vm1, %v1261_v25 }
 0x426   : > { %v1870_v59 = vld [vmem:[#allocation4 + $0x48] sm:$0xff]  ;;  %v1871_v63 = vld [vmem:[#allocation4 + $0x50] sm:$0xff]  ;;  %v1872_v26 = vld [vmem:[#allocation4 + $0x58] sm:$0xff] }
 0x4cc   : > { %v1762_v38 = vpop.f32.mrb[4].mxu0  ;;  %v1833_v40 = vpop.f32.mrb[4].mxu1 }
 0x4cd   : > { %v1837_v41 = vadd.f32 %v1762_v38, %v1693_v35  ;;  %v1764_v55 = vpop.f32.mrb[5].mxu0  ;;  %v2713_v57 = vpop.f32.mrb[5].mxu1  ;;  %v1851_v50 = vadd.f32 %v3997_v14, %v1833_v40 }
 0x4ce   : > { %v1844_v3 = vadd.f32 %v1764_v55, %v1694_v53 }
 0x4cf   : > { %v2417_v1 = vmul.f32 -1.442695, %v1837_v41 }
 0x4d0   : > { %v2418_v5 = vmul.f32 -1.442695, %v1844_v3 }
 0x4d1   : > { %3203 = vpow2.f32 %v2417_v1 }
 0x4d2   : > { %3205 = vpow2.f32 %v2418_v5 }
 0x4db   : > { %v3204_v16 = vpop.eup %3203 }
 0x4dc   : > { %v1841_v22 = vadd.f32 1.0, %v3204_v16  ;;  %v3206_v23 = vpop.eup %3205 }
 0x4dd   : > { %v1848_v29 = vadd.f32 1.0, %v3206_v23 }
 0x4de   : > { %3207 = vrcp.f32 %v1841_v22 }
 0x4df   : > { %3209 = vrcp.f32 %v1848_v29 }
 0x4e8   : > { %v3208_v30 = vpop.eup %3207 }
 0x4e9   : > { %v1852_v45 = vmul.f32 %v3208_v30, %v1851_v50  ;;  %v3210_v49 = vpop.eup %3209 }
 0x4ea   : > { %v1855_v17 = vsub.f32 1.0, %v3210_v49  ;;  %v1857_v54 = vmul.f32 %v3210_v49, %v4095_v8 }
 0x4eb   : > { %v1853_v47 = vadd.f32 %v1852_v45, %v1695_v7 }
 0x4ed   : > { %3211 = vtanh.f32 %v1853_v47 }
 0x4f7   : > { %v3212_v42 = vpop.eup %3211 }
 0x4f8   : > { %v1856_v52 = vmul.f32 %v3212_v42, %v1855_v17 }
 0x4fa   : > { %v1858_v56 = vadd.f32 %v1857_v54, %v1856_v52 }
 0x4fc   : > { %v1866_v58 = vsel %vm1865_vm8, %v1858_v56, %v4095_v8 }
 0x4fd   : > { %1938 = vmatmul.mubr.f32.vlgmr.msra.gmra.mrb[6].mxu0 %v1866_v58  ;;  %2747 = vmatmul.mubr.f32.vlgmr.msra.gmra.mrb[6].mxu1 %v1866_v58 }
 0x5d0   : > { %v1939_v60 = vpop.f32.mrb[6].mxu0  ;;  %v2010_v61 = vpop.f32.mrb[6].mxu1 }
 0x5d1   : > { %v2014_v62 = vadd.f32 %v1939_v60, %v1870_v59  ;;  %v1941_v0 = vpop.f32.mrb[7].mxu0  ;;  %v2748_v2 = vpop.f32.mrb[7].mxu1  ;;  %v2028_v21 = vadd.f32 %v3997_v14, %v2010_v61 }
 0x5d2   : > { %v2021_v6 = vadd.f32 %v1941_v0, %v1871_v63 }
 0x5d3   : > { %v2419_v4 = vmul.f32 -1.442695, %v2014_v62 }
 0x5d4   : > { %v2420_v31 = vmul.f32 -1.442695, %v2021_v6 }
 0x5d5   : > { %3213 = vpow2.f32 %v2419_v4 }
 0x5d6   : > { %3215 = vpow2.f32 %v2420_v31 }
 0x5df   : > { %v3214_v9 = vpop.eup %3213 }
 0x5e0   : > { %v2018_v32 = vadd.f32 1.0, %v3214_v9  ;;  %v3216_v15 = vpop.eup %3215 }
 0x5e1   : > { %v2025_v18 = vadd.f32 1.0, %v3216_v15 }
 0x5e2   : > { %3217 = vrcp.f32 %v2018_v32 }
 0x5e3   : > { %3219 = vrcp.f32 %v2025_v18 }
 0x5ec   : > { %v3218_v24 = vpop.eup %3217 }
 0x5ed   : > { %v2029_v28 = vmul.f32 %v3218_v24, %v2028_v21  ;;  %v3220_v34 = vpop.eup %3219 }
 0x5ee   : > { %v2032_v37 = vsub.f32 1.0, %v3220_v34  ;;  %v2034_v46 = vmul.f32 %v3220_v34, %v1866_v58 }
 0x5ef   : > { %v2030_v33 = vadd.f32 %v2029_v28, %v1872_v26 }
 0x5f1   : > { %3221 = vtanh.f32 %v2030_v33 }
 0x5fb   : > { %v3222_v39 = vpop.eup %3221 }
 0x5fc   : > { %v2033_v44 = vmul.f32 %v3222_v39, %v2032_v37 }
 0x5fe   : > { %v2035_v36 = vadd.f32 %v2034_v46, %v2033_v44 }
 0x600   : > { %v2043_v48 = vsel %vm2042_vm9, %v2035_v36, %v1866_v58 }
 0x601   : > { %2044 = vst [vmem:[#allocation3] sm:$0xff] %v2043_v48 }
 0x602 PF: > { %p2421_p1 = scmp.ne.s32.totalorder %s3409_s0, 1 }
 0x603   : > { %v2050_v14 = vld [vmem:[#allocation14] sm:$0xff] (!%p2421_p1)  ;;  %v2051_v8 = vld [vmem:[#allocation14 + $0x8] sm:$0xff] (!%p2421_p1)  ;;  %v2052_v10 = vld [vmem:[#allocation14 + $0x10] sm:$0xff] (!%p2421_p1)  ;;  %v3433_v11 = vmov (!%p2421_p1), 0.0|0.0   ;;  %vm3434_vm10 = vmmov (!%p2421_p1), 0   ;;  %v3435_v19 = vmov (!%p2421_p1), 0.0   ;;  %v2143_v45 = vlaneseq (!%p2421_p1) }
 0x604   : > { %2048 = sbr.rel (%p2421_p1) target bundleno = 2105 (0x839), region = 80  ;;  %3072 = vmatprep.subr.bf16.mxu0 (!%p2421_p1), %v3433_v11  ;;  %v3073_v12 = vpack.c.bf16 (!%p2421_p1), %v2051_v8, %v2050_v14  ;;  %v2053_v13 = vld [vmem:[#allocation14 + $0x18] sm:$0xff] (!%p2421_p1)  ;;  %2781 = vmatprep.mubr.msk.f32.mxu0 (!%p2421_p1), %vm3434_vm10, %v3435_v19  ;;  %v2054_v25 = vld [vmem:[#allocation14 + $0x20] sm:$0xff] (!%p2421_p1)  ;;  %v2055_v27 = vld [vmem:[#allocation14 + $0x28] sm:$0xff] (!%p2421_p1) }
 0x605   : > { %v3076_v20 = vpack.c.bf16 (!%p2421_p1), %v2053_v13, %v2052_v10  ;;  %v3079_v35 = vpack.c.bf16 (!%p2421_p1), %v2055_v27, %v2054_v25  ;;  %v2056_v38 = vld [vmem:[#allocation14 + $0x30] sm:$0xff] (!%p2421_p1)  ;;  %v2057_v40 = vld [vmem:[#allocation14 + $0x38] sm:$0xff] (!%p2421_p1)  ;;  %v2058_v53 = vld [vmem:[#allocation14 + $0x40] sm:$0xff] (!%p2421_p1)  ;;  %v2144_v47 = vand.u32 (!%p2421_p1), 127, %v2143_v45 }
 0x606   : > { %3074 = vmatpush3.bf16.msra.mxu0 (!%p2421_p1), %v3073_v12  ;;  %v3082_v41 = vpack.c.bf16 (!%p2421_p1), %v2057_v40, %v2056_v38  ;;  %v2059_v55 = vld [vmem:[#allocation14 + $0x48] sm:$0xff] (!%p2421_p1)  ;;  %v2060_v1 = vld [vmem:[#allocation14 + $0x50] sm:$0xff] (!%p2421_p1)  ;;  %v2061_v3 = vld [vmem:[#allocation14 + $0x58] sm:$0xff] (!%p2421_p1) }
 0x607   : > { %3075 = vmatprep.subr.bf16.mxu0 (!%p2421_p1), %v3433_v11  ;;  %v3085_v57 = vpack.c.bf16 (!%p2421_p1), %v2059_v55, %v2058_v53  ;;  %v3088_v5 = vpack.c.bf16 (!%p2421_p1), %v2061_v3, %v2060_v1  ;;  %v2062_v16 = vld [vmem:[#allocation14 + $0x60] sm:$0xff] (!%p2421_p1)  ;;  %v2063_v22 = vld [vmem:[#allocation14 + $0x68] sm:$0xff] (!%p2421_p1)  ;;  %v2064_v29 = vld [vmem:[#allocation14 + $0x70] sm:$0xff] (!%p2421_p1)  ;;  %vm2145_vm11 = vcmp.lt.s32.totalorder (!%p2421_p1), %v2144_v47, 5 }
 0x608   : > { %v3091_v23 = vpack.c.bf16 (!%p2421_p1), %v2063_v22, %v2062_v16  ;;  %v2065_v50 = vld [vmem:[#allocation14 + $0x78] sm:$0xff] (!%p2421_p1) }
 0x609   : > { %v3094_v30 = vpack.c.bf16 (!%p2421_p1), %v2065_v50, %v2064_v29  ;;  %v2049_v7 = vld [vmem:[#allocation3] sm:$0xff] (!%p2421_p1) }
 0x60a   : > { %3077 = vmatpush3.bf16.msra.mxu0 (!%p2421_p1), %v3076_v20  ;;  %v2422_v49 = vld [vmem:[%s4231_s9] ss:$0 sm:$0xff] (!%p2421_p1) }
 0x60b   : > { %3078 = vmatprep.subr.bf16.mxu0 %v3433_v11 }
 0x60e   : > { %3080 = vmatpush3.bf16.msra.mxu0 %v3079_v35 }
 0x60f   : > { %3081 = vmatprep.subr.bf16.mxu0 %v3433_v11 }
 0x612   : > { %3083 = vmatpush3.bf16.msra.mxu0 %v3082_v41 }
 0x613   : > { %3084 = vmatprep.subr.bf16.mxu0 %v3433_v11 }
 0x616   : > { %3086 = vmatpush3.bf16.msra.mxu0 %v3085_v57 }
 0x617   : > { %3087 = vmatprep.subr.bf16.mxu0 %v3433_v11 }
 0x61a   : > { %3089 = vmatpush3.bf16.msra.mxu0 %v3088_v5 }
 0x61b   : > { %3090 = vmatprep.subr.bf16.mxu0 %v3433_v11 }
 0x61e   : > { %3092 = vmatpush3.bf16.msra.mxu0 %v3091_v23 }
 0x61f   : > { %3093 = vmatprep.subr.bf16.mxu0 %v3433_v11 }
 0x622   : > { %3095 = vmatpush3.bf16.msra.mxu0 %v3094_v30 }
 0x625   : > { %2782 = vmatmul.mubr.f32.vlgmr.msra.gmra.mrb[0].mxu0 %v2049_v7 }
 0x6f8   : > { %v2139_v17 = vpop.f32.mrb[0].mxu0 }
 0x6f9   : > { %v2140_v42 = vadd.f32 %v2422_v49, %v2139_v17  ;;  %v2783_v51 = vpop.f32.mrb[1].mxu0 }
 0x6fb   : > { %v2146_v52 = vsel %vm2145_vm11, %v2140_v42, -1e+30 }
 0x6fc   : > { %2147 = vmax.xlane.f32.xlu0 %v2146_v52 }
 0x789   : > { %v2148_v54 = vpop.xlane.xlu0 %2147 }
 0x78a   : > { %v2149_v56 = vsub.f32 %v2146_v52, %v2148_v54 }
 0x78c   : > { %v2150_v58 = vmul.f32 1.442695, %v2149_v56 }
 0x78e   : > { %3223 = vpow2.f32 %v2150_v58 }
 0x798   : > { %v3224_v59 = vpop.eup %3223 }
 0x799   : > { %2152 = vadd.xlane.f32.xlu0 %v3224_v59 }
 0x826   : > { %v2153_v60 = vpop.xlane.xlu0 %2152 }
 0x827   : > { %3225 = vlog2.f32 %v2153_v60 }
 0x831   : > { %v3226_v61 = vpop.eup %3225 }
 0x832   : > { %v2155_v62 = vmul.f32 0.6931472, %v3226_v61 }
 0x834   : > { %v2156_v63 = vadd.f32 %v2155_v62, %v2148_v54 }
 0x836   : > { %v2157_v0 = vsub.f32 %v2146_v52, %v2156_v63 }
 0x838   : > { %2158 = vst [vmem:[#allocation16] sm:$0xff] %v2157_v0 }
 0x839 PF: > { %s4257_s23 = sadd.s32 4294967295, %s3417_s20   ;;  %s3436_s14 = smov [#allocation16]  }
 0x83a   : > { %p4187_p2 = scmp.eq.s32.totalorder %s4257_s23, 1  ;;  %s2168_s25 = sshll.u32 %s3436_s14, 4  ;;  %s2169_s25 = int_to_ptr.vmem [resolvable:$true] %s2168_s25 }
 0x83b   : > { %s3351_s24 = scalar_lea.vmem %s2169_s25, 128  ;;  %p3358_p5 = scmp.lt.s32.totalorder %s2169_s25, %s2169_s25 }
 0x83c   : > { %p3352_p3 = scmp.ne.s32.totalorder %s2169_s25, %s3351_s24  ;;  %p3359_p6 = scmp.lt.s32.totalorder %s3351_s24, %s3351_s24 }
 0x83e   : > { %p3353_p4 = pnand %p3352_p3, %p4187_p2  ;;  %p3360_p9 = por %p3359_p6, %p3358_p5 }
 0x840   : > { %p3354_p11 = pneg %p3353_p4 }
 0x842   : > { %p3361_p12 = pnand %p3360_p9, %p3354_p11 }
 0x844   : > { %3364 = shalt.err (!%p3361_p12)
}
 0x845   : > { %s3365_s15 = scalar_lea.hbm %s4232_s10, 128 }
 0x846   : > { %p3366_p0 = scmp.ne.s32.totalorder %s4232_s10, %s3365_s15  ;;  %p3371_p10 = scmp.lt.u32.totalorder %s3365_s15, %s4232_s10 }
 0x848   : > { %p3367_p8 = pnand %p3366_p0, %p4187_p2 }
 0x84a   : > { %p3368_p13 = pneg %p3367_p8 }
 0x84c   : > { %p3373_p7 = pnand %p3371_p10, %p3368_p13 }
 0x84e   : > { %3376 = shalt.err (!%p3373_p7)
}
 0x84f   : > { %3113 = dma.vmem_to_hbm [thread:$0]  (%p4187_p2), %s2169_s25, 128, %s4232_s10, [#allocation10]  }
 0x850   : > { %3404 = dma.done.wait (%p4187_p2), [#allocation10], 128  }
 0x851   : > { %3406 = vsyncadd (%p4187_p2), [#allocation10], 4294967168 }
 0x852 PF: > { %s31_s20 = sadd.s32 1, %s3417_s20   ;;  %s4259_s2 = sld [smem:[#allocation22_spill]] }
 0x853   : > { %p28_p1 = scmp.ge.s32.totalorder %s31_s20, 4   ;;  %s4260_s0 = smov %s3413_s1 }
 0x855   :  { %30 = sbr.rel (!%p28_p1) target bundleno = 22 (0x16), region = 176 }
 0x858   : > { %s4261_s1 = smov %s4259_s2 }
 0x85c   :  { %2181 = vsyncpa [#allocation9], 1 }
 0x85d   :  { %2183 = vsyncpa [#allocation9 + $0x1], 1 }
 0x85e   :  { %2184 = vsyncpa [#allocation12], 1 }
 0x85f   :  { %2185 = vsyncpa [#allocation15], 1 }
 0x860   :  { %2186 = vsyncpa [#allocation10], 1 }
 0x861   :  { %2188 = vsyncpa [#allocation10 + $0x1], 1 }

</bundles_post_ra>
